<compile_context>
chip_gen: v6e
topology: v6e:2x2x1
jax: 0.10.0
libtpu: 0.0.40
codegen_flags: <defaults>
</compile_context>

<pallas_src>
import functools

import jax
import jax.numpy as jnp
from jax.experimental import pallas as pl
from jax.experimental.pallas import tpu as pltpu


def conv_stats_kernel(x_ref, w_ref, y_ref, sum_ref, ssq_ref, *, kh, kw, wp, w_out, hw_wide):
    """Pass 1: direct conv for one image (sum of shifted matmuls) + BN partial stats.

    x_ref:   (1, Hp*Wp + kw - 1, Cin)  flattened padded image (+kw-1 zero rows)
    w_ref:   (kh*kw, Cin, Cout_pad)    conv taps (resident across the grid)
    y_ref:   (1, hw_wide, Cout_pad)    "wide" conv output (garbage cols at p % wp >= w_out)
    sum/ssq: (1, 1, Cout_pad)          per-image partial sum / sum-of-squares
    """
    cout_p = w_ref.shape[-1]
    acc = jnp.zeros((hw_wide, cout_p), jnp.float32)
    for t in range(kh * kw):
        i, j = divmod(t, kw)
        off = i * wp + j                                  # static tap offset
        patch = x_ref[0, off:off + hw_wide, :]            # (hw_wide, Cin)
        acc = acc + jnp.dot(patch, w_ref[t], preferred_element_type=jnp.float32)
    y_ref[0] = acc

    # Mask the wide-layout garbage columns out of the BatchNorm statistics.
    col = jax.lax.broadcasted_iota(jnp.int32, (hw_wide, 1), 0) % wp
    masked = jnp.where(col < w_out, acc, 0.0)
    sum_ref[0] = jnp.sum(masked, axis=0, keepdims=True)
    ssq_ref[0] = jnp.sum(masked * masked, axis=0, keepdims=True)


def bn_relu_kernel(y_ref, scale_ref, shift_ref, o_ref):
    """Pass 2: per-channel affine (folded BN) + ReLU, lane-dense stores."""
    y = y_ref[0]                                          # (hw_wide, Cout_pad) f32
    o_ref[0] = jnp.maximum(y * scale_ref[...] + shift_ref[...], 0.0).astype(o_ref.dtype)


def conv_block_forward(x_nchw, w_oihw, bias, gamma, beta, *, padding=1, eps=1e-5):
    """Conv2d(stride=1, padding=padding) + BatchNorm2d(train) + ReLU. Returns NCHW."""
    del bias  # exactly cancelled by the BN batch-mean subtraction (see header note)

    n, c_in, h, w = x_nchw.shape
    c_out, _, kh, kw = w_oihw.shape
    h_out = h + 2 * padding - kh + 1
    w_out = w + 2 * padding - kw + 1
    hp, wp = h + 2 * padding, w + 2 * padding
    hw_wide = h_out * wp                       # wide rows per image
    c_out_p = ((c_out + 127) // 128) * 128     # lane-dense output channels

    # ---- glue: layout only (no compute hoisted out of the kernels) ----
    x_nhwc = jnp.transpose(x_nchw, (0, 2, 3, 1))
    xp = jnp.pad(x_nhwc, ((0, 0), (padding, padding), (padding, padding), (0, 0)))
    # Flatten spatial dims; add kw-1 zero rows so every tap's static slice is in bounds.
    xf = jnp.pad(xp.reshape(n, hp * wp, c_in), ((0, 0), (0, kw - 1), (0, 0)))
    flat_len = hp * wp + kw - 1

    # OIHW -> (KH*KW, Cin, Cout_pad), zero-padded output channels.
    w_taps = jnp.transpose(w_oihw, (2, 3, 1, 0)).reshape(kh * kw, c_in, c_out)
    w_taps = jnp.pad(w_taps, ((0, 0), (0, 0), (0, c_out_p - c_out)))

    gamma_p = jnp.pad(gamma.astype(jnp.float32), (0, c_out_p - c_out))
    beta_p = jnp.pad(beta.astype(jnp.float32), (0, c_out_p - c_out))

    # Re-derive per generation if tiles grow (v7x has 64 MiB physical VMEM per TC).
    cparams = pltpu.CompilerParams(
        dimension_semantics=("parallel",),
        vmem_limit_bytes=48 * 1024 * 1024,
    )

    # ---- pass 1: conv + per-image BN partial statistics ----
    kern1 = functools.partial(conv_stats_kernel, kh=kh, kw=kw, wp=wp,
                              w_out=w_out, hw_wide=hw_wide)
    conv_wide, sums, ssqs = pl.pallas_call(
        kern1,
        grid=(n,),
        in_specs=[
            pl.BlockSpec((1, flat_len, c_in), lambda b: (b, 0, 0)),
            pl.BlockSpec((kh * kw, c_in, c_out_p), lambda b: (0, 0, 0)),  # resident weights
        ],
        out_specs=[
            pl.BlockSpec((1, hw_wide, c_out_p), lambda b: (b, 0, 0)),
            pl.BlockSpec((1, 1, c_out_p), lambda b: (b, 0, 0)),
            pl.BlockSpec((1, 1, c_out_p), lambda b: (b, 0, 0)),
        ],
        out_shape=[
            jax.ShapeDtypeStruct((n, hw_wide, c_out_p), jnp.float32),
            jax.ShapeDtypeStruct((n, 1, c_out_p), jnp.float32),
            jax.ShapeDtypeStruct((n, 1, c_out_p), jnp.float32),
        ],
        compiler_params=cparams,
    )(xf, w_taps)

    # ---- fold BN (global batch stats) into per-channel scale/shift (tiny glue) ----
    m_valid = n * h_out * w_out
    total = jnp.sum(sums, axis=(0, 1))
    total_sq = jnp.sum(ssqs, axis=(0, 1))
    mean = total / m_valid
    var = total_sq / m_valid - mean * mean          # one-pass biased variance
    inv = jax.lax.rsqrt(var + eps)
    scale = (gamma_p * inv).reshape(1, c_out_p)
    shift = (beta_p - mean * gamma_p * inv).reshape(1, c_out_p)

    # ---- pass 2: affine + ReLU, lane-dense output ----
    out_wide = pl.pallas_call(
        bn_relu_kernel,
        grid=(n,),
        in_specs=[
            pl.BlockSpec((1, hw_wide, c_out_p), lambda b: (b, 0, 0)),
            pl.BlockSpec((1, c_out_p), lambda b: (0, 0)),
            pl.BlockSpec((1, c_out_p), lambda b: (0, 0)),
        ],
        out_specs=pl.BlockSpec((1, hw_wide, c_out_p), lambda b: (b, 0, 0)),
        out_shape=jax.ShapeDtypeStruct((n, hw_wide, c_out_p), x_nchw.dtype),
        compiler_params=cparams,
    )(conv_wide, scale, shift)

    # ---- glue: drop wide garbage columns + channel padding, back to NCHW ----
    out = out_wide.reshape(n, h_out, wp, c_out_p)[:, :, :w_out, :c_out]
    return jnp.transpose(out, (0, 3, 1, 2))


def conv_block_reference(x_nchw, w_oihw, bias, gamma, beta, *, padding=1, eps=1e-5):
    """Pure-JAX reference (faithful to PyTorch: conv-with-bias, training-mode BN, ReLU)."""
    y = jax.lax.conv_general_dilated(
        x_nchw.astype(jnp.float32), w_oihw.astype(jnp.float32),
        window_strides=(1, 1), padding=[(padding, padding), (padding, padding)],
        dimension_numbers=("NCHW", "OIHW", "NCHW"))
    y = y + bias.reshape(1, -1, 1, 1)
    mean = jnp.mean(y, axis=(0, 2, 3), keepdims=True)
    var = jnp.mean((y - mean) ** 2, axis=(0, 2, 3), keepdims=True)
    y = (y - mean) * jax.lax.rsqrt(var + eps)
    y = y * gamma.reshape(1, -1, 1, 1) + beta.reshape(1, -1, 1, 1)
    return jnp.maximum(y, 0.0)


if __name__ == "__main__":
    # ConvBlock(in_channels=4, out_channels=8, kernel_size=3, padding=1)
    N, C_IN, H, W = 2, 4, 16, 16
    C_OUT, KH, KW = 8, 3, 3

    key = jax.random.PRNGKey(0)
    kx, kw_, kb = jax.random.split(key, 3)
    x = jax.random.normal(kx, (N, C_IN, H, W), dtype=jnp.float32)
    conv_w = 0.1 * jax.random.normal(kw_, (C_OUT, C_IN, KH, KW), dtype=jnp.float32)
    conv_b = 0.05 * jax.random.normal(kb, (C_OUT,), dtype=jnp.float32)
    gamma = 1.0 + 0.1 * jnp.arange(C_OUT, dtype=jnp.float32)
    beta = 0.05 * jnp.arange(C_OUT, dtype=jnp.float32)

    out = conv_block_forward(x, conv_w, conv_b, gamma, beta, padding=1)
    out = jax.block_until_ready(out)

    ref = jax.block_until_ready(conv_block_reference(x, conv_w, conv_b, gamma, beta, padding=1))
    assert out.shape == (N, C_OUT, H, W), out.shape
    assert jnp.allclose(out, ref, atol=1e-3, rtol=1e-3), float(jnp.max(jnp.abs(out - ref)))

    print("KERNEL_OK")
</pallas_src>

<mosaic_0001>
module attributes {stable_mosaic.version = 11 : i64} {
  func.func @conv_stats_kernel(%arg0: i32, %arg1: memref<1x326x4xf32, #tpu.memory_space<vmem>>, %arg2: memref<9x4x128xf32, #tpu.memory_space<vmem>>, %arg3: memref<1x288x128xf32, #tpu.memory_space<vmem>>, %arg4: memref<1x1x128xf32, #tpu.memory_space<vmem>>, %arg5: memref<1x1x128xf32, #tpu.memory_space<vmem>>) attributes {dimension_semantics = [#tpu.dimension_semantics<parallel>], iteration_bounds = array<i64: 2>, scalar_prefetch = 0 : i64, scratch_operands = 0 : i64, tpu.core_type = #tpu.core_type<tc>, window_params = [{transform_indices = @transform_0, window_bounds = array<i64: 1, 326, 4>}, {pipeline_mode = #tpu.pipeline_mode<synchronous>, transform_indices = @transform_1, window_bounds = array<i64: 9, 4, 128>}, {transform_indices = @transform_2, window_bounds = array<i64: 1, 288, 128>}, {transform_indices = @transform_3, window_bounds = array<i64: 1, 1, 128>}, {transform_indices = @transform_4, window_bounds = array<i64: 1, 1, 128>}]} {
    %cst = arith.constant 0.000000e+00 : f32
    %0 = vector.broadcast %cst : f32 to vector<288x128xf32>
    %c0 = arith.constant 0 : index
    %c0_0 = arith.constant 0 : index
    %c0_1 = arith.constant 0 : index
    %1 = vector.load %arg1[%c0, %c0_0, %c0_1] : memref<1x326x4xf32, #tpu.memory_space<vmem>>, vector<1x288x4xf32>
    %2 = vector.shape_cast %1 : vector<1x288x4xf32> to vector<288x4xf32>
    %c0_2 = arith.constant 0 : index
    %c0_3 = arith.constant 0 : index
    %c0_4 = arith.constant 0 : index
    %3 = vector.load %arg2[%c0_2, %c0_3, %c0_4] : memref<9x4x128xf32, #tpu.memory_space<vmem>>, vector<1x4x128xf32>
    %4 = vector.shape_cast %3 : vector<1x4x128xf32> to vector<4x128xf32>
    %cst_5 = arith.constant dense<0.000000e+00> : vector<288x128xf32>
    %5 = tpu.matmul %2, %4, %cst_5 {dimension_numbers = #tpu.dot_dimension_numbers<[1], [0], [0], [1], [0, 0, 1, 1], [], []>} : vector<288x4xf32>, vector<4x128xf32>, vector<288x128xf32> -> vector<288x128xf32>
    %6 = arith.addf %0, %5 : vector<288x128xf32>
    %c0_6 = arith.constant 0 : index
    %c1 = arith.constant 1 : index
    %c0_7 = arith.constant 0 : index
    %7 = vector.load %arg1[%c0_6, %c1, %c0_7] : memref<1x326x4xf32, #tpu.memory_space<vmem>>, vector<1x288x4xf32>
    %8 = vector.shape_cast %7 : vector<1x288x4xf32> to vector<288x4xf32>
    %c1_8 = arith.constant 1 : index
    %c0_9 = arith.constant 0 : index
    %c0_10 = arith.constant 0 : index
    %9 = vector.load %arg2[%c1_8, %c0_9, %c0_10] : memref<9x4x128xf32, #tpu.memory_space<vmem>>, vector<1x4x128xf32>
    %10 = vector.shape_cast %9 : vector<1x4x128xf32> to vector<4x128xf32>
    %cst_11 = arith.constant dense<0.000000e+00> : vector<288x128xf32>
    %11 = tpu.matmul %8, %10, %cst_11 {dimension_numbers = #tpu.dot_dimension_numbers<[1], [0], [0], [1], [0, 0, 1, 1], [], []>} : vector<288x4xf32>, vector<4x128xf32>, vector<288x128xf32> -> vector<288x128xf32>
    %12 = arith.addf %6, %11 : vector<288x128xf32>
    %c0_12 = arith.constant 0 : index
    %c2 = arith.constant 2 : index
    %c0_13 = arith.constant 0 : index
    %13 = vector.load %arg1[%c0_12, %c2, %c0_13] : memref<1x326x4xf32, #tpu.memory_space<vmem>>, vector<1x288x4xf32>
    %14 = vector.shape_cast %13 : vector<1x288x4xf32> to vector<288x4xf32>
    %c2_14 = arith.constant 2 : index
    %c0_15 = arith.constant 0 : index
    %c0_16 = arith.constant 0 : index
    %15 = vector.load %arg2[%c2_14, %c0_15, %c0_16] : memref<9x4x128xf32, #tpu.memory_space<vmem>>, vector<1x4x128xf32>
    %16 = vector.shape_cast %15 : vector<1x4x128xf32> to vector<4x128xf32>
    %cst_17 = arith.constant dense<0.000000e+00> : vector<288x128xf32>
    %17 = tpu.matmul %14, %16, %cst_17 {dimension_numbers = #tpu.dot_dimension_numbers<[1], [0], [0], [1], [0, 0, 1, 1], [], []>} : vector<288x4xf32>, vector<4x128xf32>, vector<288x128xf32> -> vector<288x128xf32>
    %18 = arith.addf %12, %17 : vector<288x128xf32>
    %c0_18 = arith.constant 0 : index
    %c18 = arith.constant 18 : index
    %c0_19 = arith.constant 0 : index
    %19 = vector.load %arg1[%c0_18, %c18, %c0_19] : memref<1x326x4xf32, #tpu.memory_space<vmem>>, vector<1x288x4xf32>
    %20 = vector.shape_cast %19 : vector<1x288x4xf32> to vector<288x4xf32>
    %c3 = arith.constant 3 : index
    %c0_20 = arith.constant 0 : index
    %c0_21 = arith.constant 0 : index
    %21 = vector.load %arg2[%c3, %c0_20, %c0_21] : memref<9x4x128xf32, #tpu.memory_space<vmem>>, vector<1x4x128xf32>
    %22 = vector.shape_cast %21 : vector<1x4x128xf32> to vector<4x128xf32>
    %cst_22 = arith.constant dense<0.000000e+00> : vector<288x128xf32>
    %23 = tpu.matmul %20, %22, %cst_22 {dimension_numbers = #tpu.dot_dimension_numbers<[1], [0], [0], [1], [0, 0, 1, 1], [], []>} : vector<288x4xf32>, vector<4x128xf32>, vector<288x128xf32> -> vector<288x128xf32>
    %24 = arith.addf %18, %23 : vector<288x128xf32>
    %c0_23 = arith.constant 0 : index
    %c19 = arith.constant 19 : index
    %c0_24 = arith.constant 0 : index
    %25 = vector.load %arg1[%c0_23, %c19, %c0_24] : memref<1x326x4xf32, #tpu.memory_space<vmem>>, vector<1x288x4xf32>
    %26 = vector.shape_cast %25 : vector<1x288x4xf32> to vector<288x4xf32>
    %c4 = arith.constant 4 : index
    %c0_25 = arith.constant 0 : index
    %c0_26 = arith.constant 0 : index
    %27 = vector.load %arg2[%c4, %c0_25, %c0_26] : memref<9x4x128xf32, #tpu.memory_space<vmem>>, vector<1x4x128xf32>
    %28 = vector.shape_cast %27 : vector<1x4x128xf32> to vector<4x128xf32>
    %cst_27 = arith.constant dense<0.000000e+00> : vector<288x128xf32>
    %29 = tpu.matmul %26, %28, %cst_27 {dimension_numbers = #tpu.dot_dimension_numbers<[1], [0], [0], [1], [0, 0, 1, 1], [], []>} : vector<288x4xf32>, vector<4x128xf32>, vector<288x128xf32> -> vector<288x128xf32>
    %30 = arith.addf %24, %29 : vector<288x128xf32>
    %c0_28 = arith.constant 0 : index
    %c20 = arith.constant 20 : index
    %c0_29 = arith.constant 0 : index
    %31 = vector.load %arg1[%c0_28, %c20, %c0_29] : memref<1x326x4xf32, #tpu.memory_space<vmem>>, vector<1x288x4xf32>
    %32 = vector.shape_cast %31 : vector<1x288x4xf32> to vector<288x4xf32>
    %c5 = arith.constant 5 : index
    %c0_30 = arith.constant 0 : index
    %c0_31 = arith.constant 0 : index
    %33 = vector.load %arg2[%c5, %c0_30, %c0_31] : memref<9x4x128xf32, #tpu.memory_space<vmem>>, vector<1x4x128xf32>
    %34 = vector.shape_cast %33 : vector<1x4x128xf32> to vector<4x128xf32>
    %cst_32 = arith.constant dense<0.000000e+00> : vector<288x128xf32>
    %35 = tpu.matmul %32, %34, %cst_32 {dimension_numbers = #tpu.dot_dimension_numbers<[1], [0], [0], [1], [0, 0, 1, 1], [], []>} : vector<288x4xf32>, vector<4x128xf32>, vector<288x128xf32> -> vector<288x128xf32>
    %36 = arith.addf %30, %35 : vector<288x128xf32>
    %c0_33 = arith.constant 0 : index
    %c36 = arith.constant 36 : index
    %c0_34 = arith.constant 0 : index
    %37 = vector.load %arg1[%c0_33, %c36, %c0_34] : memref<1x326x4xf32, #tpu.memory_space<vmem>>, vector<1x288x4xf32>
    %38 = vector.shape_cast %37 : vector<1x288x4xf32> to vector<288x4xf32>
    %c6 = arith.constant 6 : index
    %c0_35 = arith.constant 0 : index
    %c0_36 = arith.constant 0 : index
    %39 = vector.load %arg2[%c6, %c0_35, %c0_36] : memref<9x4x128xf32, #tpu.memory_space<vmem>>, vector<1x4x128xf32>
    %40 = vector.shape_cast %39 : vector<1x4x128xf32> to vector<4x128xf32>
    %cst_37 = arith.constant dense<0.000000e+00> : vector<288x128xf32>
    %41 = tpu.matmul %38, %40, %cst_37 {dimension_numbers = #tpu.dot_dimension_numbers<[1], [0], [0], [1], [0, 0, 1, 1], [], []>} : vector<288x4xf32>, vector<4x128xf32>, vector<288x128xf32> -> vector<288x128xf32>
    %42 = arith.addf %36, %41 : vector<288x128xf32>
    %c0_38 = arith.constant 0 : index
    %c37 = arith.constant 37 : index
    %c0_39 = arith.constant 0 : index
    %43 = vector.load %arg1[%c0_38, %c37, %c0_39] : memref<1x326x4xf32, #tpu.memory_space<vmem>>, vector<1x288x4xf32>
    %44 = vector.shape_cast %43 : vector<1x288x4xf32> to vector<288x4xf32>
    %c7 = arith.constant 7 : index
    %c0_40 = arith.constant 0 : index
    %c0_41 = arith.constant 0 : index
    %45 = vector.load %arg2[%c7, %c0_40, %c0_41] : memref<9x4x128xf32, #tpu.memory_space<vmem>>, vector<1x4x128xf32>
    %46 = vector.shape_cast %45 : vector<1x4x128xf32> to vector<4x128xf32>
    %cst_42 = arith.constant dense<0.000000e+00> : vector<288x128xf32>
    %47 = tpu.matmul %44, %46, %cst_42 {dimension_numbers = #tpu.dot_dimension_numbers<[1], [0], [0], [1], [0, 0, 1, 1], [], []>} : vector<288x4xf32>, vector<4x128xf32>, vector<288x128xf32> -> vector<288x128xf32>
    %48 = arith.addf %42, %47 : vector<288x128xf32>
    %c0_43 = arith.constant 0 : index
    %c38 = arith.constant 38 : index
    %c0_44 = arith.constant 0 : index
    %49 = vector.load %arg1[%c0_43, %c38, %c0_44] : memref<1x326x4xf32, #tpu.memory_space<vmem>>, vector<1x288x4xf32>
    %50 = vector.shape_cast %49 : vector<1x288x4xf32> to vector<288x4xf32>
    %c8 = arith.constant 8 : index
    %c0_45 = arith.constant 0 : index
    %c0_46 = arith.constant 0 : index
    %51 = vector.load %arg2[%c8, %c0_45, %c0_46] : memref<9x4x128xf32, #tpu.memory_space<vmem>>, vector<1x4x128xf32>
    %52 = vector.shape_cast %51 : vector<1x4x128xf32> to vector<4x128xf32>
    %cst_47 = arith.constant dense<0.000000e+00> : vector<288x128xf32>
    %53 = tpu.matmul %50, %52, %cst_47 {dimension_numbers = #tpu.dot_dimension_numbers<[1], [0], [0], [1], [0, 0, 1, 1], [], []>} : vector<288x4xf32>, vector<4x128xf32>, vector<288x128xf32> -> vector<288x128xf32>
    %54 = arith.addf %48, %53 : vector<288x128xf32>
    %c0_48 = arith.constant 0 : index
    %c0_49 = arith.constant 0 : index
    %c0_50 = arith.constant 0 : index
    %55 = vector.load %arg3[%c0_48, %c0_49, %c0_50] : memref<1x288x128xf32, #tpu.memory_space<vmem>>, vector<1x288x128xf32>
    %56 = vector.shape_cast %55 : vector<1x288x128xf32> to vector<288x128xf32>
    %57 = vector.shape_cast %54 : vector<288x128xf32> to vector<1x288x128xf32>
    tpu.vector_store %arg3[%c0_48, %c0_49, %c0_50], %57 {strides = array<i32>} : memref<1x288x128xf32, #tpu.memory_space<vmem>>, vector<1x288x128xf32>,
    %58 = tpu.iota {dimensions = array<i32: 0>} : vector<288x1xi32>
    %c18_i32 = arith.constant 18 : i32
    %c0_i32 = arith.constant 0 : i32
    %59 = arith.cmpi eq, %c18_i32, %c0_i32 : i32
    %c1_i32 = arith.constant 1 : i32
    %60 = arith.select %59, %c1_i32, %c18_i32 : i32
    %61 = vector.broadcast %60 : i32 to vector<288x1xi32>
    %62 = arith.remsi %58, %61 : vector<288x1xi32>
    %c0_i32_51 = arith.constant 0 : i32
    %63 = vector.broadcast %c0_i32_51 : i32 to vector<288x1xi32>
    %64 = arith.cmpi ne, %62, %63 : vector<288x1xi32>
    %c0_i32_52 = arith.constant 0 : i32
    %65 = vector.broadcast %c0_i32_52 : i32 to vector<288x1xi32>
    %66 = arith.cmpi slt, %62, %65 : vector<288x1xi32>
    %c0_i32_53 = arith.constant 0 : i32
    %67 = arith.cmpi slt, %60, %c0_i32_53 : i32
    %68 = vector.broadcast %67 : i1 to vector<288x1xi1>
    %69 = vector.broadcast %68 : vector<288x1xi1> to vector<288x1xi1>
    %70 = arith.xori %66, %69 : vector<288x1xi1>
    %71 = arith.andi %70, %64 : vector<288x1xi1>
    %72 = vector.broadcast %60 : i32 to vector<288x1xi32>
    %73 = arith.addi %62, %72 : vector<288x1xi32>
    %74 = arith.select %71, %73, %62 : vector<288x1xi1>, vector<288x1xi32>
    %c16_i32 = arith.constant 16 : i32
    %75 = vector.broadcast %c16_i32 : i32 to vector<288x1xi32>
    %76 = arith.cmpi slt, %74, %75 : vector<288x1xi32>
    %cst_54 = arith.constant 0.000000e+00 : f32
    %77 = vector.shape_cast %76 : vector<288x1xi1> to vector<288x1xi1>
    %78 = vector.broadcast %77 : vector<288x1xi1> to vector<288x128xi1>
    %79 = vector.broadcast %cst_54 : f32 to vector<288x128xf32>
    %80 = arith.select %78, %54, %79 : vector<288x128xi1>, vector<288x128xf32>
    %cst_55 = arith.constant dense<0.000000e+00> : vector<128xf32>
    %81 = vector.multi_reduction <add>, %80, %cst_55 [0] : vector<288x128xf32> to vector<128xf32>
    %82 = vector.shape_cast %81 : vector<128xf32> to vector<1x128xf32>
    %c0_56 = arith.constant 0 : index
    %c0_57 = arith.constant 0 : index
    %c0_58 = arith.constant 0 : index
    %83 = vector.load %arg4[%c0_56, %c0_57, %c0_58] : memref<1x1x128xf32, #tpu.memory_space<vmem>>, vector<1x1x128xf32>
    %84 = vector.shape_cast %83 : vector<1x1x128xf32> to vector<1x128xf32>
    %85 = vector.shape_cast %82 : vector<1x128xf32> to vector<1x1x128xf32>
    tpu.vector_store %arg4[%c0_56, %c0_57, %c0_58], %85 {strides = array<i32>} : memref<1x1x128xf32, #tpu.memory_space<vmem>>, vector<1x1x128xf32>,
    %86 = arith.mulf %80, %80 : vector<288x128xf32>
    %cst_59 = arith.constant dense<0.000000e+00> : vector<128xf32>
    %87 = vector.multi_reduction <add>, %86, %cst_59 [0] : vector<288x128xf32> to vector<128xf32>
    %88 = vector.shape_cast %87 : vector<128xf32> to vector<1x128xf32>
    %c0_60 = arith.constant 0 : index
    %c0_61 = arith.constant 0 : index
    %c0_62 = arith.constant 0 : index
    %89 = vector.load %arg5[%c0_60, %c0_61, %c0_62] : memref<1x1x128xf32, #tpu.memory_space<vmem>>, vector<1x1x128xf32>
    %90 = vector.shape_cast %89 : vector<1x1x128xf32> to vector<1x128xf32>
    %91 = vector.shape_cast %88 : vector<1x128xf32> to vector<1x1x128xf32>
    tpu.vector_store %arg5[%c0_60, %c0_61, %c0_62], %91 {strides = array<i32>} : memref<1x1x128xf32, #tpu.memory_space<vmem>>, vector<1x1x128xf32>,
    return
  }
  func.func @transform_0(%arg0: i32) -> (i32, i32, i32) {
    %c0_i32 = arith.constant 0 : i32
    %c0_i32_0 = arith.constant 0 : i32
    %c0_i32_1 = arith.constant 0 : i32
    return %arg0, %c0_i32, %c0_i32_0 : i32, i32, i32
  }
  func.func @transform_1(%arg0: i32) -> (i32, i32, i32) {
    %c0_i32 = arith.constant 0 : i32
    %c0_i32_0 = arith.constant 0 : i32
    %c0_i32_1 = arith.constant 0 : i32
    %c0_i32_2 = arith.constant 0 : i32
    return %c0_i32, %c0_i32_0, %c0_i32_1 : i32, i32, i32
  }
  func.func @transform_2(%arg0: i32) -> (i32, i32, i32) {
    %c0_i32 = arith.constant 0 : i32
    %c0_i32_0 = arith.constant 0 : i32
    %c0_i32_1 = arith.constant 0 : i32
    return %arg0, %c0_i32, %c0_i32_0 : i32, i32, i32
  }
  func.func @transform_3(%arg0: i32) -> (i32, i32, i32) {
    %c0_i32 = arith.constant 0 : i32
    %c0_i32_0 = arith.constant 0 : i32
    %c0_i32_1 = arith.constant 0 : i32
    return %arg0, %c0_i32, %c0_i32_0 : i32, i32, i32
  }
  func.func @transform_4(%arg0: i32) -> (i32, i32, i32) {
    %c0_i32 = arith.constant 0 : i32
    %c0_i32_0 = arith.constant 0 : i32
    %c0_i32_1 = arith.constant 0 : i32
    return %arg0, %c0_i32, %c0_i32_0 : i32, i32, i32
  }
}

</mosaic_0001>

<bundles_post_ra>
// kernel: tpu_custom_call.1
= control target key start
LH: loop header
LB: loop body
LE: loop exit
PB: predicated region body
PF: predicated region fallthrough
CT: control target
= control target key end

     0   :  { %10 = vsyncpa [#allocation3], 0  ;;  %s9361_s0 = inlined_call_operand.vmem [shape: f32[2,326,4], index: 0, kind: input, shape index: {}]   ;;  %s9362_s1 = inlined_call_operand.vmem [shape: f32[9,4,128], index: 1, kind: input, shape index: {}]   ;;  %s9363_s2 = inlined_call_operand.hbm [shape: f32[2,288,128], index: 2, kind: output, shape index: {0}]   ;;  %s9364_s3 = inlined_call_operand.hbm [shape: f32[2,1,128], index: 3, kind: output, shape index: {1}]   ;;  %s9365_s4 = inlined_call_operand.hbm [shape: f32[2,1,128], index: 4, kind: output, shape index: {2}]  }
   0x1   :  { %12 = vsyncpa [#allocation3 + $0x1], 0 }
   0x2   :  { %13 = vsyncpa [#allocation5], 0 }
   0x3   :  { %15 = vsyncpa [#allocation5 + $0x1], 0  ;;  %s6551_s15 = smov 0   ;;  %s6553_s16 = smov 0  }
   0x4   :  { %s6555_s17 = smov 0   ;;  %s6557_s18 = smov 0  }
   0x5 LB: > { %s6572_s19 = sadd.s32 4294967295, %s6519_s18   ;;  %s5087_s20 = sadd.s32 4294967294, %s6519_s18   ;;  %s6519_s18 = sphi %s6557_s18, %s9843_s18   ;;  %s6515_s17 = sphi %s6555_s17, %s9842_s17   ;;  %s6511_s16 = sphi %s6553_s16, %s9841_s16   ;;  %s6507_s15 = sphi %s6551_s15, %s9840_s15  }
   0x6   : > { %s6576_s21 = sadd.s32 1, %s6519_s18   ;;  %s75_s22 = sadd.s32 1, %s6515_s17 }
   0x7   : > { %s72_s23 = ssub.s32 %s6519_s18, %s6576_s21  ;;  %p85_p0 = scmp.ne.s32.totalorder %s6515_s17, %s6511_s16 }
   0x8   : > { %p73_p1 = scmp.eq.s32.totalorder %s72_s23, 0  ;;  %p86_p2 = scmp.eq.s32.totalorder %s6572_s19, 1 }
   0x9   : > { %p91_p3 = scmp.ne.s32.totalorder %s6511_s16, %s6507_s15  ;;  %p92_p4 = scmp.eq.s32.totalorder %s5087_s20, 1 }
   0xa   : > { %s6589_s24 = scalar_select %p73_p1, %s6515_s17, %s75_s22  }
   0xb   : > { %p6591_p5 = por %p86_p2, %p85_p0  ;;  %p6595_p6 = por %p92_p4, %p91_p3 }
   0xc   : > { %p5090_p7 = scmp.ge.s32.totalorder %s6519_s18, 1  ;;  %p173_p8 = scmp.lt.s32.totalorder %s6519_s18, 3 }
   0xe   : > { %p174_p9 = pnand %p5090_p7, %p173_p8 }
  0x10   : > { %177 = sbr.rel (%p174_p9) target bundleno = 633 (0x279), region = 28 }
  0x15   : > { %v5092_v0 = vld [vmem:[%s9362_s1 + $0x4] sm:$0xf]  ;;  %vm396_vm0 = vcmask 1043456   ;;  %p207_p10 = scmp.lt.s32.totalorder %s6572_s19, 1  ;;  %v248_v1 = vld [vmem:[%s9362_s1] sm:$0xf] }
  0x16   : > { %6275 = vmatprep.subr.msk.mxu1 %vm396_vm0, %v5092_v0  ;;  %5771 = vmatprep.subr.msk.mxu0 %vm396_vm0, %v5092_v0  ;;  %v5167_v2 = vld [vmem:[%s9362_s1 + $0x8] sm:$0xf]  ;;  %vm287_vm1 = vcmask 31744   ;;  %v6636_v9 = vld [vmem:[%s9362_s1 + $0xc] sm:$0xf]  ;;  %s6521_s28 = smov [#allocation2]  }
  0x17   : > { %6276 = vmatpush3.msk.msra.mxu1 %vm396_vm0, %v5092_v0  ;;  %5772 = vmatpush3.msk.msra.mxu0 %vm396_vm0, %v5092_v0  ;;  %s208_s7 = scalar_select %p207_p10, %s6572_s19, 1  ;;  %v6641_v10 = vld [vmem:[%s9362_s1 + $0x10] sm:$0xf]  ;;  %v6726_v47 = vld [vmem:[%s9362_s1 + $0x14] sm:$0xf] }
  0x18   : > { %5827 = vmatprep.subr.msk.mxu1 %vm396_vm0, %v248_v1  ;;  %5883 = vmatprep.subr.msk.mxu0 %vm396_vm0, %v5167_v2  ;;  %v6731_v48 = vld [vmem:[%s9362_s1 + $0x18] sm:$0xf]  ;;  %s6407_s29 = sshll.u32 %s6521_s28, 4  ;;  %s6408_s29 = int_to_ptr.vmem [resolvable:$false] %s6407_s29 }
  0x19   : > { %s6278_s8 = smul.u32 328, %s208_s7  ;;  %s6409_s30 = scalar_lea.vmem %s6408_s29, 9216 }
  0x1b   : > { %s6621_s11 = scalar_lea.vmem %s9361_s0, %s6278_s8  ;;  %s8457_s8 = sand.u32 1, %s6511_s16  }
  0x1c   : > { %v249_v3 = vld [vmem:[%s6621_s11 + $0x1] sm:$0xff]  ;;  %v267_v4 = vld [vmem:[%s6621_s11 + $0x91] sm:$0xff]  ;;  %v250_v5 = vld [vmem:[%s6621_s11 + $0x9] sm:$0xff]  ;;  %s6277_s9 = smul.u32 288, %s8457_s8  ;;  %s4925_s23 = scalar_lea.sflag [#allocation3], %s8457_s8 }
  0x1d   : > { %5773 = vmatprep.mubr.msk.f32.mxu0 %vm287_vm1, %v249_v3  ;;  %5800 = vmatprep.mubr.msk.f32.mxu1 %vm287_vm1, %v267_v4  ;;  %v268_v6 = vld [vmem:[%s6621_s11 + $0x99] sm:$0xff]  ;;  %v251_v7 = vld [vmem:[%s6621_s11 + $0x11] sm:$0xff]  ;;  %v269_v8 = vld [vmem:[%s6621_s11 + $0xa1] sm:$0xff] }
  0x1e   : > { %5774 = vmatmul.mubr.msk.f32.vlgmr.msra.gmra.mxu0 %vm287_vm1, %v250_v5  ;;  %5801 = vmatmul.mubr.msk.f32.vlgmr.msra.gmra.mxu1 %vm287_vm1, %v268_v6  ;;  %v252_v11 = vld [vmem:[%s6621_s11 + $0x19] sm:$0xff]  ;;  %v270_v12 = vld [vmem:[%s6621_s11 + $0xa9] sm:$0xff]  ;;  %v253_v13 = vld [vmem:[%s6621_s11 + $0x21] sm:$0xff]  ;;  %s8647_s10 = scalar_lea.vmem [#allocation2], %s6277_s9 }
  0x1f   : > { %5828 = vmatpush3.msk.msra.mxu1 %vm396_vm0, %v248_v1  ;;  %5884 = vmatpush3.msk.msra.mxu0 %vm396_vm0, %v5167_v2  ;;  %v271_v14 = vld [vmem:[%s6621_s11 + $0xb1] sm:$0xff]  ;;  %v254_v15 = vld [vmem:[%s6621_s11 + $0x29] sm:$0xff]  ;;  %v272_v16 = vld [vmem:[%s6621_s11 + $0xb9] sm:$0xff]  ;;  %s4946_s12 = sshll.u32 %s8647_s10, 4  ;;  %s9242_s12 = int_to_ptr.vmem [resolvable:$true] %s4946_s12 }
  0x20   : > { %5776 = vmatprep.mubr.msk.f32.mxu0 %vm287_vm1, %v251_v7  ;;  %5803 = vmatprep.mubr.msk.f32.mxu1 %vm287_vm1, %v269_v8  ;;  %v255_v17 = vld [vmem:[%s6621_s11 + $0x31] sm:$0xff]  ;;  %v273_v18 = vld [vmem:[%s6621_s11 + $0xc1] sm:$0xff]  ;;  %v256_v19 = vld [vmem:[%s6621_s11 + $0x39] sm:$0xff]  ;;  %s6403_s27 = scalar_lea.vmem %s9242_s12, 4608  ;;  %p6410_p0 = scmp.lt.s32.totalorder %s9242_s12, %s6408_s29 }
  0x21   : > { %5939 = vmatprep.subr.msk.mxu1 %vm396_vm0, %v6636_v9  ;;  %5995 = vmatprep.subr.msk.mxu0 %vm396_vm0, %v6641_v10  ;;  %v274_v20 = vld [vmem:[%s6621_s11 + $0xc9] sm:$0xff]  ;;  %v257_v21 = vld [vmem:[%s6621_s11 + $0x41] sm:$0xff]  ;;  %v275_v22 = vld [vmem:[%s6621_s11 + $0xd1] sm:$0xff]  ;;  %p6404_p11 = scmp.ne.s32.totalorder %s9242_s12, %s6403_s27  ;;  %p6411_p1 = scmp.lt.s32.totalorder %s6409_s30, %s6403_s27 }
  0x22   : > { %5777 = vmatmul.mubr.msk.f32.gmra.mxu0 %vm287_vm1, %v252_v11  ;;  %5804 = vmatmul.mubr.msk.f32.gmra.mxu1 %vm287_vm1, %v270_v12  ;;  %v258_v23 = vld [vmem:[%s6621_s11 + $0x49] sm:$0xff]  ;;  %v276_v24 = vld [vmem:[%s6621_s11 + $0xd9] sm:$0xff]  ;;  %v259_v25 = vld [vmem:[%s6621_s11 + $0x51] sm:$0xff] }
  0x23   : > { %5779 = vmatprep.mubr.msk.f32.mxu0 %vm287_vm1, %v253_v13  ;;  %5806 = vmatprep.mubr.msk.f32.mxu1 %vm287_vm1, %v271_v14  ;;  %v277_v26 = vld [vmem:[%s6621_s11 + $0xe1] sm:$0xff]  ;;  %v260_v27 = vld [vmem:[%s6621_s11 + $0x59] sm:$0xff]  ;;  %v278_v28 = vld [vmem:[%s6621_s11 + $0xe9] sm:$0xff]  ;;  %p6405_p12 = pnand %p6404_p11, %p6591_p5  ;;  %p6412_p2 = por %p6411_p1, %p6410_p0 }
  0x24   : > { %v261_v29 = vld [vmem:[%s6621_s11 + $0x61] sm:$0xff]  ;;  %v279_v30 = vld [vmem:[%s6621_s11 + $0xf1] sm:$0xff]  ;;  %v262_v31 = vld [vmem:[%s6621_s11 + $0x69] sm:$0xff] }
  0x25   : > { %v280_v32 = vld [vmem:[%s6621_s11 + $0xf9] sm:$0xff]  ;;  %v263_v33 = vld [vmem:[%s6621_s11 + $0x71] sm:$0xff]  ;;  %v281_v34 = vld [vmem:[%s6621_s11 + $0x101] sm:$0xff]  ;;  %p6406_p13 = pneg %p6405_p12 }
  0x26   : > { %5780 = vmatmul.mubr.msk.f32.gmra.mxu0 %vm287_vm1, %v254_v15  ;;  %5807 = vmatmul.mubr.msk.f32.gmra.mxu1 %vm287_vm1, %v272_v16  ;;  %v264_v35 = vld [vmem:[%s6621_s11 + $0x79] sm:$0xff]  ;;  %v282_v36 = vld [vmem:[%s6621_s11 + $0x109] sm:$0xff]  ;;  %v265_v37 = vld [vmem:[%s6621_s11 + $0x81] sm:$0xff] }
  0x27   : > { %5782 = vmatprep.mubr.msk.f32.mxu0 %vm287_vm1, %v255_v17  ;;  %5809 = vmatprep.mubr.msk.f32.mxu1 %vm287_vm1, %v273_v18  ;;  %v283_v38 = vld [vmem:[%s6621_s11 + $0x111] sm:$0xff]  ;;  %v266_v39 = vld [vmem:[%s6621_s11 + $0x89] sm:$0xff]  ;;  %v284_v40 = vld [vmem:[%s6621_s11 + $0x119] sm:$0xff]  ;;  %p6413_p3 = pnand %p6412_p2, %p6406_p13 }
  0x28   : > { %v212_v41 = vld [vmem:[%s6621_s11] sm:$0xff]  ;;  %v213_v43 = vld [vmem:[%s6621_s11 + $0x8] sm:$0xff]  ;;  %v214_v45 = vld [vmem:[%s6621_s11 + $0x10] sm:$0xff] }
  0x29   : > { %v1001_v42 = vld [vmem:[%s6621_s11 + $0x2] sm:$0xff]  ;;  %v1002_v44 = vld [vmem:[%s6621_s11 + $0xa] sm:$0xff]  ;;  %v6719_v46 = vld [vmem:[%s6621_s11 + $0x12] sm:$0xff] }
  0x2a   : > { %5783 = vmatmul.mubr.msk.f32.gmra.mxu0 %vm287_vm1, %v256_v19  ;;  %5810 = vmatmul.mubr.msk.f32.gmra.mxu1 %vm287_vm1, %v274_v20  ;;  %v215_v49 = vld [vmem:[%s6621_s11 + $0x18] sm:$0xff]  ;;  %v216_v51 = vld [vmem:[%s6621_s11 + $0x20] sm:$0xff]  ;;  %v217_v53 = vld [vmem:[%s6621_s11 + $0x28] sm:$0xff] }
  0x2b   : > { %5785 = vmatprep.mubr.msk.f32.mxu0 %vm287_vm1, %v257_v21  ;;  %5812 = vmatprep.mubr.msk.f32.mxu1 %vm287_vm1, %v275_v22  ;;  %v6739_v50 = vld [vmem:[%s6621_s11 + $0x1a] sm:$0xff]  ;;  %v6746_v52 = vld [vmem:[%s6621_s11 + $0x22] sm:$0xff]  ;;  %v6760_v54 = vld [vmem:[%s6621_s11 + $0x2a] sm:$0xff] }
  0x2c   : > { %v218_v55 = vld [vmem:[%s6621_s11 + $0x30] sm:$0xff]  ;;  %v219_v57 = vld [vmem:[%s6621_s11 + $0x38] sm:$0xff]  ;;  %v220_v59 = vld [vmem:[%s6621_s11 + $0x40] sm:$0xff] }
  0x2d   : > { %v6764_v56 = vld [vmem:[%s6621_s11 + $0x32] sm:$0xff]  ;;  %v6774_v58 = vld [vmem:[%s6621_s11 + $0x3a] sm:$0xff]  ;;  %v6778_v60 = vld [vmem:[%s6621_s11 + $0x42] sm:$0xff] }
  0x2e   : > { %5786 = vmatmul.mubr.msk.f32.gmra.mxu0 %vm287_vm1, %v258_v23  ;;  %5813 = vmatmul.mubr.msk.f32.gmra.mxu1 %vm287_vm1, %v276_v24  ;;  %v221_v61 = vld [vmem:[%s6621_s11 + $0x48] sm:$0xff]  ;;  %v222_v63 = vld [vmem:[%s6621_s11 + $0x50] sm:$0xff]  ;;  %v223_v1 = vld [vmem:[%s6621_s11 + $0x58] sm:$0xff] }
  0x2f   : > { %5788 = vmatprep.mubr.msk.f32.mxu0 %vm287_vm1, %v259_v25  ;;  %5815 = vmatprep.mubr.msk.f32.mxu1 %vm287_vm1, %v277_v26  ;;  %v6788_v62 = vld [vmem:[%s6621_s11 + $0x4a] sm:$0xff]  ;;  %v6792_v0 = vld [vmem:[%s6621_s11 + $0x52] sm:$0xff]  ;;  %v6802_v2 = vld [vmem:[%s6621_s11 + $0x5a] sm:$0xff] }
  0x30   : > { %v224_v3 = vld [vmem:[%s6621_s11 + $0x60] sm:$0xff]  ;;  %v225_v5 = vld [vmem:[%s6621_s11 + $0x68] sm:$0xff]  ;;  %v226_v7 = vld [vmem:[%s6621_s11 + $0x70] sm:$0xff] }
  0x31   : > { %v6806_v4 = vld [vmem:[%s6621_s11 + $0x62] sm:$0xff]  ;;  %v6816_v6 = vld [vmem:[%s6621_s11 + $0x6a] sm:$0xff]  ;;  %v6820_v8 = vld [vmem:[%s6621_s11 + $0x72] sm:$0xff] }
  0x32   : > { %5789 = vmatmul.mubr.msk.f32.gmra.mxu0 %vm287_vm1, %v260_v27  ;;  %5816 = vmatmul.mubr.msk.f32.gmra.mxu1 %vm287_vm1, %v278_v28  ;;  %v228_v11 = vld [vmem:[%s6621_s11 + $0x80] sm:$0xff]  ;;  %v229_v13 = vld [vmem:[%s6621_s11 + $0x88] sm:$0xff]  ;;  %v230_v15 = vld [vmem:[%s6621_s11 + $0x90] sm:$0xff] }
  0x33   : > { %5791 = vmatprep.mubr.msk.f32.mxu0 %vm287_vm1, %v261_v29  ;;  %5818 = vmatprep.mubr.msk.f32.mxu1 %vm287_vm1, %v279_v30  ;;  %v6834_v12 = vld [vmem:[%s6621_s11 + $0x82] sm:$0xff]  ;;  %v6844_v14 = vld [vmem:[%s6621_s11 + $0x8a] sm:$0xff]  ;;  %v6848_v16 = vld [vmem:[%s6621_s11 + $0x92] sm:$0xff] }
  0x34   : > { %v231_v17 = vld [vmem:[%s6621_s11 + $0x98] sm:$0xff]  ;;  %v232_v19 = vld [vmem:[%s6621_s11 + $0xa0] sm:$0xff]  ;;  %v233_v21 = vld [vmem:[%s6621_s11 + $0xa8] sm:$0xff] }
  0x35   : > { %v6858_v18 = vld [vmem:[%s6621_s11 + $0x9a] sm:$0xff]  ;;  %v6862_v20 = vld [vmem:[%s6621_s11 + $0xa2] sm:$0xff]  ;;  %v6872_v22 = vld [vmem:[%s6621_s11 + $0xaa] sm:$0xff] }
  0x36   : > { %5792 = vmatmul.mubr.msk.f32.gmra.mxu0 %vm287_vm1, %v262_v31  ;;  %5819 = vmatmul.mubr.msk.f32.gmra.mxu1 %vm287_vm1, %v280_v32  ;;  %v234_v23 = vld [vmem:[%s6621_s11 + $0xb0] sm:$0xff]  ;;  %v235_v25 = vld [vmem:[%s6621_s11 + $0xb8] sm:$0xff]  ;;  %v236_v27 = vld [vmem:[%s6621_s11 + $0xc0] sm:$0xff] }
  0x37   : > { %5794 = vmatprep.mubr.msk.f32.mxu0 %vm287_vm1, %v263_v33  ;;  %5821 = vmatprep.mubr.msk.f32.mxu1 %vm287_vm1, %v281_v34  ;;  %v6876_v24 = vld [vmem:[%s6621_s11 + $0xb2] sm:$0xff]  ;;  %v6886_v26 = vld [vmem:[%s6621_s11 + $0xba] sm:$0xff]  ;;  %v6890_v28 = vld [vmem:[%s6621_s11 + $0xc2] sm:$0xff] }
  0x38   : > { %v237_v29 = vld [vmem:[%s6621_s11 + $0xc8] sm:$0xff]  ;;  %v238_v31 = vld [vmem:[%s6621_s11 + $0xd0] sm:$0xff]  ;;  %v239_v33 = vld [vmem:[%s6621_s11 + $0xd8] sm:$0xff] }
  0x39   : > { %v6900_v30 = vld [vmem:[%s6621_s11 + $0xca] sm:$0xff]  ;;  %v6904_v32 = vld [vmem:[%s6621_s11 + $0xd2] sm:$0xff]  ;;  %v6914_v34 = vld [vmem:[%s6621_s11 + $0xda] sm:$0xff] }
  0x3a   : > { %5795 = vmatmul.mubr.msk.f32.gmra.mxu0 %vm287_vm1, %v264_v35  ;;  %5822 = vmatmul.mubr.msk.f32.gmra.mxu1 %vm287_vm1, %v282_v36  ;;  %v240_v35 = vld [vmem:[%s6621_s11 + $0xe0] sm:$0xff] }
  0x3b   : > { %5797 = vmatprep.mubr.msk.f32.mxu0 %vm287_vm1, %v265_v37  ;;  %5824 = vmatprep.mubr.msk.f32.mxu1 %vm287_vm1, %v283_v38  ;;  %v6918_v36 = vld [vmem:[%s6621_s11 + $0xe2] sm:$0xff]  ;;  %v6928_v38 = vld [vmem:[%s6621_s11 + $0xea] sm:$0xff] }
  0x3c   : > { %v241_v37 = vld [vmem:[%s6621_s11 + $0xe8] sm:$0xff] }
  0x3e   : > { %5798 = vmatmul.mubr.msk.f32.gmra.mxu0 %vm287_vm1, %v266_v39  ;;  %5825 = vmatmul.mubr.msk.f32.gmra.mxu1 %vm287_vm1, %v284_v40  ;;  %v242_v39 = vld [vmem:[%s6621_s11 + $0xf0] sm:$0xff] }
  0x3f   : > { %5829 = vmatprep.mubr.msk.f32.mxu1 %vm287_vm1, %v212_v41  ;;  %5885 = vmatprep.mubr.msk.f32.mxu0 %vm287_vm1, %v1001_v42  ;;  %v6932_v40 = vld [vmem:[%s6621_s11 + $0xf2] sm:$0xff]  ;;  %v6942_v42 = vld [vmem:[%s6621_s11 + $0xfa] sm:$0xff] }
  0x40   : > { %v243_v41 = vld [vmem:[%s6621_s11 + $0xf8] sm:$0xff] }
  0x42   : > { %5830 = vmatmul.mubr.msk.f32.vlgmr.msra.gmra.mxu1 %vm287_vm1, %v213_v43  ;;  %5886 = vmatmul.mubr.msk.f32.vlgmr.msra.gmra.mxu0 %vm287_vm1, %v1002_v44  ;;  %v244_v43 = vld [vmem:[%s6621_s11 + $0x100] sm:$0xff] }
  0x43   : > { %5940 = vmatpush3.msk.msra.mxu1 %vm396_vm0, %v6636_v9  ;;  %5996 = vmatpush3.msk.msra.mxu0 %vm396_vm0, %v6641_v10  ;;  %v227_v9 = vld [vmem:[%s6621_s11 + $0x78] sm:$0xff]  ;;  %v6946_v44 = vld [vmem:[%s6621_s11 + $0x102] sm:$0xff] }
  0x44   : > { %5832 = vmatprep.mubr.msk.f32.mxu1 %vm287_vm1, %v214_v45  ;;  %5888 = vmatprep.mubr.msk.f32.mxu0 %vm287_vm1, %v6719_v46  ;;  %v6830_v10 = vld [vmem:[%s6621_s11 + $0x7a] sm:$0xff]  ;;  %v245_v45 = vld [vmem:[%s6621_s11 + $0x108] sm:$0xff] }
  0x45   : > { %6051 = vmatprep.subr.msk.mxu1 %vm396_vm0, %v6726_v47  ;;  %6107 = vmatprep.subr.msk.mxu0 %vm396_vm0, %v6731_v48 }
  0x46   : > { %5833 = vmatmul.mubr.msk.f32.gmra.mxu1 %vm287_vm1, %v215_v49  ;;  %5889 = vmatmul.mubr.msk.f32.gmra.mxu0 %vm287_vm1, %v6739_v50  ;;  %v6956_v49 = vld [vmem:[%s6621_s11 + $0x10a] sm:$0xff] }
  0x47   : > { %5835 = vmatprep.mubr.msk.f32.mxu1 %vm287_vm1, %v216_v51  ;;  %5891 = vmatprep.mubr.msk.f32.mxu0 %vm287_vm1, %v6746_v52  ;;  %v246_v51 = vld [vmem:[%s6621_s11 + $0x110] sm:$0xff] }
  0x4a   : > { %5836 = vmatmul.mubr.msk.f32.gmra.mxu1 %vm287_vm1, %v217_v53  ;;  %5892 = vmatmul.mubr.msk.f32.gmra.mxu0 %vm287_vm1, %v6760_v54  ;;  %v6960_v53 = vld [vmem:[%s6621_s11 + $0x112] sm:$0xff] }
  0x4b   : > { %5838 = vmatprep.mubr.msk.f32.mxu1 %vm287_vm1, %v218_v55  ;;  %5894 = vmatprep.mubr.msk.f32.mxu0 %vm287_vm1, %v6764_v56  ;;  %v247_v55 = vld [vmem:[%s6621_s11 + $0x118] sm:$0xff] }
  0x4e   : > { %5839 = vmatmul.mubr.msk.f32.gmra.mxu1 %vm287_vm1, %v219_v57  ;;  %5895 = vmatmul.mubr.msk.f32.gmra.mxu0 %vm287_vm1, %v6774_v58  ;;  %v6970_v57 = vld [vmem:[%s6621_s11 + $0x11a] sm:$0xff] }
  0x4f   : > { %5841 = vmatprep.mubr.msk.f32.mxu1 %vm287_vm1, %v220_v59  ;;  %5897 = vmatprep.mubr.msk.f32.mxu0 %vm287_vm1, %v6778_v60  ;;  %v1861_v59 = vld [vmem:[%s6621_s11 + $0x13] sm:$0xff] }
  0x52   : > { %5842 = vmatmul.mubr.msk.f32.gmra.mxu1 %vm287_vm1, %v221_v61  ;;  %5898 = vmatmul.mubr.msk.f32.gmra.mxu0 %vm287_vm1, %v6788_v62  ;;  %v1862_v61 = vld [vmem:[%s6621_s11 + $0x1b] sm:$0xff] }
  0x53   : > { %5844 = vmatprep.mubr.msk.f32.mxu1 %vm287_vm1, %v222_v63  ;;  %5900 = vmatprep.mubr.msk.f32.mxu0 %vm287_vm1, %v6792_v0  ;;  %v1863_v63 = vld [vmem:[%s6621_s11 + $0x23] sm:$0xff] }
  0x56   : > { %5845 = vmatmul.mubr.msk.f32.gmra.mxu1 %vm287_vm1, %v223_v1  ;;  %5901 = vmatmul.mubr.msk.f32.gmra.mxu0 %vm287_vm1, %v6802_v2  ;;  %v6987_v1 = vld [vmem:[%s9362_s1 + $0x1c] sm:$0xf] }
  0x57   : > { %5847 = vmatprep.mubr.msk.f32.mxu1 %vm287_vm1, %v224_v3  ;;  %5903 = vmatprep.mubr.msk.f32.mxu0 %vm287_vm1, %v6806_v4  ;;  %v1865_v3 = vld [vmem:[%s6621_s11 + $0x33] sm:$0xff] }
  0x5a   : > { %5848 = vmatmul.mubr.msk.f32.gmra.mxu1 %vm287_vm1, %v225_v5  ;;  %5904 = vmatmul.mubr.msk.f32.gmra.mxu0 %vm287_vm1, %v6816_v6  ;;  %v1877_v5 = vld [vmem:[%s6621_s11 + $0x93] sm:$0xff] }
  0x5b   : > { %5850 = vmatprep.mubr.msk.f32.mxu1 %vm287_vm1, %v226_v7  ;;  %5906 = vmatprep.mubr.msk.f32.mxu0 %vm287_vm1, %v6820_v8  ;;  %v1879_v7 = vld [vmem:[%s6621_s11 + $0xa3] sm:$0xff] }
  0x5e   : > { %5851 = vmatmul.mubr.msk.f32.gmra.mxu1 %vm287_vm1, %v227_v9  ;;  %5907 = vmatmul.mubr.msk.f32.gmra.mxu0 %vm287_vm1, %v6830_v10  ;;  %v1881_v9 = vld [vmem:[%s6621_s11 + $0xb3] sm:$0xff] }
  0x5f   : > { %5853 = vmatprep.mubr.msk.f32.mxu1 %vm287_vm1, %v228_v11  ;;  %5909 = vmatprep.mubr.msk.f32.mxu0 %vm287_vm1, %v6834_v12  ;;  %v1883_v11 = vld [vmem:[%s6621_s11 + $0xc3] sm:$0xff] }
  0x62   : > { %5854 = vmatmul.mubr.msk.f32.gmra.mxu1 %vm287_vm1, %v229_v13  ;;  %5910 = vmatmul.mubr.msk.f32.gmra.mxu0 %vm287_vm1, %v6844_v14  ;;  %v1885_v13 = vld [vmem:[%s6621_s11 + $0xd3] sm:$0xff] }
  0x63   : > { %5856 = vmatprep.mubr.msk.f32.mxu1 %vm287_vm1, %v230_v15  ;;  %5912 = vmatprep.mubr.msk.f32.mxu0 %vm287_vm1, %v6848_v16  ;;  %v1887_v15 = vld [vmem:[%s6621_s11 + $0xe3] sm:$0xff] }
  0x66   : > { %5857 = vmatmul.mubr.msk.f32.gmra.mxu1 %vm287_vm1, %v231_v17  ;;  %5913 = vmatmul.mubr.msk.f32.gmra.mxu0 %vm287_vm1, %v6858_v18  ;;  %v1889_v17 = vld [vmem:[%s6621_s11 + $0xf3] sm:$0xff] }
  0x67   : > { %5859 = vmatprep.mubr.msk.f32.mxu1 %vm287_vm1, %v232_v19  ;;  %5915 = vmatprep.mubr.msk.f32.mxu0 %vm287_vm1, %v6862_v20  ;;  %v1891_v19 = vld [vmem:[%s6621_s11 + $0x103] sm:$0xff] }
  0x6a   : > { %5860 = vmatmul.mubr.msk.f32.gmra.mxu1 %vm287_vm1, %v233_v21  ;;  %5916 = vmatmul.mubr.msk.f32.gmra.mxu0 %vm287_vm1, %v6872_v22  ;;  %v1893_v21 = vld [vmem:[%s6621_s11 + $0x113] sm:$0xff] }
  0x6b   : > { %5862 = vmatprep.mubr.msk.f32.mxu1 %vm287_vm1, %v234_v23  ;;  %5918 = vmatprep.mubr.msk.f32.mxu0 %vm287_vm1, %v6876_v24  ;;  %v1465_v23 = vld [vmem:[%s6621_s11 + $0x122] sm:$0xff] }
  0x6e   : > { %5863 = vmatmul.mubr.msk.f32.gmra.mxu1 %vm287_vm1, %v235_v25  ;;  %5919 = vmatmul.mubr.msk.f32.gmra.mxu0 %vm287_vm1, %v6886_v26  ;;  %v1466_v25 = vld [vmem:[%s6621_s11 + $0x12a] sm:$0xff] }
  0x6f   : > { %5865 = vmatprep.mubr.msk.f32.mxu1 %vm287_vm1, %v236_v27  ;;  %5921 = vmatprep.mubr.msk.f32.mxu0 %vm287_vm1, %v6890_v28  ;;  %v2291_v27 = vld [vmem:[%s6621_s11 + $0x14] sm:$0xff] }
  0x72   : > { %5866 = vmatmul.mubr.msk.f32.gmra.mxu1 %vm287_vm1, %v237_v29  ;;  %5922 = vmatmul.mubr.msk.f32.gmra.mxu0 %vm287_vm1, %v6900_v30  ;;  %v2292_v29 = vld [vmem:[%s6621_s11 + $0x1c] sm:$0xff] }
  0x73   : > { %5868 = vmatprep.mubr.msk.f32.mxu1 %vm287_vm1, %v238_v31  ;;  %5924 = vmatprep.mubr.msk.f32.mxu0 %vm287_vm1, %v6904_v32  ;;  %v2723_v31 = vld [vmem:[%s6621_s11 + $0x34] sm:$0xff] }
  0x76   : > { %5869 = vmatmul.mubr.msk.f32.gmra.mxu1 %vm287_vm1, %v239_v33  ;;  %5925 = vmatmul.mubr.msk.f32.gmra.mxu0 %vm287_vm1, %v6914_v34  ;;  %v2725_v33 = vld [vmem:[%s6621_s11 + $0x44] sm:$0xff] }
  0x77   : > { %5871 = vmatprep.mubr.msk.f32.mxu1 %vm287_vm1, %v240_v35  ;;  %5927 = vmatprep.mubr.msk.f32.mxu0 %vm287_vm1, %v6918_v36  ;;  %v2727_v35 = vld [vmem:[%s6621_s11 + $0x54] sm:$0xff] }
  0x7a   : > { %5872 = vmatmul.mubr.msk.f32.gmra.mxu1 %vm287_vm1, %v241_v37  ;;  %5928 = vmatmul.mubr.msk.f32.gmra.mxu0 %vm287_vm1, %v6928_v38  ;;  %v2729_v37 = vld [vmem:[%s6621_s11 + $0x64] sm:$0xff] }
  0x7b   : > { %5874 = vmatprep.mubr.msk.f32.mxu1 %vm287_vm1, %v242_v39  ;;  %5930 = vmatprep.mubr.msk.f32.mxu0 %vm287_vm1, %v6932_v40 }
  0x7e   : > { %5875 = vmatmul.mubr.msk.f32.gmra.mxu1 %vm287_vm1, %v243_v41  ;;  %5931 = vmatmul.mubr.msk.f32.gmra.mxu0 %vm287_vm1, %v6942_v42 }
  0x7f   : > { %5877 = vmatprep.mubr.msk.f32.mxu1 %vm287_vm1, %v244_v43  ;;  %5933 = vmatprep.mubr.msk.f32.mxu0 %vm287_vm1, %v6946_v44  ;;  %v2731_v43 = vld [vmem:[%s6621_s11 + $0x74] sm:$0xff] }
  0x82   : > { %5878 = vmatmul.mubr.msk.f32.gmra.mxu1 %vm287_vm1, %v245_v45  ;;  %5934 = vmatmul.mubr.msk.f32.gmra.mxu0 %vm287_vm1, %v6956_v49 }
  0x83   : > { %5880 = vmatprep.mubr.msk.f32.mxu1 %vm287_vm1, %v246_v51  ;;  %5936 = vmatprep.mubr.msk.f32.mxu0 %vm287_vm1, %v6960_v53 }
  0x86   : > { %5881 = vmatmul.mubr.msk.f32.gmra.mxu1 %vm287_vm1, %v247_v55  ;;  %5937 = vmatmul.mubr.msk.f32.gmra.mxu0 %vm287_vm1, %v6970_v57  ;;  %v2733_v55 = vld [vmem:[%s6621_s11 + $0x84] sm:$0xff] }
  0x87   : > { %5941 = vmatprep.mubr.msk.f32.mxu1 %vm287_vm1, %v6719_v46  ;;  %5997 = vmatprep.mubr.msk.f32.mxu0 %vm287_vm1, %v1861_v59  ;;  %v6992_v46 = vld [vmem:[%s9362_s1 + $0x20] sm:$0xf] }
  0x8a   : > { %5942 = vmatmul.mubr.msk.f32.vlgmr.msra.gmra.mxu1 %vm287_vm1, %v6739_v50  ;;  %5998 = vmatmul.mubr.msk.f32.vlgmr.msra.gmra.mxu0 %vm287_vm1, %v1862_v61  ;;  %v1864_v50 = vld [vmem:[%s6621_s11 + $0x2b] sm:$0xff] }
  0x8b   : > { %6052 = vmatpush3.msk.msra.mxu1 %vm396_vm0, %v6726_v47  ;;  %6108 = vmatpush3.msk.msra.mxu0 %vm396_vm0, %v6731_v48  ;;  %v1866_v47 = vld [vmem:[%s6621_s11 + $0x3b] sm:$0xff]  ;;  %v1867_v48 = vld [vmem:[%s6621_s11 + $0x43] sm:$0xff]  ;;  %v2734_v61 = vld [vmem:[%s6621_s11 + $0x8c] sm:$0xff] }
  0x8c   : > { %5944 = vmatprep.mubr.msk.f32.mxu1 %vm287_vm1, %v6746_v52  ;;  %6000 = vmatprep.mubr.msk.f32.mxu0 %vm287_vm1, %v1863_v63  ;;  %v1868_v52 = vld [vmem:[%s6621_s11 + $0x4b] sm:$0xff] }
  0x8d   : > { %6163 = vmatprep.subr.msk.mxu1 %vm396_vm0, %v6987_v1  ;;  %6219 = vmatprep.subr.msk.mxu0 %vm396_vm0, %v6992_v46 }
  0x8e   : > { %5945 = vmatmul.mubr.msk.f32.gmra.mxu1 %vm287_vm1, %v6760_v54  ;;  %6001 = vmatmul.mubr.msk.f32.gmra.mxu0 %vm287_vm1, %v1864_v50  ;;  %v1869_v54 = vld [vmem:[%s6621_s11 + $0x53] sm:$0xff] }
  0x8f   : > { %5947 = vmatprep.mubr.msk.f32.mxu1 %vm287_vm1, %v6764_v56  ;;  %6003 = vmatprep.mubr.msk.f32.mxu0 %vm287_vm1, %v1865_v3  ;;  %v1870_v56 = vld [vmem:[%s6621_s11 + $0x5b] sm:$0xff] }
  0x92   : > { %5948 = vmatmul.mubr.msk.f32.gmra.mxu1 %vm287_vm1, %v6774_v58  ;;  %6004 = vmatmul.mubr.msk.f32.gmra.mxu0 %vm287_vm1, %v1866_v47  ;;  %v1871_v58 = vld [vmem:[%s6621_s11 + $0x63] sm:$0xff] }
  0x93   : > { %5950 = vmatprep.mubr.msk.f32.mxu1 %vm287_vm1, %v6778_v60  ;;  %6006 = vmatprep.mubr.msk.f32.mxu0 %vm287_vm1, %v1867_v48  ;;  %v1872_v60 = vld [vmem:[%s6621_s11 + $0x6b] sm:$0xff]  ;;  %v2736_v47 = vld [vmem:[%s6621_s11 + $0x9c] sm:$0xff] }
  0x96   : > { %5951 = vmatmul.mubr.msk.f32.gmra.mxu1 %vm287_vm1, %v6788_v62  ;;  %6007 = vmatmul.mubr.msk.f32.gmra.mxu0 %vm287_vm1, %v1868_v52  ;;  %v1873_v62 = vld [vmem:[%s6621_s11 + $0x73] sm:$0xff] }
  0x97   : > { %5953 = vmatprep.mubr.msk.f32.mxu1 %vm287_vm1, %v6792_v0  ;;  %6009 = vmatprep.mubr.msk.f32.mxu0 %vm287_vm1, %v1869_v54  ;;  %v1874_v0 = vld [vmem:[%s6621_s11 + $0x7b] sm:$0xff]  ;;  %v2737_v54 = vld [vmem:[%s6621_s11 + $0xa4] sm:$0xff] }
  0x9a   : > { %5954 = vmatmul.mubr.msk.f32.gmra.mxu1 %vm287_vm1, %v6802_v2  ;;  %6010 = vmatmul.mubr.msk.f32.gmra.mxu0 %vm287_vm1, %v1870_v56  ;;  %v1875_v2 = vld [vmem:[%s6621_s11 + $0x83] sm:$0xff] }
  0x9b   : > { %5956 = vmatprep.mubr.msk.f32.mxu1 %vm287_vm1, %v6806_v4  ;;  %6012 = vmatprep.mubr.msk.f32.mxu0 %vm287_vm1, %v1871_v58  ;;  %v1876_v4 = vld [vmem:[%s6621_s11 + $0x8b] sm:$0xff] }
  0x9e   : > { %5957 = vmatmul.mubr.msk.f32.gmra.mxu1 %vm287_vm1, %v6816_v6  ;;  %6013 = vmatmul.mubr.msk.f32.gmra.mxu0 %vm287_vm1, %v1872_v60  ;;  %v1878_v6 = vld [vmem:[%s6621_s11 + $0x9b] sm:$0xff]  ;;  %v2738_v60 = vld [vmem:[%s6621_s11 + $0xac] sm:$0xff] }
  0x9f   : > { %5959 = vmatprep.mubr.msk.f32.mxu1 %vm287_vm1, %v6820_v8  ;;  %6015 = vmatprep.mubr.msk.f32.mxu0 %vm287_vm1, %v1873_v62  ;;  %v1880_v8 = vld [vmem:[%s6621_s11 + $0xab] sm:$0xff] }
  0xa2   : > { %5960 = vmatmul.mubr.msk.f32.gmra.mxu1 %vm287_vm1, %v6830_v10  ;;  %6016 = vmatmul.mubr.msk.f32.gmra.mxu0 %vm287_vm1, %v1874_v0  ;;  %v1882_v10 = vld [vmem:[%s6621_s11 + $0xbb] sm:$0xff] }
  0xa3   : > { %5962 = vmatprep.mubr.msk.f32.mxu1 %vm287_vm1, %v6834_v12  ;;  %6018 = vmatprep.mubr.msk.f32.mxu0 %vm287_vm1, %v1875_v2  ;;  %v1884_v12 = vld [vmem:[%s6621_s11 + $0xcb] sm:$0xff]  ;;  %v2739_v2 = vld [vmem:[%s6621_s11 + $0xb4] sm:$0xff] }
  0xa6   : > { %5963 = vmatmul.mubr.msk.f32.gmra.mxu1 %vm287_vm1, %v6844_v14  ;;  %6019 = vmatmul.mubr.msk.f32.gmra.mxu0 %vm287_vm1, %v1876_v4  ;;  %v1886_v14 = vld [vmem:[%s6621_s11 + $0xdb] sm:$0xff] }
  0xa7   : > { %5965 = vmatprep.mubr.msk.f32.mxu1 %vm287_vm1, %v6848_v16  ;;  %6021 = vmatprep.mubr.msk.f32.mxu0 %vm287_vm1, %v1877_v5  ;;  %v1888_v16 = vld [vmem:[%s6621_s11 + $0xeb] sm:$0xff] }
  0xaa   : > { %5966 = vmatmul.mubr.msk.f32.gmra.mxu1 %vm287_vm1, %v6858_v18  ;;  %6022 = vmatmul.mubr.msk.f32.gmra.mxu0 %vm287_vm1, %v1878_v6  ;;  %v1890_v18 = vld [vmem:[%s6621_s11 + $0xfb] sm:$0xff] }
  0xab   : > { %5968 = vmatprep.mubr.msk.f32.mxu1 %vm287_vm1, %v6862_v20  ;;  %6024 = vmatprep.mubr.msk.f32.mxu0 %vm287_vm1, %v1879_v7  ;;  %v1892_v20 = vld [vmem:[%s6621_s11 + $0x10b] sm:$0xff]  ;;  %v2740_v6 = vld [vmem:[%s6621_s11 + $0xbc] sm:$0xff] }
  0xae   : > { %5969 = vmatmul.mubr.msk.f32.gmra.mxu1 %vm287_vm1, %v6872_v22  ;;  %6025 = vmatmul.mubr.msk.f32.gmra.mxu0 %vm287_vm1, %v1880_v8  ;;  %v1894_v22 = vld [vmem:[%s6621_s11 + $0x11b] sm:$0xff] }
  0xaf   : > { %5971 = vmatprep.mubr.msk.f32.mxu1 %vm287_vm1, %v6876_v24  ;;  %6027 = vmatprep.mubr.msk.f32.mxu0 %vm287_vm1, %v1881_v9  ;;  %v1895_v24 = vld [vmem:[%s6621_s11 + $0x123] sm:$0xff] }
  0xb0   : > { %v2741_v9 = vld [vmem:[%s6621_s11 + $0xc4] sm:$0xff] }
  0xb2   : > { %5972 = vmatmul.mubr.msk.f32.gmra.mxu1 %vm287_vm1, %v6886_v26  ;;  %6028 = vmatmul.mubr.msk.f32.gmra.mxu0 %vm287_vm1, %v1882_v10  ;;  %v1896_v26 = vld [vmem:[%s6621_s11 + $0x12b] sm:$0xff] }
  0xb3   : > { %5974 = vmatprep.mubr.msk.f32.mxu1 %vm287_vm1, %v6890_v28  ;;  %6030 = vmatprep.mubr.msk.f32.mxu0 %vm287_vm1, %v1883_v11  ;;  %v2721_v28 = vld [vmem:[%s6621_s11 + $0x24] sm:$0xff] }
  0xb6   : > { %5975 = vmatmul.mubr.msk.f32.gmra.mxu1 %vm287_vm1, %v6900_v30  ;;  %6031 = vmatmul.mubr.msk.f32.gmra.mxu0 %vm287_vm1, %v1884_v12  ;;  %v2722_v30 = vld [vmem:[%s6621_s11 + $0x2c] sm:$0xff] }
  0xb7   : > { %5977 = vmatprep.mubr.msk.f32.mxu1 %vm287_vm1, %v6904_v32  ;;  %6033 = vmatprep.mubr.msk.f32.mxu0 %vm287_vm1, %v1885_v13  ;;  %v2724_v32 = vld [vmem:[%s6621_s11 + $0x3c] sm:$0xff]  ;;  %v2742_v12 = vld [vmem:[%s6621_s11 + $0xcc] sm:$0xff] }
  0xba   : > { %5978 = vmatmul.mubr.msk.f32.gmra.mxu1 %vm287_vm1, %v6914_v34  ;;  %6034 = vmatmul.mubr.msk.f32.gmra.mxu0 %vm287_vm1, %v1886_v14  ;;  %v2726_v34 = vld [vmem:[%s6621_s11 + $0x4c] sm:$0xff] }
  0xbb   : > { %5980 = vmatprep.mubr.msk.f32.mxu1 %vm287_vm1, %v6918_v36  ;;  %6036 = vmatprep.mubr.msk.f32.mxu0 %vm287_vm1, %v1887_v15  ;;  %v2728_v36 = vld [vmem:[%s6621_s11 + $0x5c] sm:$0xff]  ;;  %v2743_v15 = vld [vmem:[%s6621_s11 + $0xd4] sm:$0xff] }
  0xbe   : > { %5981 = vmatmul.mubr.msk.f32.gmra.mxu1 %vm287_vm1, %v6928_v38  ;;  %6037 = vmatmul.mubr.msk.f32.gmra.mxu0 %vm287_vm1, %v1888_v16 }
  0xbf   : > { %5983 = vmatprep.mubr.msk.f32.mxu1 %vm287_vm1, %v6932_v40  ;;  %6039 = vmatprep.mubr.msk.f32.mxu0 %vm287_vm1, %v1889_v17  ;;  %v2730_v40 = vld [vmem:[%s6621_s11 + $0x6c] sm:$0xff] }
  0xc2   : > { %5984 = vmatmul.mubr.msk.f32.gmra.mxu1 %vm287_vm1, %v6942_v42  ;;  %6040 = vmatmul.mubr.msk.f32.gmra.mxu0 %vm287_vm1, %v1890_v18  ;;  %v2744_v18 = vld [vmem:[%s6621_s11 + $0xdc] sm:$0xff] }
  0xc3   : > { %5986 = vmatprep.mubr.msk.f32.mxu1 %vm287_vm1, %v6946_v44  ;;  %6042 = vmatprep.mubr.msk.f32.mxu0 %vm287_vm1, %v1891_v19 }
  0xc6   : > { %5987 = vmatmul.mubr.msk.f32.gmra.mxu1 %vm287_vm1, %v6956_v49  ;;  %6043 = vmatmul.mubr.msk.f32.gmra.mxu0 %vm287_vm1, %v1892_v20  ;;  %v2732_v49 = vld [vmem:[%s6621_s11 + $0x7c] sm:$0xff] }
  0xc7   : > { %5989 = vmatprep.mubr.msk.f32.mxu1 %vm287_vm1, %v6960_v53  ;;  %6045 = vmatprep.mubr.msk.f32.mxu0 %vm287_vm1, %v1893_v21  ;;  %v2745_v21 = vld [vmem:[%s6621_s11 + $0xe4] sm:$0xff] }
  0xca   : > { %5990 = vmatmul.mubr.msk.f32.gmra.mxu1 %vm287_vm1, %v6970_v57  ;;  %6046 = vmatmul.mubr.msk.f32.gmra.mxu0 %vm287_vm1, %v1894_v22 }
  0xcb   : > { %5992 = vmatprep.mubr.msk.f32.mxu1 %vm287_vm1, %v1465_v23  ;;  %6048 = vmatprep.mubr.msk.f32.mxu0 %vm287_vm1, %v1895_v24  ;;  %v2746_v24 = vld [vmem:[%s6621_s11 + $0xec] sm:$0xff] }
  0xce   : > { %5993 = vmatmul.mubr.msk.f32.gmra.mxu1 %vm287_vm1, %v1466_v25  ;;  %6049 = vmatmul.mubr.msk.f32.gmra.mxu0 %vm287_vm1, %v1896_v26 }
  0xcf   : > { %6053 = vmatprep.mubr.msk.f32.mxu1 %vm287_vm1, %v2291_v27  ;;  %6109 = vmatprep.mubr.msk.f32.mxu0 %vm287_vm1, %v2721_v28  ;;  %v2747_v27 = vld [vmem:[%s6621_s11 + $0xf4] sm:$0xff] }
  0xd2   : > { %6054 = vmatmul.mubr.msk.f32.vlgmr.msra.gmra.mxu1 %vm287_vm1, %v2292_v29  ;;  %6110 = vmatmul.mubr.msk.f32.vlgmr.msra.gmra.mxu0 %vm287_vm1, %v2722_v30 }
  0xd3   : > { %6164 = vmatpush3.msk.msra.mxu1 %vm396_vm0, %v6987_v1  ;;  %6220 = vmatpush3.msk.msra.mxu0 %vm396_vm0, %v6992_v46  ;;  %v2735_v46 = vld [vmem:[%s6621_s11 + $0x94] sm:$0xff] }
  0xd4   : > { %6056 = vmatprep.mubr.msk.f32.mxu1 %vm287_vm1, %v2721_v28  ;;  %6112 = vmatprep.mubr.msk.f32.mxu0 %vm287_vm1, %v2723_v31 }
  0xd6   : > { %6057 = vmatmul.mubr.msk.f32.gmra.mxu1 %vm287_vm1, %v2722_v30  ;;  %6113 = vmatmul.mubr.msk.f32.gmra.mxu0 %vm287_vm1, %v2724_v32 }
  0xd7   : > { %6059 = vmatprep.mubr.msk.f32.mxu1 %vm287_vm1, %v2723_v31  ;;  %6115 = vmatprep.mubr.msk.f32.mxu0 %vm287_vm1, %v2725_v33  ;;  %v2748_v31 = vld [vmem:[%s6621_s11 + $0xfc] sm:$0xff] }
  0xda   : > { %6060 = vmatmul.mubr.msk.f32.gmra.mxu1 %vm287_vm1, %v2724_v32  ;;  %6116 = vmatmul.mubr.msk.f32.gmra.mxu0 %vm287_vm1, %v2726_v34 }
  0xdb   : > { %6062 = vmatprep.mubr.msk.f32.mxu1 %vm287_vm1, %v2725_v33  ;;  %6118 = vmatprep.mubr.msk.f32.mxu0 %vm287_vm1, %v2727_v35 }
  0xde   : > { %v7166_v38 = vpop.f32.mrf.mxu0  ;;  %v7168_v39 = vpop.f32.mrf.mxu1  ;;  %6063 = vmatmul.mubr.msk.f32.gmra.mxu1 %vm287_vm1, %v2726_v34  ;;  %6119 = vmatmul.mubr.msk.f32.gmra.mxu0 %vm287_vm1, %v2728_v36  ;;  %v2749_v34 = vld [vmem:[%s6621_s11 + $0x104] sm:$0xff] }
  0xdf   : > { %6065 = vmatprep.mubr.msk.f32.mxu1 %vm287_vm1, %v2727_v35  ;;  %6121 = vmatprep.mubr.msk.f32.mxu0 %vm287_vm1, %v2729_v37 }
  0xe0   : > { %v7175_v41 = vpop.f32.mrf.mxu0  ;;  %v7177_v42 = vpop.f32.mrf.mxu1 }
  0xe2   : > { %v7180_v44 = vpop.f32.mrf.mxu0  ;;  %v7182_v45 = vpop.f32.mrf.mxu1  ;;  %6066 = vmatmul.mubr.msk.f32.gmra.mxu1 %vm287_vm1, %v2728_v36  ;;  %6122 = vmatmul.mubr.msk.f32.gmra.mxu0 %vm287_vm1, %v2730_v40 }
  0xe3   : > { %6068 = vmatprep.mubr.msk.f32.mxu1 %vm287_vm1, %v2729_v37  ;;  %6124 = vmatprep.mubr.msk.f32.mxu0 %vm287_vm1, %v2731_v43 }
  0xe4   : > { %v7189_v51 = vpop.f32.mrf.mxu0  ;;  %v7191_v53 = vpop.f32.mrf.mxu1 }
  0xe6   : > { %v7194_v57 = vpop.f32.mrf.mxu0  ;;  %v7196_v59 = vpop.f32.mrf.mxu1  ;;  %6069 = vmatmul.mubr.msk.f32.gmra.mxu1 %vm287_vm1, %v2730_v40  ;;  %6125 = vmatmul.mubr.msk.f32.gmra.mxu0 %vm287_vm1, %v2732_v49 }
  0xe7   : > { %6071 = vmatprep.mubr.msk.f32.mxu1 %vm287_vm1, %v2731_v43  ;;  %6127 = vmatprep.mubr.msk.f32.mxu0 %vm287_vm1, %v2733_v55 }
  0xe8   : > { %v7203_v63 = vpop.f32.mrf.mxu0  ;;  %v7205_v1 = vpop.f32.mrf.mxu1 }
  0xea   : > { %v7208_v50 = vpop.f32.mrf.mxu0  ;;  %v7210_v3 = vpop.f32.mrf.mxu1  ;;  %6072 = vmatmul.mubr.msk.f32.gmra.mxu1 %vm287_vm1, %v2732_v49  ;;  %6128 = vmatmul.mubr.msk.f32.gmra.mxu0 %vm287_vm1, %v2734_v61  ;;  %v2750_v49 = vld [vmem:[%s6621_s11 + $0x10c] sm:$0xff] }
  0xeb   : > { %6074 = vmatprep.mubr.msk.f32.mxu1 %vm287_vm1, %v2733_v55  ;;  %6130 = vmatprep.mubr.msk.f32.mxu0 %vm287_vm1, %v2735_v46 }
  0xec   : > { %v7217_v48 = vpop.f32.mrf.mxu0  ;;  %v7219_v52 = vpop.f32.mrf.mxu1 }
  0xee   : > { %v7222_v56 = vpop.f32.mrf.mxu0  ;;  %v7224_v58 = vpop.f32.mrf.mxu1  ;;  %6075 = vmatmul.mubr.msk.f32.gmra.mxu1 %vm287_vm1, %v2734_v61  ;;  %6131 = vmatmul.mubr.msk.f32.gmra.mxu0 %vm287_vm1, %v2736_v47 }
  0xef   : > { %6077 = vmatprep.mubr.msk.f32.mxu1 %vm287_vm1, %v2735_v46  ;;  %6133 = vmatprep.mubr.msk.f32.mxu0 %vm287_vm1, %v2737_v54 }
  0xf0   : > { %v7231_v62 = vpop.f32.mrf.mxu0  ;;  %v7233_v0 = vpop.f32.mrf.mxu1 }
  0xf2   : > { %v7236_v4 = vpop.f32.mrf.mxu0  ;;  %v7238_v5 = vpop.f32.mrf.mxu1  ;;  %6078 = vmatmul.mubr.msk.f32.gmra.mxu1 %vm287_vm1, %v2736_v47  ;;  %6134 = vmatmul.mubr.msk.f32.gmra.mxu0 %vm287_vm1, %v2738_v60 }
  0xf3   : > { %6080 = vmatprep.mubr.msk.f32.mxu1 %vm287_vm1, %v2737_v54  ;;  %6136 = vmatprep.mubr.msk.f32.mxu0 %vm287_vm1, %v2739_v2 }
  0xf4   : > { %v7245_v7 = vpop.f32.mrf.mxu0  ;;  %v7247_v8 = vpop.f32.mrf.mxu1 }
  0xf6   : > { %v7250_v10 = vpop.f32.mrf.mxu0  ;;  %v7252_v11 = vpop.f32.mrf.mxu1  ;;  %6081 = vmatmul.mubr.msk.f32.gmra.mxu1 %vm287_vm1, %v2738_v60  ;;  %6137 = vmatmul.mubr.msk.f32.gmra.mxu0 %vm287_vm1, %v2740_v6 }
  0xf7   : > { %6083 = vmatprep.mubr.msk.f32.mxu1 %vm287_vm1, %v2739_v2  ;;  %6139 = vmatprep.mubr.msk.f32.mxu0 %vm287_vm1, %v2741_v9 }
  0xf8   : > { %v7259_v13 = vpop.f32.mrf.mxu0  ;;  %v7261_v14 = vpop.f32.mrf.mxu1 }
  0xfa   : > { %v7264_v16 = vpop.f32.mrf.mxu0  ;;  %v7266_v17 = vpop.f32.mrf.mxu1  ;;  %6084 = vmatmul.mubr.msk.f32.gmra.mxu1 %vm287_vm1, %v2740_v6  ;;  %6140 = vmatmul.mubr.msk.f32.gmra.mxu0 %vm287_vm1, %v2742_v12  ;;  %v2752_v6 = vld [vmem:[%s6621_s11 + $0x11c] sm:$0xff] }
  0xfb   : > { %6086 = vmatprep.mubr.msk.f32.mxu1 %vm287_vm1, %v2741_v9  ;;  %6142 = vmatprep.mubr.msk.f32.mxu0 %vm287_vm1, %v2743_v15 }
  0xfc   : > { %v7273_v19 = vpop.f32.mrf.mxu0  ;;  %v7275_v20 = vpop.f32.mrf.mxu1 }
  0xfe   : > { %v7278_v22 = vpop.f32.mrf.mxu0  ;;  %v7280_v23 = vpop.f32.mrf.mxu1  ;;  %6087 = vmatmul.mubr.msk.f32.gmra.mxu1 %vm287_vm1, %v2742_v12  ;;  %6143 = vmatmul.mubr.msk.f32.gmra.mxu0 %vm287_vm1, %v2744_v18 }
  0xff   : > { %6089 = vmatprep.mubr.msk.f32.mxu1 %vm287_vm1, %v2743_v15  ;;  %6145 = vmatprep.mubr.msk.f32.mxu0 %vm287_vm1, %v2745_v21 }
 0x100   : > { %v7287_v25 = vpop.f32.mrf.mxu0  ;;  %v7289_v26 = vpop.f32.mrf.mxu1 }
 0x102   : > { %v5831_v28 = vpop.f32.mrf.mxu1  ;;  %v5887_v29 = vpop.f32.mrf.mxu0  ;;  %6090 = vmatmul.mubr.msk.f32.gmra.mxu1 %vm287_vm1, %v2744_v18  ;;  %6146 = vmatmul.mubr.msk.f32.gmra.mxu0 %vm287_vm1, %v2746_v24 }
 0x103   : > { %v828_v30 = vadd.f32 %v5831_v28, %v7166_v38  ;;  %6092 = vmatprep.mubr.msk.f32.mxu1 %vm287_vm1, %v2745_v21  ;;  %6148 = vmatprep.mubr.msk.f32.mxu0 %vm287_vm1, %v2747_v27  ;;  %v2754_v28 = vld [vmem:[%s6621_s11 + $0x12c] sm:$0xff] }
 0x104   : > { %v822_v32 = vpop.f32.mrf.mxu1  ;;  %v1216_v33 = vpop.f32.mrf.mxu0 }
 0x105   : > { %v7299_v35 = vadd.f32 %v5887_v29, %v828_v30  ;;  %v823_v36 = vadd.f32 %v822_v32, %v7175_v41  ;;  %v2751_v41 = vld [vmem:[%s6621_s11 + $0x114] sm:$0xff] }
 0x106   : > { %v5834_v37 = vpop.f32.mrf.mxu1  ;;  %v5890_v40 = vpop.f32.mrf.mxu0  ;;  %6093 = vmatmul.mubr.msk.f32.gmra.mxu1 %vm287_vm1, %v2746_v24  ;;  %6149 = vmatmul.mubr.msk.f32.gmra.mxu0 %vm287_vm1, %v2748_v31 }
 0x107   : > { %v7304_v38 = vadd.f32 %v1216_v33, %v823_v36  ;;  %v838_v43 = vadd.f32 %v5834_v37, %v7180_v44  ;;  %6095 = vmatprep.mubr.msk.f32.mxu1 %vm287_vm1, %v2747_v27  ;;  %6151 = vmatprep.mubr.msk.f32.mxu0 %vm287_vm1, %v2749_v34  ;;  %v2756_v37 = vld [vmem:[%s6621_s11 + $0x13c] sm:$0xff] }
 0x108   : > { %v832_v55 = vpop.f32.mrf.mxu1  ;;  %v1226_v61 = vpop.f32.mrf.mxu0 }
 0x109   : > { %v7311_v46 = vadd.f32 %v5890_v40, %v838_v43  ;;  %v833_v47 = vadd.f32 %v832_v55, %v7189_v51  ;;  %v2753_v51 = vld [vmem:[%s6621_s11 + $0x124] sm:$0xff] }
 0x10a   : > { %v5837_v54 = vpop.f32.mrf.mxu1  ;;  %v5893_v60 = vpop.f32.mrf.mxu0  ;;  %6096 = vmatmul.mubr.msk.f32.gmra.mxu1 %vm287_vm1, %v2748_v31  ;;  %6152 = vmatmul.mubr.msk.f32.gmra.mxu0 %vm287_vm1, %v2750_v49 }
 0x10b   : > { %v7316_v44 = vadd.f32 %v1226_v61, %v833_v47  ;;  %v848_v2 = vadd.f32 %v5837_v54, %v7194_v57  ;;  %6098 = vmatprep.mubr.msk.f32.mxu1 %vm287_vm1, %v2749_v34  ;;  %6154 = vmatprep.mubr.msk.f32.mxu0 %vm287_vm1, %v2751_v41 }
 0x10c   : > { %v842_v9 = vpop.f32.mrf.mxu1  ;;  %v1236_v12 = vpop.f32.mrf.mxu0 }
 0x10d   : > { %v7323_v15 = vadd.f32 %v5893_v60, %v848_v2  ;;  %v843_v18 = vadd.f32 %v842_v9, %v7203_v63  ;;  %v2755_v63 = vld [vmem:[%s6621_s11 + $0x134] sm:$0xff] }
 0x10e   : > { %v5840_v21 = vpop.f32.mrf.mxu1  ;;  %v5896_v24 = vpop.f32.mrf.mxu0  ;;  %6099 = vmatmul.mubr.msk.f32.gmra.mxu1 %vm287_vm1, %v2750_v49  ;;  %6155 = vmatmul.mubr.msk.f32.gmra.mxu0 %vm287_vm1, %v2752_v6  ;;  %v3581_v49 = vld [vmem:[%s6621_s11 + $0x26] sm:$0xff]  ;;  %v3582_v2 = vld [vmem:[%s6621_s11 + $0x2e] sm:$0xff] }
 0x10f   : > { %v7328_v57 = vadd.f32 %v1236_v12, %v843_v18  ;;  %v858_v27 = vadd.f32 %v5840_v21, %v7208_v50  ;;  %6101 = vmatprep.mubr.msk.f32.mxu1 %vm287_vm1, %v2751_v41  ;;  %6157 = vmatprep.mubr.msk.f32.mxu0 %vm287_vm1, %v2753_v51  ;;  %v3152_v60 = vld [vmem:[%s6621_s11 + $0x2d] sm:$0xff]  ;;  %v3153_v9 = vld [vmem:[%s6621_s11 + $0x35] sm:$0xff] }
 0x110   : > { %v852_v29 = vpop.f32.mrf.mxu1  ;;  %v1246_v30 = vpop.f32.mrf.mxu0  ;;  %v3583_v12 = vld [vmem:[%s6621_s11 + $0x36] sm:$0xff] }
 0x111   : > { %v7335_v31 = vadd.f32 %v5896_v24, %v858_v27  ;;  %v853_v32 = vadd.f32 %v852_v29, %v7217_v48  ;;  %v3151_v48 = vld [vmem:[%s6621_s11 + $0x25] sm:$0xff] }
 0x112   : > { %v5843_v33 = vpop.f32.mrf.mxu1  ;;  %v5899_v34 = vpop.f32.mrf.mxu0  ;;  %6102 = vmatmul.mubr.msk.f32.gmra.mxu1 %vm287_vm1, %v2752_v6  ;;  %6158 = vmatmul.mubr.msk.f32.gmra.mxu0 %vm287_vm1, %v2754_v28  ;;  %v3584_v29 = vld [vmem:[%s6621_s11 + $0x3e] sm:$0xff] }
 0x113   : > { %v7340_v50 = vadd.f32 %v1246_v30, %v853_v32  ;;  %v868_v36 = vadd.f32 %v5843_v33, %v7222_v56  ;;  %6104 = vmatprep.mubr.msk.f32.mxu1 %vm287_vm1, %v2753_v51  ;;  %6160 = vmatprep.mubr.msk.f32.mxu0 %vm287_vm1, %v2755_v63  ;;  %v3155_v63 = vld [vmem:[%s6621_s11 + $0x45] sm:$0xff] }
 0x114   : > { %v862_v40 = vpop.f32.mrf.mxu1  ;;  %v1256_v43 = vpop.f32.mrf.mxu0  ;;  %v3585_v32 = vld [vmem:[%s6621_s11 + $0x46] sm:$0xff] }
 0x115   : > { %v7348_v55 = vadd.f32 %v5899_v34, %v868_v36  ;;  %v863_v61 = vadd.f32 %v862_v40, %v7231_v62 }
 0x116   : > { %v5846_v41 = vpop.f32.mrf.mxu1  ;;  %v5902_v47 = vpop.f32.mrf.mxu0  ;;  %6105 = vmatmul.mubr.msk.f32.gmra.mxu1 %vm287_vm1, %v2754_v28  ;;  %6161 = vmatmul.mubr.msk.f32.gmra.mxu0 %vm287_vm1, %v2756_v37  ;;  %v3154_v28 = vld [vmem:[%s6621_s11 + $0x3d] sm:$0xff] }
 0x117   : > { %v7353_v56 = vadd.f32 %v1256_v43, %v863_v61  ;;  %v878_v54 = vadd.f32 %v5846_v41, %v7236_v4  ;;  %6165 = vmatprep.mubr.msk.f32.mxu1 %vm287_vm1, %v3151_v48  ;;  %6221 = vmatprep.mubr.msk.f32.mxu0 %vm287_vm1, %v3581_v49  ;;  %v3156_v43 = vld [vmem:[%s6621_s11 + $0x4d] sm:$0xff]  ;;  %v3157_v61 = vld [vmem:[%s6621_s11 + $0x55] sm:$0xff] }
 0x118   : > { %v872_v6 = vpop.f32.mrf.mxu1  ;;  %v1266_v62 = vpop.f32.mrf.mxu0  ;;  %v3586_v48 = vld [vmem:[%s6621_s11 + $0x4e] sm:$0xff]  ;;  %v3587_v41 = vld [vmem:[%s6621_s11 + $0x56] sm:$0xff] }
 0x119   : > { %v7362_v51 = vadd.f32 %v5902_v47, %v878_v54  ;;  %v873_v18 = vadd.f32 %v872_v6, %v7245_v7 }
 0x11a   : > { %v5849_v21 = vpop.f32.mrf.mxu1  ;;  %v5905_v4 = vpop.f32.mrf.mxu0  ;;  %6166 = vmatmul.mubr.msk.f32.vlgmr.msra.gmra.mxu1 %vm287_vm1, %v3152_v60  ;;  %6222 = vmatmul.mubr.msk.f32.vlgmr.msra.gmra.mxu0 %vm287_vm1, %v3582_v2 }
 0x11b   : > { %v7367_v24 = vadd.f32 %v1266_v62, %v873_v18  ;;  %v888_v27 = vadd.f32 %v5849_v21, %v7250_v10  ;;  %6168 = vmatprep.mubr.msk.f32.mxu1 %vm287_vm1, %v3153_v9  ;;  %6224 = vmatprep.mubr.msk.f32.mxu0 %vm287_vm1, %v3583_v12  ;;  %v3158_v62 = vld [vmem:[%s6621_s11 + $0x5d] sm:$0xff]  ;;  %v3159_v18 = vld [vmem:[%s6621_s11 + $0x65] sm:$0xff] }
 0x11c   : > { %v882_v30 = vpop.f32.mrf.mxu1  ;;  %v1276_v7 = vpop.f32.mrf.mxu0  ;;  %v3588_v9 = vld [vmem:[%s6621_s11 + $0x5e] sm:$0xff]  ;;  %v3589_v21 = vld [vmem:[%s6621_s11 + $0x66] sm:$0xff] }
 0x11d   : > { %v7376_v33 = vadd.f32 %v5905_v4, %v888_v27  ;;  %v883_v34 = vadd.f32 %v882_v30, %v7259_v13 }
 0x11e   : > { %v5852_v36 = vpop.f32.mrf.mxu1  ;;  %v5908_v10 = vpop.f32.mrf.mxu0  ;;  %6169 = vmatmul.mubr.msk.f32.gmra.mxu1 %vm287_vm1, %v3154_v28  ;;  %6225 = vmatmul.mubr.msk.f32.gmra.mxu0 %vm287_vm1, %v3584_v29 }
 0x11f   : > { %v7381_v37 = vadd.f32 %v1276_v7, %v883_v34  ;;  %v898_v40 = vadd.f32 %v5852_v36, %v7264_v16  ;;  %6171 = vmatprep.mubr.msk.f32.mxu1 %vm287_vm1, %v3155_v63  ;;  %6227 = vmatprep.mubr.msk.f32.mxu0 %vm287_vm1, %v3585_v32  ;;  %v3160_v7 = vld [vmem:[%s6621_s11 + $0x6d] sm:$0xff]  ;;  %v3161_v34 = vld [vmem:[%s6621_s11 + $0x75] sm:$0xff] }
 0x120   : > { %v892_v49 = vpop.f32.mrf.mxu1  ;;  %v1286_v13 = vpop.f32.mrf.mxu0  ;;  %v3590_v63 = vld [vmem:[%s6621_s11 + $0x6e] sm:$0xff]  ;;  %v3591_v36 = vld [vmem:[%s6621_s11 + $0x76] sm:$0xff] }
 0x121   : > { %v7390_v47 = vadd.f32 %v5908_v10, %v898_v40  ;;  %v893_v54 = vadd.f32 %v892_v49, %v7273_v19 }
 0x122   : > { %v5855_v60 = vpop.f32.mrf.mxu1  ;;  %v5911_v16 = vpop.f32.mrf.mxu0  ;;  %6172 = vmatmul.mubr.msk.f32.gmra.mxu1 %vm287_vm1, %v3156_v43  ;;  %6228 = vmatmul.mubr.msk.f32.gmra.mxu0 %vm287_vm1, %v3586_v48 }
 0x123   : > { %v7395_v2 = vadd.f32 %v1286_v13, %v893_v54  ;;  %v908_v6 = vadd.f32 %v5855_v60, %v7278_v22  ;;  %6174 = vmatprep.mubr.msk.f32.mxu1 %vm287_vm1, %v3157_v61  ;;  %6230 = vmatprep.mubr.msk.f32.mxu0 %vm287_vm1, %v3587_v41  ;;  %v3162_v13 = vld [vmem:[%s6621_s11 + $0x7d] sm:$0xff]  ;;  %v3163_v54 = vld [vmem:[%s6621_s11 + $0x85] sm:$0xff] }
 0x124   : > { %v902_v12 = vpop.f32.mrf.mxu1  ;;  %v1296_v19 = vpop.f32.mrf.mxu0  ;;  %v3592_v61 = vld [vmem:[%s6621_s11 + $0x7e] sm:$0xff]  ;;  %v3593_v60 = vld [vmem:[%s6621_s11 + $0x86] sm:$0xff] }
 0x125   : > { %v7404_v4 = vadd.f32 %v5911_v16, %v908_v6  ;;  %v903_v27 = vadd.f32 %v902_v12, %v7287_v25 }
 0x126   : > { %v5858_v28 = vpop.f32.mrf.mxu1  ;;  %v5914_v22 = vpop.f32.mrf.mxu0  ;;  %6175 = vmatmul.mubr.msk.f32.gmra.mxu1 %vm287_vm1, %v3158_v62  ;;  %6231 = vmatmul.mubr.msk.f32.gmra.mxu0 %vm287_vm1, %v3588_v9 }
 0x127   : > { %v7409_v29 = vadd.f32 %v1296_v19, %v903_v27  ;;  %v918_v30 = vadd.f32 %v5858_v28, %v7168_v39  ;;  %6177 = vmatprep.mubr.msk.f32.mxu1 %vm287_vm1, %v3159_v18  ;;  %6233 = vmatprep.mubr.msk.f32.mxu0 %vm287_vm1, %v3589_v21  ;;  %v3164_v19 = vld [vmem:[%s6621_s11 + $0x8d] sm:$0xff]  ;;  %v3165_v27 = vld [vmem:[%s6621_s11 + $0x95] sm:$0xff] }
 0x128   : > { %v912_v32 = vpop.f32.mrf.mxu1  ;;  %v1306_v25 = vpop.f32.mrf.mxu0  ;;  %v3594_v18 = vld [vmem:[%s6621_s11 + $0x8e] sm:$0xff]  ;;  %v3595_v28 = vld [vmem:[%s6621_s11 + $0x96] sm:$0xff] }
 0x129   : > { %v7418_v10 = vadd.f32 %v5914_v22, %v918_v30  ;;  %v913_v40 = vadd.f32 %v912_v32, %v7177_v42 }
 0x12a   : > { %v5861_v43 = vpop.f32.mrf.mxu1  ;;  %v5917_v39 = vpop.f32.mrf.mxu0  ;;  %6178 = vmatmul.mubr.msk.f32.gmra.mxu1 %vm287_vm1, %v3160_v7  ;;  %6234 = vmatmul.mubr.msk.f32.gmra.mxu0 %vm287_vm1, %v3590_v63 }
 0x12b   : > { %v7423_v48 = vadd.f32 %v1306_v25, %v913_v40  ;;  %v928_v49 = vadd.f32 %v5861_v43, %v7182_v45  ;;  %6180 = vmatprep.mubr.msk.f32.mxu1 %vm287_vm1, %v3161_v34  ;;  %6236 = vmatprep.mubr.msk.f32.mxu0 %vm287_vm1, %v3591_v36  ;;  %v3166_v25 = vld [vmem:[%s6621_s11 + $0x9d] sm:$0xff]  ;;  %v3167_v40 = vld [vmem:[%s6621_s11 + $0xa5] sm:$0xff] }
 0x12c   : > { %v922_v41 = vpop.f32.mrf.mxu1  ;;  %v1316_v42 = vpop.f32.mrf.mxu0  ;;  %v3596_v34 = vld [vmem:[%s6621_s11 + $0x9e] sm:$0xff]  ;;  %v3597_v43 = vld [vmem:[%s6621_s11 + $0xa6] sm:$0xff] }
 0x12d   : > { %v7432_v16 = vadd.f32 %v5917_v39, %v928_v49  ;;  %v923_v6 = vadd.f32 %v922_v41, %v7191_v53 }
 0x12e   : > { %v5864_v62 = vpop.f32.mrf.mxu1  ;;  %v5920_v45 = vpop.f32.mrf.mxu0  ;;  %6181 = vmatmul.mubr.msk.f32.gmra.mxu1 %vm287_vm1, %v3162_v13  ;;  %6237 = vmatmul.mubr.msk.f32.gmra.mxu0 %vm287_vm1, %v3592_v61 }
 0x12f   : > { %v7437_v9 = vadd.f32 %v1316_v42, %v923_v6  ;;  %v938_v12 = vadd.f32 %v5864_v62, %v7196_v59  ;;  %6183 = vmatprep.mubr.msk.f32.mxu1 %vm287_vm1, %v3163_v54  ;;  %6239 = vmatprep.mubr.msk.f32.mxu0 %vm287_vm1, %v3593_v60  ;;  %v3168_v42 = vld [vmem:[%s6621_s11 + $0xad] sm:$0xff]  ;;  %v3169_v6 = vld [vmem:[%s6621_s11 + $0xb5] sm:$0xff] }
 0x130   : > { %v932_v21 = vpop.f32.mrf.mxu1  ;;  %v1326_v53 = vpop.f32.mrf.mxu0  ;;  %v3598_v54 = vld [vmem:[%s6621_s11 + $0xae] sm:$0xff]  ;;  %v3599_v62 = vld [vmem:[%s6621_s11 + $0xb6] sm:$0xff] }
 0x131   : > { %v7446_v22 = vadd.f32 %v5920_v45, %v938_v12  ;;  %v933_v30 = vadd.f32 %v932_v21, %v7205_v1 }
 0x132   : > { %v5867_v7 = vpop.f32.mrf.mxu1  ;;  %v5923_v59 = vpop.f32.mrf.mxu0  ;;  %6184 = vmatmul.mubr.msk.f32.gmra.mxu1 %vm287_vm1, %v3164_v19  ;;  %6240 = vmatmul.mubr.msk.f32.gmra.mxu0 %vm287_vm1, %v3594_v18 }
 0x133   : > { %v7451_v63 = vadd.f32 %v1326_v53, %v933_v30  ;;  %v948_v32 = vadd.f32 %v5867_v7, %v7210_v3  ;;  %6186 = vmatprep.mubr.msk.f32.mxu1 %vm287_vm1, %v3165_v27  ;;  %6242 = vmatprep.mubr.msk.f32.mxu0 %vm287_vm1, %v3595_v28  ;;  %v3170_v53 = vld [vmem:[%s6621_s11 + $0xbd] sm:$0xff]  ;;  %v3171_v30 = vld [vmem:[%s6621_s11 + $0xc5] sm:$0xff] }
 0x134   : > { %v942_v36 = vpop.f32.mrf.mxu1  ;;  %v1336_v1 = vpop.f32.mrf.mxu0  ;;  %v3600_v27 = vld [vmem:[%s6621_s11 + $0xbe] sm:$0xff]  ;;  %v3601_v7 = vld [vmem:[%s6621_s11 + $0xc6] sm:$0xff] }
 0x135   : > { %v7460_v39 = vadd.f32 %v5923_v59, %v948_v32  ;;  %v943_v49 = vadd.f32 %v942_v36, %v7219_v52 }
 0x136   : > { %v5870_v13 = vpop.f32.mrf.mxu1  ;;  %v5926_v3 = vpop.f32.mrf.mxu0  ;;  %6187 = vmatmul.mubr.msk.f32.gmra.mxu1 %vm287_vm1, %v3166_v25  ;;  %6243 = vmatmul.mubr.msk.f32.gmra.mxu0 %vm287_vm1, %v3596_v34 }
 0x137   : > { %v7465_v61 = vadd.f32 %v1336_v1, %v943_v49  ;;  %v958_v41 = vadd.f32 %v5870_v13, %v7224_v58  ;;  %6189 = vmatprep.mubr.msk.f32.mxu1 %vm287_vm1, %v3167_v40  ;;  %6245 = vmatprep.mubr.msk.f32.mxu0 %vm287_vm1, %v3597_v43  ;;  %v3172_v1 = vld [vmem:[%s6621_s11 + $0xcd] sm:$0xff]  ;;  %v3173_v49 = vld [vmem:[%s6621_s11 + $0xd5] sm:$0xff] }
 0x138   : > { %v952_v60 = vpop.f32.mrf.mxu1  ;;  %v1346_v52 = vpop.f32.mrf.mxu0  ;;  %v3602_v40 = vld [vmem:[%s6621_s11 + $0xce] sm:$0xff]  ;;  %v3603_v13 = vld [vmem:[%s6621_s11 + $0xd6] sm:$0xff] }
 0x139   : > { %v7474_v45 = vadd.f32 %v5926_v3, %v958_v41  ;;  %v953_v12 = vadd.f32 %v952_v60, %v7233_v0 }
 0x13a   : > { %v5873_v19 = vpop.f32.mrf.mxu1  ;;  %v5929_v58 = vpop.f32.mrf.mxu0  ;;  %6190 = vmatmul.mubr.msk.f32.gmra.mxu1 %vm287_vm1, %v3168_v42  ;;  %6246 = vmatmul.mubr.msk.f32.gmra.mxu0 %vm287_vm1, %v3598_v54 }
 0x13b   : > { %v7479_v18 = vadd.f32 %v1346_v52, %v953_v12  ;;  %v968_v21 = vadd.f32 %v5873_v19, %v7238_v5  ;;  %6192 = vmatprep.mubr.msk.f32.mxu1 %vm287_vm1, %v3169_v6  ;;  %6248 = vmatprep.mubr.msk.f32.mxu0 %vm287_vm1, %v3599_v62  ;;  %v3174_v52 = vld [vmem:[%s6621_s11 + $0xdd] sm:$0xff]  ;;  %v3175_v12 = vld [vmem:[%s6621_s11 + $0xe5] sm:$0xff] }
 0x13c   : > { %v962_v28 = vpop.f32.mrf.mxu1  ;;  %v1356_v0 = vpop.f32.mrf.mxu0  ;;  %v3604_v6 = vld [vmem:[%s6621_s11 + $0xde] sm:$0xff]  ;;  %v3605_v19 = vld [vmem:[%s6621_s11 + $0xe6] sm:$0xff] }
 0x13d   : > { %v7488_v59 = vadd.f32 %v5929_v58, %v968_v21  ;;  %v963_v32 = vadd.f32 %v962_v28, %v7247_v8 }
 0x13e   : > { %v5876_v25 = vpop.f32.mrf.mxu1  ;;  %v5932_v5 = vpop.f32.mrf.mxu0  ;;  %6193 = vmatmul.mubr.msk.f32.gmra.mxu1 %vm287_vm1, %v3170_v53  ;;  %6249 = vmatmul.mubr.msk.f32.gmra.mxu0 %vm287_vm1, %v3600_v27 }
 0x13f   : > { %v7493_v34 = vadd.f32 %v1356_v0, %v963_v32  ;;  %v978_v36 = vadd.f32 %v5876_v25, %v7252_v11  ;;  %6195 = vmatprep.mubr.msk.f32.mxu1 %vm287_vm1, %v3171_v30  ;;  %6251 = vmatprep.mubr.msk.f32.mxu0 %vm287_vm1, %v3601_v7  ;;  %v3176_v0 = vld [vmem:[%s6621_s11 + $0xed] sm:$0xff]  ;;  %v3177_v32 = vld [vmem:[%s6621_s11 + $0xf5] sm:$0xff] }
 0x140   : > { %v972_v43 = vpop.f32.mrf.mxu1  ;;  %v1366_v8 = vpop.f32.mrf.mxu0  ;;  %v3606_v30 = vld [vmem:[%s6621_s11 + $0xee] sm:$0xff]  ;;  %v3607_v25 = vld [vmem:[%s6621_s11 + $0xf6] sm:$0xff] }
 0x141   : > { %v7502_v3 = vadd.f32 %v5932_v5, %v978_v36  ;;  %v973_v41 = vadd.f32 %v972_v43, %v7261_v14 }
 0x142   : > { %v5879_v42 = vpop.f32.mrf.mxu1  ;;  %v5935_v11 = vpop.f32.mrf.mxu0  ;;  %6196 = vmatmul.mubr.msk.f32.gmra.mxu1 %vm287_vm1, %v3172_v1  ;;  %6252 = vmatmul.mubr.msk.f32.gmra.mxu0 %vm287_vm1, %v3602_v40 }
 0x143   : > { %v7507_v54 = vadd.f32 %v1366_v8, %v973_v41  ;;  %v988_v60 = vadd.f32 %v5879_v42, %v7266_v17  ;;  %6198 = vmatprep.mubr.msk.f32.mxu1 %vm287_vm1, %v3173_v49  ;;  %6254 = vmatprep.mubr.msk.f32.mxu0 %vm287_vm1, %v3603_v13  ;;  %v3178_v8 = vld [vmem:[%s6621_s11 + $0xfd] sm:$0xff]  ;;  %v3179_v41 = vld [vmem:[%s6621_s11 + $0x105] sm:$0xff] }
 0x144   : > { %v982_v62 = vpop.f32.mrf.mxu1  ;;  %v1376_v14 = vpop.f32.mrf.mxu0  ;;  %v3608_v49 = vld [vmem:[%s6621_s11 + $0xfe] sm:$0xff]  ;;  %v3609_v42 = vld [vmem:[%s6621_s11 + $0x106] sm:$0xff] }
 0x145   : > { %v7516_v58 = vadd.f32 %v5935_v11, %v988_v60  ;;  %v983_v21 = vadd.f32 %v982_v62, %v7275_v20 }
 0x146   : > { %v5882_v53 = vpop.f32.mrf.mxu1  ;;  %v5938_v17 = vpop.f32.mrf.mxu0  ;;  %6199 = vmatmul.mubr.msk.f32.gmra.mxu1 %vm287_vm1, %v3174_v52  ;;  %6255 = vmatmul.mubr.msk.f32.gmra.mxu0 %vm287_vm1, %v3604_v6 }
 0x147   : > { %v7521_v27 = vadd.f32 %v1376_v14, %v983_v21  ;;  %v998_v28 = vadd.f32 %v5882_v53, %v7280_v23  ;;  %6201 = vmatprep.mubr.msk.f32.mxu1 %vm287_vm1, %v3175_v12  ;;  %6257 = vmatprep.mubr.msk.f32.mxu0 %vm287_vm1, %v3605_v19  ;;  %v3180_v14 = vld [vmem:[%s6621_s11 + $0x10d] sm:$0xff]  ;;  %v3181_v21 = vld [vmem:[%s6621_s11 + $0x115] sm:$0xff] }
 0x148   : > { %v992_v7 = vpop.f32.mrf.mxu1  ;;  %v1386_v20 = vpop.f32.mrf.mxu0  ;;  %v3610_v12 = vld [vmem:[%s6621_s11 + $0x10e] sm:$0xff]  ;;  %v3611_v53 = vld [vmem:[%s6621_s11 + $0x116] sm:$0xff] }
 0x149   : > { %v7530_v5 = vadd.f32 %v5938_v17, %v998_v28  ;;  %v993_v36 = vadd.f32 %v992_v7, %v7289_v26 }
 0x14a   : > { %v5943_v1 = vpop.f32.mrf.mxu1  ;;  %v5999_v23 = vpop.f32.mrf.mxu0  ;;  %6202 = vmatmul.mubr.msk.f32.gmra.mxu1 %vm287_vm1, %v3176_v0  ;;  %6258 = vmatmul.mubr.msk.f32.gmra.mxu0 %vm287_vm1, %v3606_v30 }
 0x14b   : > { %v7535_v40 = vadd.f32 %v1386_v20, %v993_v36  ;;  %v1826_v43 = vadd.f32 %v5943_v1, %v7299_v35  ;;  %6204 = vmatprep.mubr.msk.f32.mxu1 %vm287_vm1, %v3177_v32  ;;  %6260 = vmatprep.mubr.msk.f32.mxu0 %vm287_vm1, %v3607_v25  ;;  %v3182_v20 = vld [vmem:[%s6621_s11 + $0x11d] sm:$0xff]  ;;  %v3183_v36 = vld [vmem:[%s6621_s11 + $0x125] sm:$0xff] }
 0x14c   : > { %v1646_v13 = vpop.f32.mrf.mxu1  ;;  %v2076_v26 = vpop.f32.mrf.mxu0  ;;  %v3612_v32 = vld [vmem:[%s6621_s11 + $0x11e] sm:$0xff]  ;;  %v3613_v1 = vld [vmem:[%s6621_s11 + $0x126] sm:$0xff] }
 0x14d   : > { %v7544_v11 = vadd.f32 %v5999_v23, %v1826_v43  ;;  %v1825_v60 = vadd.f32 %v1646_v13, %v7304_v38 }
 0x14e   : > { %v5946_v52 = vpop.f32.mrf.mxu1  ;;  %v6002_v35 = vpop.f32.mrf.mxu0  ;;  %6205 = vmatmul.mubr.msk.f32.gmra.mxu1 %vm287_vm1, %v3178_v8  ;;  %6261 = vmatmul.mubr.msk.f32.gmra.mxu0 %vm287_vm1, %v3608_v49 }
 0x14f   : > { %v7549_v6 = vadd.f32 %v2076_v26, %v1825_v60  ;;  %v1828_v62 = vadd.f32 %v5946_v52, %v7311_v46  ;;  %6207 = vmatprep.mubr.msk.f32.mxu1 %vm287_vm1, %v3179_v41  ;;  %6263 = vmatprep.mubr.msk.f32.mxu0 %vm287_vm1, %v3609_v42  ;;  %v3184_v26 = vld [vmem:[%s6621_s11 + $0x12d] sm:$0xff]  ;;  %v3185_v60 = vld [vmem:[%s6621_s11 + $0x135] sm:$0xff] }
 0x150   : > { %v1656_v19 = vpop.f32.mrf.mxu1  ;;  %v2086_v38 = vpop.f32.mrf.mxu0  ;;  %v3614_v41 = vld [vmem:[%s6621_s11 + $0x12e] sm:$0xff]  ;;  %v3615_v52 = vld [vmem:[%s6621_s11 + $0x136] sm:$0xff] }
 0x151   : > { %v7558_v17 = vadd.f32 %v6002_v35, %v1828_v62  ;;  %v1827_v28 = vadd.f32 %v1656_v19, %v7316_v44 }
 0x152   : > { %v5949_v0 = vpop.f32.mrf.mxu1  ;;  %v6005_v46 = vpop.f32.mrf.mxu0  ;;  %6208 = vmatmul.mubr.msk.f32.gmra.mxu1 %vm287_vm1, %v3180_v14  ;;  %6264 = vmatmul.mubr.msk.f32.gmra.mxu0 %vm287_vm1, %v3610_v12 }
 0x153   : > { %v7563_v30 = vadd.f32 %v2086_v38, %v1827_v28  ;;  %v1830_v7 = vadd.f32 %v5949_v0, %v7323_v15  ;;  %6210 = vmatprep.mubr.msk.f32.mxu1 %vm287_vm1, %v3181_v21  ;;  %6266 = vmatprep.mubr.msk.f32.mxu0 %vm287_vm1, %v3611_v53  ;;  %v3186_v38 = vld [vmem:[%s6621_s11 + $0x13d] sm:$0xff] }
 0x154   : > { %v1666_v25 = vpop.f32.mrf.mxu1  ;;  %v2096_v44 = vpop.f32.mrf.mxu0  ;;  %v3616_v21 = vld [vmem:[%s6621_s11 + $0x13e] sm:$0xff]  ;;  %s6351_s11 = smul.u32 4608, %s6572_s19 }
 0x155   : > { %v7572_v23 = vadd.f32 %v6005_v46, %v1830_v7  ;;  %v1829_v43 = vadd.f32 %v1666_v25, %v7328_v57 }
 0x156   : > { %v5952_v8 = vpop.f32.mrf.mxu1  ;;  %v6008_v15 = vpop.f32.mrf.mxu0  ;;  %6211 = vmatmul.mubr.msk.f32.gmra.mxu1 %vm287_vm1, %v3182_v20  ;;  %6267 = vmatmul.mubr.msk.f32.gmra.mxu0 %vm287_vm1, %v3612_v32  ;;  %s9248_s22 = scalar_lea.hbm %s9363_s2, %s6351_s11 }
 0x157   : > { %v7577_v49 = vadd.f32 %v2096_v44, %v1829_v43  ;;  %v1832_v13 = vadd.f32 %v5952_v8, %v7335_v31  ;;  %6213 = vmatprep.mubr.msk.f32.mxu1 %vm287_vm1, %v3183_v36  ;;  %6269 = vmatprep.mubr.msk.f32.mxu0 %vm287_vm1, %v3613_v1 }
 0x158   : > { %v1676_v42 = vpop.f32.mrf.mxu1  ;;  %v2106_v57 = vpop.f32.mrf.mxu0 }
 0x159   : > { %v7586_v35 = vadd.f32 %v6008_v15, %v1832_v13  ;;  %v1831_v62 = vadd.f32 %v1676_v42, %v7340_v50 }
 0x15a   : > { %v5955_v14 = vpop.f32.mrf.mxu1  ;;  %v6011_v12 = vpop.f32.mrf.mxu0  ;;  %6214 = vmatmul.mubr.msk.f32.gmra.mxu1 %vm287_vm1, %v3184_v26  ;;  %6270 = vmatmul.mubr.msk.f32.gmra.mxu0 %vm287_vm1, %v3614_v41 }
 0x15b   : > { %v7591_v31 = vadd.f32 %v2106_v57, %v1831_v62  ;;  %v1834_v19 = vadd.f32 %v5955_v14, %v7348_v55  ;;  %6216 = vmatprep.mubr.msk.f32.mxu1 %vm287_vm1, %v3185_v60  ;;  %6272 = vmatprep.mubr.msk.f32.mxu0 %vm287_vm1, %v3615_v52  ;;  %v4047_v57 = vlaneseq }
 0x15c   : > { %v1686_v53 = vpop.f32.mrf.mxu1  ;;  %v2116_v28 = vpop.f32.mrf.mxu0 }
 0x15d   : > { %v7598_v0 = vadd.f32 %v6011_v12, %v1834_v19  ;;  %v1833_v50 = vadd.f32 %v1686_v53, %v7353_v56 }
 0x15e   : > { %v5958_v46 = vpop.f32.mrf.mxu1  ;;  %v6014_v7 = vpop.f32.mrf.mxu0  ;;  %6217 = vmatmul.mubr.msk.f32.gmra.mxu1 %vm287_vm1, %v3186_v38  ;;  %6273 = vmatmul.mubr.msk.f32.gmra.mxu0 %vm287_vm1, %v3616_v21  ;;  %v7621_v38 = vshrl.u32 %v4047_v57, 7 }
 0x15f   : > { %v7603_v20 = vadd.f32 %v2116_v28, %v1833_v50  ;;  %v1836_v55 = vadd.f32 %v5958_v46, %v7362_v51 }
 0x160   : > { %v1696_v32 = vpop.f32.mrf.mxu1  ;;  %v2126_v25 = vpop.f32.mrf.mxu0 }
 0x161   : > { %v7606_v44 = vadd.f32 %v6014_v7, %v1836_v55  ;;  %v1835_v36 = vadd.f32 %v1696_v32, %v7367_v24  ;;  %v4049_v55 = vadd.s32 8, %v7621_v38 }
 0x162   : > { %v5961_v1 = vpop.f32.mrf.mxu1  ;;  %v6017_v43 = vpop.f32.mrf.mxu0 }
 0x163   : > { %v7609_v8 = vadd.f32 %v2126_v25, %v1835_v36  ;;  %v1838_v56 = vadd.f32 %v5961_v1, %v7376_v33 }
 0x164   : > { %v1706_v15 = vpop.f32.mrf.mxu1  ;;  %v2136_v13 = vpop.f32.mrf.mxu0 }
 0x165   : > { %v7612_v26 = vadd.f32 %v6017_v43, %v1838_v56  ;;  %v1837_v41 = vadd.f32 %v1706_v15, %v7381_v37 }
 0x166   : > { %v5964_v42 = vpop.f32.mrf.mxu1  ;;  %v6020_v51 = vpop.f32.mrf.mxu0 }
 0x167   : > { %v7615_v60 = vadd.f32 %v2136_v13, %v1837_v41  ;;  %v1840_v52 = vadd.f32 %v5964_v42, %v7390_v47  ;;  %v7636_v15 = vmul.u32.u64.low 3817748708, %v4049_v55  ;;  %v7637_v13 = vmul.u32.u64.high 3817748708, %v4049_v55, %v7636_v15 }
 0x168   : > { %v1716_v24 = vpop.f32.mrf.mxu1  ;;  %v2146_v62 = vpop.f32.mrf.mxu0 }
 0x169   : > { %v7618_v14 = vadd.f32 %v6020_v51, %v1840_v52  ;;  %v1839_v12 = vadd.f32 %v1716_v24, %v7395_v2 }
 0x16a   : > { %v5967_v33 = vpop.f32.mrf.mxu1  ;;  %v6023_v19 = vpop.f32.mrf.mxu0 }
 0x16b   : > { %v7623_v21 = vadd.f32 %v2146_v62, %v1839_v12  ;;  %v1842_v37 = vadd.f32 %v5967_v33, %v7404_v4 }
 0x16c   : > { %v1726_v53 = vpop.f32.mrf.mxu1  ;;  %v2156_v28 = vpop.f32.mrf.mxu0 }
 0x16d   : > { %v7626_v50 = vadd.f32 %v6023_v19, %v1842_v37  ;;  %v1841_v47 = vadd.f32 %v1726_v53, %v7409_v29 }
 0x16e   : > { %v5970_v46 = vpop.f32.mrf.mxu1  ;;  %v6026_v7 = vpop.f32.mrf.mxu0 }
 0x16f   : > { %v7630_v32 = vadd.f32 %v2156_v28, %v1841_v47  ;;  %v1844_v2 = vadd.f32 %v5970_v46, %v7418_v10  ;;  %v4101_v47 = vshrl.u32 %v7637_v13, 4 }
 0x170   : > { %v1736_v25 = vpop.f32.mrf.mxu1  ;;  %v2166_v36 = vpop.f32.mrf.mxu0 }
 0x171   : > { %v7633_v1 = vadd.f32 %v6026_v7, %v1844_v2  ;;  %v1843_v4 = vadd.f32 %v1736_v25, %v7423_v48  ;;  %v7660_v7 = vadd.s32 16, %v7621_v38 }
 0x172   : > { %v5973_v43 = vpop.f32.mrf.mxu1  ;;  %v6029_v56 = vpop.f32.mrf.mxu0 }
 0x173   : > { %v7639_v29 = vadd.f32 %v2166_v36, %v1843_v4  ;;  %v1846_v41 = vadd.f32 %v5973_v43, %v7432_v16  ;;  %v7652_v16 = vadd.s32 24, %v7621_v38  ;;  %v7666_v36 = vadd.s32 40, %v7621_v38 }
 0x174   : > { %v1746_v42 = vpop.f32.mrf.mxu1  ;;  %v2176_v51 = vpop.f32.mrf.mxu0 }
 0x175   : > { %v7642_v57 = vadd.f32 %v6029_v56, %v1846_v41  ;;  %v1845_v10 = vadd.f32 %v1746_v42, %v7437_v9  ;;  %v7656_v9 = vmul.u32.u64.low 3817748708, %v7621_v38  ;;  %v7657_v46 = vmul.u32.u64.high 3817748708, %v7621_v38, %v7656_v9 }
 0x176   : > { %v5976_v52 = vpop.f32.mrf.mxu1  ;;  %v6032_v24 = vpop.f32.mrf.mxu0  ;;  %v7672_v56 = vmul.u32.u64.low 3817748708, %v7652_v16  ;;  %v7673_v15 = vmul.u32.u64.high 3817748708, %v7652_v16, %v7672_v56  ;;  %v4102_v42 = vmul.u32 18, %v4101_v47 }
 0x177   : > { %v7645_v62 = vadd.f32 %v2176_v51, %v1845_v10  ;;  %v1848_v48 = vadd.f32 %v5976_v52, %v7446_v22  ;;  %v7676_v51 = vmul.u32.u64.low 3817748708, %v7660_v7  ;;  %v7677_v10 = vmul.u32.u64.high 3817748708, %v7660_v7, %v7676_v51 }
 0x178   : > { %v1756_v12 = vpop.f32.mrf.mxu1  ;;  %v2186_v33 = vpop.f32.mrf.mxu0 }
 0x179   : > { %v7648_v19 = vadd.f32 %v6032_v24, %v1848_v48  ;;  %v1847_v37 = vadd.f32 %v1756_v12, %v7451_v63  ;;  %v7683_v24 = vadd.s32 32, %v7621_v38 }
 0x17a   : > { %v5979_v53 = vpop.f32.mrf.mxu1  ;;  %v6035_v28 = vpop.f32.mrf.mxu0 }
 0x17b   : > { %v7662_v22 = vadd.f32 %v2186_v33, %v1847_v37  ;;  %v1850_v2 = vadd.f32 %v5979_v53, %v7460_v39  ;;  %v7686_v12 = vmul.u32.u64.low 3817748708, %v7666_v36  ;;  %v7687_v33 = vmul.u32.u64.high 3817748708, %v7666_v36, %v7686_v12 }
 0x17c   : > { %v1766_v25 = vpop.f32.mrf.mxu1  ;;  %v2196_v63 = vpop.f32.mrf.mxu0  ;;  %v7690_v37 = vadd.s32 56, %v7621_v38 }
 0x17d   : > { %v7668_v4 = vadd.f32 %v6035_v28, %v1850_v2  ;;  %v1849_v43 = vadd.f32 %v1766_v25, %v7465_v61  ;;  %v7695_v2 = vsub.s32 %v4049_v55, %v4102_v42 }
 0x17e   : > { %v5982_v13 = vpop.f32.mrf.mxu1  ;;  %v6038_v41 = vpop.f32.mrf.mxu0 }
 0x17f   : > { %v7679_v39 = vadd.f32 %v2196_v63, %v1849_v43  ;;  %v1852_v52 = vadd.f32 %v5982_v13, %v7474_v45  ;;  %9433 = vst [vmem:[#allocation9_spill] sm:$0xff] %v7695_v2  ;;  %v4090_v45 = vshrl.u32 %v7657_v46, 4  ;;  %vm4481_vm2 = vcmp.ne.s32.totalorder %v7695_v2, 0 }
 0x180   : > { %v1776_v48 = vpop.f32.mrf.mxu1  ;;  %v2206_v61 = vpop.f32.mrf.mxu0  ;;  %v7702_v43 = vmul.u32.u64.low 3817748708, %v7683_v24  ;;  %v7703_v56 = vmul.u32.u64.high 3817748708, %v7683_v24, %v7702_v43  ;;  %vm4517_vm3 = vcmp.lt.s32.totalorder %v7695_v2, 0 }
 0x181   : > { %v7692_v53 = vadd.f32 %v6038_v41, %v1852_v52  ;;  %v1851_v28 = vadd.f32 %v1776_v48, %v7479_v18  ;;  %v7706_v41 = vmul.u32.u64.low 3817748708, %v7690_v37  ;;  %v7707_v52 = vmul.u32.u64.high 3817748708, %v7690_v37, %v7706_v41  ;;  %vm7731_vm4 = vmand %vm4517_vm3, %vm4481_vm2 }
 0x182   : > { %v5985_v47 = vpop.f32.mrf.mxu1  ;;  %v6041_v9 = vpop.f32.mrf.mxu0  ;;  %v4091_v48 = vmul.u32 18, %v4090_v45 }
 0x183   : > { %v7698_v25 = vadd.f32 %v2206_v61, %v1851_v28  ;;  %v1854_v63 = vadd.f32 %v5985_v47, %v7488_v59  ;;  %v4123_v59 = vshrl.u32 %v7673_v15, 4  ;;  %v7715_v61 = vadd.s32 48, %v7621_v38 }
 0x184   : > { %v1786_v13 = vpop.f32.mrf.mxu1  ;;  %v2216_v51 = vpop.f32.mrf.mxu0  ;;  %v4112_v47 = vshrl.u32 %v7677_v10, 4  ;;  %v7727_v15 = vadd.s32 18, %v7695_v2  ;;  %v7736_v10 = vsub.s32 %v7621_v38, %v4091_v48  ;;  %v7748_v48 = vadd.s32 72, %v7621_v38 }
 0x185   : > { %9434 = vst [vmem:[#allocation10_spill] sm:$0xff] %v7698_v25  ;;  %v7709_v18 = vadd.f32 %v6041_v9, %v1854_v63  ;;  %v1853_v55 = vadd.f32 %v1786_v13, %v7493_v34  ;;  %v4145_v63 = vshrl.u32 %v7687_v33, 4  ;;  %v4124_v41 = vmul.u32 18, %v4123_v59 }
 0x186   : > { %v5988_v42 = vpop.f32.mrf.mxu1  ;;  %v6044_v46 = vpop.f32.mrf.mxu0  ;;  %9438 = vst [vmem:[#allocation14_spill] sm:$0xff] %v7727_v15  ;;  %vm4480_vm5 = vcmp.ne.s32.totalorder %v7736_v10, 0  ;;  %vm4516_vm6 = vcmp.lt.s32.totalorder %v7736_v10, 0  ;;  %v7778_v2 = vmul.u32.u64.low 3817748708, %v7748_v48  ;;  %v7779_v15 = vmul.u32.u64.high 3817748708, %v7748_v48, %v7778_v2 }
 0x187   : > { %9435 = vst [vmem:[#allocation11_spill] sm:$0xff] %v7709_v18  ;;  %v7717_v12 = vadd.f32 %v2216_v51, %v1853_v55  ;;  %v1856_v28 = vadd.f32 %v5988_v42, %v7502_v3  ;;  %v7739_v33 = vmul.u32.u64.low 3817748708, %v7715_v61  ;;  %v7740_v55 = vmul.u32.u64.high 3817748708, %v7715_v61, %v7739_v33  ;;  %vm7830_vm13 = vmand %vm4516_vm6, %vm4480_vm5 }
 0x188   : > { %v1796_v9 = vpop.f32.mrf.mxu1  ;;  %v2226_v34 = vpop.f32.mrf.mxu0  ;;  %v4167_v18 = vshrl.u32 %v7707_v52, 4  ;;  %v7763_v52 = vadd.s32 18, %v7736_v10 }
 0x189   : > { %9436 = vst [vmem:[#allocation12_spill] sm:$0xff] %v7717_v12  ;;  %v7723_v43 = vadd.f32 %v6044_v46, %v1856_v28  ;;  %v1855_v45 = vadd.f32 %v1796_v9, %v7507_v54  ;;  %v4113_v46 = vmul.u32 18, %v4112_v47  ;;  %v4134_v28 = vshrl.u32 %v7703_v56, 4 }
 0x18a   : > { %v5991_v13 = vpop.f32.mrf.mxu1  ;;  %v6047_v51 = vpop.f32.mrf.mxu0  ;;  %v4146_v12 = vmul.u32 18, %v4145_v63  ;;  %v7758_v47 = vadd.s32 64, %v7621_v38  ;;  %v7766_v63 = vsub.s32 %v7652_v16, %v4124_v41 }
 0x18b   : > { %9437 = vst [vmem:[#allocation13_spill] sm:$0xff] %v7723_v43  ;;  %v7742_v54 = vadd.f32 %v2226_v34, %v1855_v45  ;;  %v1858_v42 = vadd.f32 %v5991_v13, %v7516_v58  ;;  %v7772_v13 = vsub.s32 %v7660_v7, %v4113_v46  ;;  %v4168_v58 = vmul.u32 18, %v4167_v18 }
 0x18c   : > { %v1806_v9 = vpop.f32.mrf.mxu1  ;;  %v2236_v43 = vpop.f32.mrf.mxu0  ;;  %9441 = vst [vmem:[#allocation15_spill] sm:$0xff] %v7766_v63  ;;  %vm4483_vm7 = vcmp.ne.s32.totalorder %v7766_v63, 0  ;;  %vm4519_vm8 = vcmp.lt.s32.totalorder %v7766_v63, 0  ;;  %v7792_v18 = vadd.s32 88, %v7621_v38 }
 0x18d   : > { %v7750_v59 = vadd.f32 %v6047_v51, %v1858_v42  ;;  %v1857_v25 = vadd.f32 %v1806_v9, %v7521_v27  ;;  %v4135_v51 = vmul.u32 18, %v4134_v28  ;;  %v7775_v9 = vsub.s32 %v7666_v36, %v4146_v12  ;;  %vm7844_vm14 = vmand %vm4519_vm8, %vm4483_vm7 }
 0x18e   : > { %v5994_v56 = vpop.f32.mrf.mxu1  ;;  %v6050_v34 = vpop.f32.mrf.mxu0  ;;  %v4156_v36 = vshrl.u32 %v7740_v55, 4  ;;  %vm4482_vm9 = vcmp.ne.s32.totalorder %v7772_v13, 0  ;;  %vm4518_vm10 = vcmp.lt.s32.totalorder %v7772_v13, 0 }
 0x18f   : > { %v7768_v27 = vadd.f32 %v2236_v43, %v1857_v25  ;;  %v1860_v45 = vadd.f32 %v5994_v56, %v7530_v5  ;;  %v7785_v5 = vmul.u32.u64.low 3817748708, %v7758_v47  ;;  %v7786_v43 = vmul.u32.u64.high 3817748708, %v7758_v47, %v7785_v5  ;;  %vm7861_vm1 = vmand %vm4518_vm10, %vm4482_vm9 }
 0x190   : > { %v1816_v33 = vpop.f32.mrf.mxu1  ;;  %v2246_v42 = vpop.f32.mrf.mxu0  ;;  %v7803_v56 = vadd.s32 18, %v7772_v13  ;;  %vm4485_vm11 = vcmp.ne.s32.totalorder %v7775_v9, 0  ;;  %v7807_v55 = vsub.s32 %v7683_v24, %v4135_v51  ;;  %vm4521_vm12 = vcmp.lt.s32.totalorder %v7775_v9, 0 }
 0x191   : > { %9442 = vst [vmem:[#allocation16_spill] sm:$0xff] %v7768_v27  ;;  %v7781_v16 = vadd.f32 %v6050_v34, %v1860_v45  ;;  %v1859_v25 = vadd.f32 %v1816_v33, %v7535_v40  ;;  %v7798_v40 = vadd.s32 18, %v7766_v63  ;;  %v7814_v45 = vsub.s32 %v7690_v37, %v4168_v58  ;;  %vm7871_vm3 = vmand %vm4521_vm12, %vm4485_vm11 }
 0x192   : > { %v6055_v7 = vpop.f32.mrf.mxu1  ;;  %v6111_v41 = vpop.f32.mrf.mxu0  ;;  %9445 = vst [vmem:[#allocation19_spill] sm:$0xff] %v7807_v55  ;;  %v7835_v37 = vadd.s32 18, %v7775_v9  ;;  %v7838_v58 = vadd.s32 104, %v7621_v38  ;;  %vm4484_vm15 = vcmp.ne.s32.totalorder %v7807_v55, 0  ;;  %vm4520_vm0 = vcmp.lt.s32.totalorder %v7807_v55, 0 }
 0x193   : > { %9443 = vst [vmem:[#allocation17_spill] sm:$0xff] %v7781_v16  ;;  %v7794_v2 = vadd.f32 %v2246_v42, %v1859_v25  ;;  %v2686_v12 = vadd.f32 %v6055_v7, %v7544_v11  ;;  %9447 = vst [vmem:[#allocation21_spill] sm:$0xff] %v7814_v45  ;;  %v4157_v25 = vmul.u32 18, %v4156_v36  ;;  %vm4487_vm2 = vcmp.ne.s32.totalorder %v7814_v45, 0 }
 0x194   : > { %v2506_v46 = vpop.f32.mrf.mxu1  ;;  %v2936_v28 = vpop.f32.mrf.mxu0  ;;  %v7817_v5 = vmul.u32.u64.low 3817748708, %v7792_v18  ;;  %v7818_v7 = vmul.u32.u64.high 3817748708, %v7792_v18, %v7817_v5  ;;  %vm4523_vm5 = vcmp.lt.s32.totalorder %v7814_v45, 0  ;;  %vm7890_vm6 = vmand %vm4520_vm0, %vm4484_vm15 }
 0x195   : > { %9444 = vst [vmem:[#allocation18_spill] sm:$0xff] %v7794_v2  ;;  %v7809_v34 = vadd.f32 %v6111_v41, %v2686_v12  ;;  %v2685_v11 = vadd.f32 %v2506_v46, %v7549_v6  ;;  %v7821_v2 = vadd.s32 80, %v7621_v38  ;;  %v7851_v12 = vadd.s32 18, %v7807_v55  ;;  %vm7920_vm7 = vmand %vm4523_vm5, %vm4487_vm2 }
 0x196   : > { %v6058_v33 = vpop.f32.mrf.mxu1  ;;  %v6114_v42 = vpop.f32.mrf.mxu0  ;;  %v4189_v46 = vshrl.u32 %v7779_v15, 4  ;;  %v4178_v5 = vshrl.u32 %v7786_v43, 4  ;;  %v7877_v15 = vsub.s32 %v7715_v61, %v4157_v25  ;;  %v7949_v55 = vadd.s32 120, %v7621_v38 }
 0x197   : > { %9446 = vst [vmem:[#allocation20_spill] sm:$0xff] %v7809_v34  ;;  %v7823_v24 = vadd.f32 %v2936_v28, %v2685_v11  ;;  %v2688_v51 = vadd.f32 %v6058_v33, %v7558_v17  ;;  %9453 = vst [vmem:[#allocation23_spill] sm:$0xff] %v7851_v12  ;;  %v9455_v33 = vmov 0 }
 0x198   : > { %v2516_v41 = vpop.f32.mrf.mxu1  ;;  %v2946_v36 = vpop.f32.mrf.mxu0  ;;  %v9456_v33 = vsel %vm7861_vm1, 4294967295, %v9455_v33  ;;  %9460 = vst [vmem:[#allocation26_spill] sm:$0xff] %v7877_v15  ;;  %v7895_v16 = vmul.u32.u64.low 3817748708, %v7838_v58  ;;  %v7896_v61 = vmul.u32.u64.high 3817748708, %v7838_v58, %v7895_v16  ;;  %vm4486_vm8 = vcmp.ne.s32.totalorder %v7877_v15, 0  ;;  %v9576_v3 = vld [vmem:[#allocation16_spill] sm:$0xff] }
 0x199   : > { %9448 = vst [vmem:[#allocation22_spill] sm:$0xff] %v7823_v24  ;;  %v7854_v28 = vadd.f32 %v6114_v42, %v2688_v51  ;;  %v2687_v11 = vadd.f32 %v2516_v41, %v7563_v30  ;;  %9457 = vst [vmem:[#allocation25_spill] sm:$0xff] %v9456_v33  ;;  %v7880_v42 = vmul.u32.u64.low 3817748708, %v7821_v2  ;;  %v7881_v51 = vmul.u32.u64.high 3817748708, %v7821_v2, %v7880_v42 }
 0x19a   : > { %v6061_v24 = vpop.f32.mrf.mxu1  ;;  %v6117_v34 = vpop.f32.mrf.mxu0  ;;  %vm4522_vm9 = vcmp.lt.s32.totalorder %v7877_v15, 0 }
 0x19b   : > { %9454 = vst [vmem:[#allocation24_spill] sm:$0xff] %v7854_v28  ;;  %v7883_v43 = vadd.f32 %v2946_v36, %v2687_v11  ;;  %v2690_v41 = vadd.f32 %v6061_v24, %v7572_v23  ;;  %v9462_v28 = vmov 0  ;;  %v7911_v11 = vadd.s32 18, %v7814_v45  ;;  %vm7967_vm10 = vmand %vm4522_vm9, %vm4486_vm8 }
 0x19c   : > { %v9463_v28 = vsel %vm7890_vm6, 4294967295, %v9462_v28  ;;  %v2526_v25 = vpop.f32.mrf.mxu1  ;;  %v2956_v27 = vpop.f32.mrf.mxu0  ;;  %v9467_v36 = vmov 0  ;;  %v4190_v23 = vmul.u32 18, %v4189_v46  ;;  %v9474_v45 = vmov 0 }
 0x19d   : > { %9461 = vst [vmem:[#allocation27_spill] sm:$0xff] %v7883_v43  ;;  %9464 = vst [vmem:[#allocation28_spill] sm:$0xff] %v9463_v28  ;;  %v7913_v16 = vadd.f32 %v6117_v34, %v2690_v41  ;;  %v2689_v42 = vadd.f32 %v2526_v25, %v7577_v49  ;;  %v9468_v36 = vsel %vm7920_vm7, 4294967295, %v9467_v36  ;;  %v4179_v43 = vmul.u32 18, %v4178_v5 }
 0x19e   : > { %9465 = vst [vmem:[#allocation29_spill] sm:$0xff] %v7911_v11  ;;  %9469 = vst [vmem:[#allocation31_spill] sm:$0xff] %v9468_v36  ;;  %v6064_v63 = vpop.f32.mrf.mxu1  ;;  %v6120_v33 = vpop.f32.mrf.mxu0  ;;  %v7934_v41 = vadd.s32 96, %v7621_v38  ;;  %v4211_v5 = vshrl.u32 %v7818_v7, 4  ;;  %v7958_v7 = vsub.s32 %v7748_v48, %v4190_v23  ;;  %v9475_v45 = vsel %vm7967_vm10, 4294967295, %v9474_v45 }
 0x19f   : > { %9466 = vst [vmem:[#allocation30_spill] sm:$0xff] %v7913_v16  ;;  %v7936_v25 = vadd.f32 %v2956_v27, %v2689_v42  ;;  %v2692_v46 = vadd.f32 %v6064_v63, %v7586_v35  ;;  %v7946_v16 = vadd.s32 18, %v7877_v15  ;;  %v7952_v27 = vadd.s32 112, %v7621_v38 }
 0x1a0   : > { %v2536_v24 = vpop.f32.mrf.mxu1  ;;  %v2966_v34 = vpop.f32.mrf.mxu0  ;;  %9473 = vst [vmem:[#allocation35_spill] sm:$0xff] %v7958_v7  ;;  %v7961_v42 = vsub.s32 %v7758_v47, %v4179_v43  ;;  %v7977_v48 = vadd.s32 136, %v7621_v38  ;;  %v4212_v23 = vmul.u32 18, %v4211_v5  ;;  %vm4489_vm11 = vcmp.ne.s32.totalorder %v7958_v7, 0 }
 0x1a1   : > { %9470 = vst [vmem:[#allocation32_spill] sm:$0xff] %v7936_v25  ;;  %9471 = vst [vmem:[#allocation33_spill] sm:$0xff] %v7946_v16  ;;  %v7954_v35 = vadd.f32 %v6120_v33, %v2692_v46  ;;  %v2691_v63 = vadd.f32 %v2536_v24, %v7591_v31  ;;  %v4200_v33 = vshrl.u32 %v7881_v51, 4  ;;  %v4233_v46 = vshrl.u32 %v7896_v61, 4 }
 0x1a2   : > { %v6067_v49 = vpop.f32.mrf.mxu1  ;;  %v6123_v25 = vpop.f32.mrf.mxu0  ;;  %v7973_v31 = vmul.u32.u64.low 3817748708, %v7934_v41  ;;  %v7974_v24 = vmul.u32.u64.high 3817748708, %v7934_v41, %v7973_v31  ;;  %v7984_v36 = vmul.u32.u64.low 3817748708, %v7949_v55  ;;  %v7985_v12 = vmul.u32.u64.high 3817748708, %v7949_v55, %v7984_v36 }
 0x1a3   : > { %9472 = vst [vmem:[#allocation34_spill] sm:$0xff] %v7954_v35  ;;  %v7979_v47 = vadd.f32 %v2966_v34, %v2691_v63  ;;  %v2694_v43 = vadd.f32 %v6067_v49, %v7598_v0  ;;  %v7988_v51 = vmul.u32.u64.low 3817748708, %v7952_v27  ;;  %v7989_v28 = vmul.u32.u64.high 3817748708, %v7952_v27, %v7988_v51 }
 0x1a4   : > { %v2546_v35 = vpop.f32.mrf.mxu1  ;;  %v2976_v11 = vpop.f32.mrf.mxu0  ;;  %v7999_v61 = vadd.s32 128, %v7621_v38  ;;  %v4201_v36 = vmul.u32 18, %v4200_v33  ;;  %v8003_v63 = vmul.u32.u64.low 3817748708, %v7977_v48  ;;  %v8004_v51 = vmul.u32.u64.high 3817748708, %v7977_v48, %v8003_v63 }
 0x1a5   : > { %9476 = vst [vmem:[#allocation36_spill] sm:$0xff] %v7979_v47  ;;  %v7991_v31 = vadd.f32 %v6123_v25, %v2694_v43  ;;  %v2693_v34 = vadd.f32 %v2546_v35, %v7603_v20  ;;  %vm4525_vm12 = vcmp.lt.s32.totalorder %v7958_v7, 0  ;;  %v8011_v35 = vsub.s32 %v7792_v18, %v4212_v23 }
 0x1a6   : > { %v6070_v49 = vpop.f32.mrf.mxu1  ;;  %v6126_v5 = vpop.f32.mrf.mxu0  ;;  %vm4488_vm15 = vcmp.ne.s32.totalorder %v7961_v42, 0  ;;  %v4234_v33 = vmul.u32 18, %v4233_v46  ;;  %v8018_v47 = vadd.s32 152, %v7621_v38  ;;  %vm4524_vm0 = vcmp.lt.s32.totalorder %v7961_v42, 0  ;;  %vm8067_vm9 = vmand %vm4525_vm12, %vm4489_vm11 }
 0x1a7   : > { %9477 = vst [vmem:[#allocation37_spill] sm:$0xff] %v7991_v31  ;;  %v8006_v25 = vadd.f32 %v2976_v11, %v2693_v34  ;;  %v2696_v20 = vadd.f32 %v6070_v49, %v7606_v44  ;;  %9479 = vst [vmem:[#allocation39_spill] sm:$0xff] %v8011_v35  ;;  %v8014_v31 = vadd.s32 18, %v7958_v7  ;;  %v8029_v63 = vadd.s32 18, %v7961_v42 }
 0x1a8   : > { %v2556_v43 = vpop.f32.mrf.mxu1  ;;  %v2986_v0 = vpop.f32.mrf.mxu0  ;;  %v8024_v34 = vmul.u32.u64.low 3817748708, %v7999_v61  ;;  %v8025_v49 = vmul.u32.u64.high 3817748708, %v7999_v61, %v8024_v34  ;;  %v8032_v46 = vsub.s32 %v7821_v2, %v4201_v36  ;;  %vm4491_vm2 = vcmp.ne.s32.totalorder %v8011_v35, 0  ;;  %vm8079_vm5 = vmand %vm4524_vm0, %vm4488_vm15 }
 0x1a9   : > { %9478 = vst [vmem:[#allocation38_spill] sm:$0xff] %v8006_v25  ;;  %9480 = vst [vmem:[#allocation40_spill] sm:$0xff] %v8014_v31  ;;  %v8020_v11 = vadd.f32 %v6126_v5, %v2696_v20  ;;  %v2695_v44 = vadd.f32 %v2556_v43, %v7609_v8  ;;  %v4222_v25 = vshrl.u32 %v7974_v24, 4  ;;  %v8041_v34 = vsub.s32 %v7838_v58, %v4234_v33 }
 0x1aa   : > { %v6073_v18 = vpop.f32.mrf.mxu1  ;;  %v6129_v23 = vpop.f32.mrf.mxu0  ;;  %9482 = vst [vmem:[#allocation42_spill] sm:$0xff] %v8032_v46  ;;  %v8045_v2 = vmul.u32.u64.low 3817748708, %v8018_v47  ;;  %v8046_v36 = vmul.u32.u64.high 3817748708, %v8018_v47, %v8045_v2  ;;  %v8058_v33 = vadd.s32 144, %v7621_v38  ;;  %vm9496_vm8 = vcmp.lt.s32.totalorder %v8011_v35, 0 }
 0x1ab   : > { %9481 = vst [vmem:[#allocation41_spill] sm:$0xff] %v8020_v11  ;;  %v8035_v5 = vadd.f32 %v2986_v0, %v2695_v44  ;;  %v2698_v8 = vadd.f32 %v6073_v18, %v7612_v26  ;;  %9484 = vst [vmem:[#allocation44_spill] sm:$0xff] %v8041_v34  ;;  %v4255_v11 = vshrl.u32 %v7985_v12, 4  ;;  %v8052_v26 = vadd.s32 18, %v8011_v35 }
 0x1ac   : > { %v2566_v20 = vpop.f32.mrf.mxu1  ;;  %v2996_v43 = vpop.f32.mrf.mxu0  ;;  %v4244_v44 = vshrl.u32 %v7989_v28, 4  ;;  %v4223_v58 = vmul.u32 18, %v4222_v25  ;;  %v4277_v12 = vshrl.u32 %v8004_v51, 4  ;;  %v8073_v28 = vadd.s32 18, %v8032_v46  ;;  %vm8095_vm15 = vmand %vm9496_vm8, %vm4491_vm2 }
 0x1ad   : > { %9483 = vst [vmem:[#allocation43_spill] sm:$0xff] %v8035_v5  ;;  %v8048_v24 = vadd.f32 %v6129_v23, %v2698_v8  ;;  %v2697_v0 = vadd.f32 %v2566_v20, %v7615_v60  ;;  %9486 = vst [vmem:[#allocation46_spill] sm:$0xff] %v8052_v26  ;;  %v9488_v60 = vmov 0  ;;  %v8086_v8 = vadd.s32 18, %v8041_v34 }
 0x1ae   : > { %v6076_v18 = vpop.f32.mrf.mxu1  ;;  %v6132_v5 = vpop.f32.mrf.mxu0  ;;  %v9489_v60 = vsel %vm8067_vm9, 4294967295, %v9488_v60  ;;  %9490 = vst [vmem:[#allocation48_spill] sm:$0xff] %v8073_v28  ;;  %v4256_v20 = vmul.u32 18, %v4255_v11  ;;  %vm9499_vm0 = vcmp.ne.s32.totalorder %v8032_v46, 0  ;;  %vm9500_vm12 = vcmp.lt.s32.totalorder %v8032_v46, 0 }
 0x1af   : > { %9485 = vst [vmem:[#allocation45_spill] sm:$0xff] %v8048_v24  ;;  %v8060_v2 = vadd.f32 %v2996_v43, %v2697_v0  ;;  %v2700_v23 = vadd.f32 %v6076_v18, %v7618_v14  ;;  %v9491_v14 = vmov 0  ;;  %9494 = vst [vmem:[#allocation50_spill] sm:$0xff] %v8086_v8  ;;  %v9497_v18 = vmov 0 }
 0x1b0   : > { %v2576_v51 = vpop.f32.mrf.mxu1  ;;  %v3006_v25 = vpop.f32.mrf.mxu0  ;;  %v9492_v14 = vsel %vm8079_vm5, 4294967295, %v9491_v14  ;;  %v9498_v18 = vsel %vm8095_vm15, 4294967295, %v9497_v18  ;;  %v4266_v24 = vshrl.u32 %v8025_v49, 4  ;;  %vm8104_vm11 = vmand %vm9500_vm12, %vm9499_vm0  ;;  %v9501_v11 = vmov 0 }
 0x1b1   : > { %9487 = vst [vmem:[#allocation47_spill] sm:$0xff] %v8060_v2  ;;  %9493 = vst [vmem:[#allocation49_spill] sm:$0xff] %v9492_v14  ;;  %v8088_v43 = vadd.f32 %v6132_v5, %v2700_v23  ;;  %v2699_v0 = vadd.f32 %v2576_v51, %v7623_v21  ;;  %v4245_v2 = vmul.u32 18, %v4244_v44  ;;  %v9502_v11 = vsel %vm8104_vm11, 4294967295, %v9501_v11 }
 0x1b2   : > { %v6079_v15 = vpop.f32.mrf.mxu1  ;;  %v6135_v16 = vpop.f32.mrf.mxu0  ;;  %9503 = vst [vmem:[#allocation52_spill] sm:$0xff] %v9502_v11  ;;  %v8109_v21 = vsub.s32 %v7934_v41, %v4223_v58  ;;  %v4278_v5 = vmul.u32 18, %v4277_v12  ;;  %v8112_v23 = vmul.u32.u64.low 3817748708, %v8058_v33  ;;  %v8113_v51 = vmul.u32.u64.high 3817748708, %v8058_v33, %v8112_v23 }
 0x1b3   : > { %9495 = vst [vmem:[#allocation51_spill] sm:$0xff] %v8088_v43  ;;  %v8115_v44 = vadd.f32 %v3006_v25, %v2699_v0  ;;  %v2702_v49 = vadd.f32 %v6079_v15, %v7626_v50  ;;  %vm9505_vm2 = vcmp.ne.s32.totalorder %v8041_v34, 0  ;;  %vm9506_vm8 = vcmp.lt.s32.totalorder %v8041_v34, 0 }
 0x1b4   : > { %vm8126_vm12 = vmand %vm9506_vm8, %vm9505_vm2  ;;  %v9507_v41 = vmov 0  ;;  %v8131_v58 = vadd.s32 168, %v7621_v38  ;;  %v2586_v12 = vpop.f32.mrf.mxu1  ;;  %v3016_v25 = vpop.f32.mrf.mxu0  ;;  %v8142_v0 = vsub.s32 %v7949_v55, %v4256_v20  ;;  %v4299_v23 = vshrl.u32 %v8046_v36, 4 }
 0x1b5   : > { %9504 = vst [vmem:[#allocation53_spill] sm:$0xff] %v8115_v44  ;;  %v9508_v41 = vsel %vm8126_vm12, 4294967295, %v9507_v41  ;;  %v8145_v43 = vadd.f32 %v6135_v16, %v2702_v49  ;;  %v2701_v44 = vadd.f32 %v2586_v12, %v7630_v32  ;;  %v8149_v7 = vsub.s32 %v7952_v27, %v4245_v2 }
 0x1b6   : > { %9509 = vst [vmem:[#allocation54_spill] sm:$0xff] %v9508_v41  ;;  %9510 = vst [vmem:[#allocation55_spill] sm:$0xff] %v8142_v0  ;;  %v4267_v31 = vmul.u32 18, %v4266_v24  ;;  %v6082_v14 = vpop.f32.mrf.mxu1  ;;  %v6138_v50 = vpop.f32.mrf.mxu0  ;;  %v8160_v16 = vadd.s32 18, %v8109_v21  ;;  %v8163_v32 = vsub.s32 %v7977_v48, %v4278_v5  ;;  %vm4492_vm0 = vcmp.ne.s32.totalorder %v8109_v21, 0 }
 0x1b7   : > { %9511 = vst [vmem:[#allocation56_spill] sm:$0xff] %v8145_v43  ;;  %v8165_v27 = vadd.f32 %v3016_v25, %v2701_v44  ;;  %v2704_v36 = vadd.f32 %v6082_v14, %v7633_v1  ;;  %v8171_v24 = vmul.u32.u64.low 3817748708, %v8131_v58  ;;  %v8172_v2 = vmul.u32.u64.high 3817748708, %v8131_v58, %v8171_v24 }
 0x1b8   : > { %9512 = vst [vmem:[#allocation57_spill] sm:$0xff] %v8163_v32  ;;  %v2596_v20 = vpop.f32.mrf.mxu1  ;;  %v3026_v49 = vpop.f32.mrf.mxu0  ;;  %v8177_v48 = vadd.s32 18, %v8142_v0  ;;  %v4300_v5 = vmul.u32 18, %v4299_v23  ;;  %v8180_v1 = vadd.s32 160, %v7621_v38  ;;  %v8187_v12 = vsub.s32 %v7999_v61, %v4267_v31 }
 0x1b9   : > { %9513 = vst [vmem:[#allocation58_spill] sm:$0xff] %v8165_v27  ;;  %v8182_v14 = vadd.f32 %v6138_v50, %v2704_v36  ;;  %v2703_v44 = vadd.f32 %v2596_v20, %v7639_v29  ;;  %v8191_v55 = vadd.s32 18, %v8149_v7  ;;  %v4288_v23 = vshrl.u32 %v8113_v51, 4 }
 0x1ba   : > { %9515 = vst [vmem:[#allocation60_spill] sm:$0xff] %v8187_v12  ;;  %v6085_v25 = vpop.f32.mrf.mxu1  ;;  %v6141_v24 = vpop.f32.mrf.mxu0  ;;  %v8200_v31 = vadd.s32 18, %v8163_v32  ;;  %v8203_v20 = vsub.s32 %v8018_v47, %v4300_v5  ;;  %v8210_v51 = vadd.s32 184, %v7621_v38  ;;  %v8221_v47 = vadd.s32 18, %v8187_v12 }
 0x1bb   : > { %9514 = vst [vmem:[#allocation59_spill] sm:$0xff] %v8182_v14  ;;  %v8195_v50 = vadd.f32 %v3026_v49, %v2703_v44  ;;  %v2706_v29 = vadd.f32 %v6085_v25, %v7642_v57  ;;  %v8206_v15 = vmul.u32.u64.low 3817748708, %v8180_v1  ;;  %v8207_v14 = vmul.u32.u64.high 3817748708, %v8180_v1, %v8206_v15 }
 0x1bc   : > { %9517 = vst [vmem:[#allocation62_spill] sm:$0xff] %v8200_v31  ;;  %v2606_v61 = vpop.f32.mrf.mxu1  ;;  %v3036_v36 = vpop.f32.mrf.mxu0  ;;  %9518 = vst [vmem:[#allocation63_spill] sm:$0xff] %v8203_v20  ;;  %v8217_v44 = vadd.s32 176, %v7621_v38  ;;  %v4289_v15 = vmul.u32 18, %v4288_v23  ;;  %v8224_v5 = vadd.s32 200, %v7621_v38  ;;  %v8239_v23 = vadd.s32 216, %v7621_v38 }
 0x1bd   : > { %9516 = vst [vmem:[#allocation61_spill] sm:$0xff] %v8195_v50  ;;  %v8212_v49 = vadd.f32 %v6141_v24, %v2706_v29  ;;  %v2705_v57 = vadd.f32 %v2606_v61, %v7645_v62  ;;  %9520 = vst [vmem:[#allocation65_spill] sm:$0xff] %v8221_v47  ;;  %v4321_v29 = vshrl.u32 %v8172_v2, 4  ;;  %v8231_v61 = vadd.s32 192, %v7621_v38 }
 0x1be   : > { %v6088_v25 = vpop.f32.mrf.mxu1  ;;  %v6144_v50 = vpop.f32.mrf.mxu0  ;;  %v8235_v43 = vmul.u32.u64.low 3817748708, %v8210_v51  ;;  %v8236_v34 = vmul.u32.u64.high 3817748708, %v8210_v51, %v8235_v43  ;;  %vm9523_vm8 = vcmp.lt.s32.totalorder %v8109_v21, 0  ;;  %v9524_v8 = vmov 0 }
 0x1bf   : > { %9519 = vst [vmem:[#allocation64_spill] sm:$0xff] %v8212_v49  ;;  %v8226_v24 = vadd.f32 %v3036_v36, %v2705_v57  ;;  %v2708_v62 = vadd.f32 %v6088_v25, %v7648_v19  ;;  %v8245_v2 = vmul.u32.u64.low 3817748708, %v8217_v44  ;;  %v8246_v57 = vmul.u32.u64.high 3817748708, %v8217_v44, %v8245_v2  ;;  %vm8252_vm2 = vmand %vm9523_vm8, %vm4492_vm0 }
 0x1c0   : > { %v2616_v49 = vpop.f32.mrf.mxu1  ;;  %v3046_v27 = vpop.f32.mrf.mxu0  ;;  %v9525_v8 = vsel %vm8252_vm2, 4294967295, %v9524_v8  ;;  %v8257_v43 = vsub.s32 %v8058_v33, %v4289_v15  ;;  %vm9528_vm12 = vcmp.ne.s32.totalorder %v8142_v0, 0  ;;  %vm9529_vm0 = vcmp.lt.s32.totalorder %v8142_v0, 0 }
 0x1c1   : > { %9521 = vst [vmem:[#allocation66_spill] sm:$0xff] %v8226_v24  ;;  %v8241_v36 = vadd.f32 %v6144_v50, %v2708_v62  ;;  %v2707_v19 = vadd.f32 %v2616_v49, %v7662_v22  ;;  %v8260_v50 = vmul.u32.u64.low 3817748708, %v8224_v5  ;;  %v8261_v22 = vmul.u32.u64.high 3817748708, %v8224_v5, %v8260_v50  ;;  %vm8273_vm8 = vmand %vm9529_vm0, %vm9528_vm12 }
 0x1c2   : > { %v6091_v25 = vpop.f32.mrf.mxu1  ;;  %v6147_v24 = vpop.f32.mrf.mxu0  ;;  %9526 = vst [vmem:[#allocation68_spill] sm:$0xff] %v8257_v43  ;;  %v8264_v49 = vadd.s32 208, %v7621_v38  ;;  %v8278_v33 = vmul.u32.u64.low 3817748708, %v8231_v61  ;;  %v8279_v15 = vmul.u32.u64.high 3817748708, %v8231_v61, %v8278_v33  ;;  %vm9532_vm11 = vcmp.ne.s32.totalorder %v8149_v7, 0 }
 0x1c3   : > { %9522 = vst [vmem:[#allocation67_spill] sm:$0xff] %v8241_v36  ;;  %v8266_v62 = vadd.f32 %v3046_v27, %v2707_v19  ;;  %v2710_v2 = vadd.f32 %v6091_v25, %v7668_v4  ;;  %v9530_v36 = vmov 0  ;;  %vm9533_vm15 = vcmp.lt.s32.totalorder %v8149_v7, 0 }
 0x1c4   : > { %v9531_v36 = vsel %vm8273_vm8, 4294967295, %v9530_v36  ;;  %v2626_v50 = vpop.f32.mrf.mxu1  ;;  %v3056_v41 = vpop.f32.mrf.mxu0  ;;  %vm8285_vm5 = vmand %vm9533_vm15, %vm9532_vm11  ;;  %v9534_v4 = vmov 0  ;;  %v8291_v27 = vadd.s32 18, %v8203_v20  ;;  %vm9538_vm12 = vcmp.ne.s32.totalorder %v8163_v32, 0 }
 0x1c5   : > { %9527 = vst [vmem:[#allocation69_spill] sm:$0xff] %v8266_v62  ;;  %v9535_v4 = vsel %vm8285_vm5, 4294967295, %v9534_v4  ;;  %v8294_v19 = vmul.u32.u64.low 3817748708, %v8239_v23  ;;  %v8295_v25 = vmul.u32.u64.high 3817748708, %v8239_v23, %v8294_v19  ;;  %v8297_v33 = vadd.f32 %v6147_v24, %v2710_v2 }
 0x1c6   : > { %9536 = vst [vmem:[#allocation70_spill] sm:$0xff] %v9535_v4  ;;  %v2709_v62 = vadd.f32 %v2626_v50, %v7679_v39  ;;  %vm9539_vm11 = vcmp.lt.s32.totalorder %v8163_v32, 0  ;;  %v9540_v46 = vmov 0  ;;  %v4322_v28 = vmul.u32 18, %v4321_v29  ;;  %v6094_v35 = vpop.f32.mrf.mxu1  ;;  %v6150_v26 = vpop.f32.mrf.mxu0 }
 0x1c7   : > { %9537 = vst [vmem:[#allocation71_spill] sm:$0xff] %v8297_v33  ;;  %vm8304_vm15 = vmand %vm9539_vm11, %vm9538_vm12  ;;  %v4310_v11 = vshrl.u32 %v8207_v14, 4  ;;  %vm9543_vm0 = vcmp.ne.s32.totalorder %v8187_v12, 0  ;;  %vm9544_vm9 = vcmp.lt.s32.totalorder %v8187_v12, 0  ;;  %v9545_v24 = vmov 0  ;;  %v9555_v33 = vld [vmem:[#allocation10_spill] sm:$0xff] }
 0x1c8   : > { %v9541_v46 = vsel %vm8304_vm15, 4294967295, %v9540_v46  ;;  %vm8313_vm10 = vmand %vm9544_vm9, %vm9543_vm0  ;;  %vm4498_vm7 = vcmp.ne.s32.totalorder %v8257_v43, 0  ;;  %vm4534_vm12 = vcmp.lt.s32.totalorder %v8257_v43, 0  ;;  %v8323_v29 = vadd.f32 %v3056_v41, %v2709_v62  ;;  %v2636_v41 = vpop.f32.mrf.mxu1  ;;  %v9560_v12 = vld [vmem:[#allocation11_spill] sm:$0xff] }
 0x1c9   : > { %9542 = vst [vmem:[#allocation72_spill] sm:$0xff] %v9541_v46  ;;  %v9546_v24 = vsel %vm8313_vm10, 4294967295, %v9545_v24  ;;  %v8320_v39 = vmul.u32.u64.low 3817748708, %v8264_v49  ;;  %v8321_v2 = vmul.u32.u64.high 3817748708, %v8264_v49, %v8320_v39  ;;  %v2712_v14 = vadd.f32 %v6094_v35, %v7692_v53  ;;  %v3066_v53 = vpop.f32.mrf.mxu0 }
 0x1ca   : > { %9547 = vst [vmem:[#allocation73_spill] sm:$0xff] %v9546_v24  ;;  %9548 = vst [vmem:[#allocation74_spill] sm:$0xff] %v8323_v29  ;;  %vm9549_vm9 = vcmp.ne.s32.totalorder %v8203_v20, 0  ;;  %vm9550_vm11 = vcmp.lt.s32.totalorder %v8203_v20, 0  ;;  %v9551_v39 = vmov 0  ;;  %v8351_v19 = vadd.s32 18, %v8257_v43 }
 0x1cb   : > { %vm8338_vm0 = vmand %vm9550_vm11, %vm9549_vm9  ;;  %v4343_v50 = vshrl.u32 %v8236_v34, 4  ;;  %v8354_v29 = vadd.f32 %v6150_v26, %v2712_v14  ;;  %v2711_v0 = vadd.f32 %v2636_v41, %v9555_v33  ;;  %v9556_v62 = vmov 0  ;;  %v6097_v34 = vpop.f32.mrf.mxu1  ;;  %v6153_v26 = vpop.f32.mrf.mxu0 }
 0x1cc   : > { %v9552_v39 = vsel %vm8338_vm0, 4294967295, %v9551_v39  ;;  %9553 = vst [vmem:[#allocation75_spill] sm:$0xff] %v8351_v19  ;;  %vm8365_vm9 = vmand %vm4534_vm12, %vm4498_vm7  ;;  %v8370_v35 = vadd.s32 232, %v7621_v38  ;;  %v8377_v14 = vsub.s32 %v8131_v58, %v4322_v28  ;;  %v4311_v41 = vmul.u32 18, %v4310_v11 }
 0x1cd   : > { %9554 = vst [vmem:[#allocation76_spill] sm:$0xff] %v8354_v29  ;;  %v9557_v62 = vsel %vm8365_vm9, 4294967295, %v9556_v62  ;;  %v4332_v4 = vshrl.u32 %v8246_v57, 4  ;;  %v8380_v29 = vadd.f32 %v3066_v53, %v2711_v0  ;;  %v2714_v47 = vadd.f32 %v6097_v34, %v9560_v12  ;;  %v2646_v31 = vpop.f32.mrf.mxu1  ;;  %v3076_v46 = vpop.f32.mrf.mxu0  ;;  %v9562_v12 = vld [vmem:[#allocation12_spill] sm:$0xff] }
 0x1ce   : > { %9558 = vst [vmem:[#allocation10_spill] sm:$0xff] %v9557_v62  ;;  %v4365_v24 = vshrl.u32 %v8261_v22, 4  ;;  %v4354_v32 = vshrl.u32 %v8279_v15, 4  ;;  %v4344_v28 = vmul.u32 18, %v4343_v50  ;;  %v4387_v11 = vshrl.u32 %v8295_v25, 4 }
 0x1cf   : > { %9559 = vst [vmem:[#allocation77_spill] sm:$0xff] %v8380_v29  ;;  %v8391_v58 = vadd.s32 224, %v7621_v38  ;;  %v8393_v0 = vadd.f32 %v6153_v26, %v2714_v47  ;;  %v2713_v57 = vadd.f32 %v2646_v31, %v9562_v12  ;;  %v6100_v53 = vpop.f32.mrf.mxu1  ;;  %v6156_v34 = vpop.f32.mrf.mxu0  ;;  %v8402_v33 = vsub.s32 %v8180_v1, %v4311_v41  ;;  %v9564_v47 = vld [vmem:[#allocation13_spill] sm:$0xff] }
 0x1d0   : > { %v8397_v22 = vmul.u32.u64.low 3817748708, %v8370_v35  ;;  %v8398_v15 = vmul.u32.u64.high 3817748708, %v8370_v35, %v8397_v22  ;;  %v4333_v50 = vmul.u32 18, %v4332_v4  ;;  %v4376_v25 = vshrl.u32 %v8321_v2, 4 }
 0x1d1   : > { %9561 = vst [vmem:[#allocation11_spill] sm:$0xff] %v8393_v0  ;;  %v8405_v29 = vadd.f32 %v3076_v46, %v2713_v57  ;;  %v2716_v26 = vadd.f32 %v6100_v53, %v9564_v47  ;;  %v4366_v0 = vmul.u32 18, %v4365_v24  ;;  %v4355_v31 = vmul.u32 18, %v4354_v32  ;;  %v2656_v12 = vpop.f32.mrf.mxu1  ;;  %v3086_v43 = vpop.f32.mrf.mxu0  ;;  %v9568_v53 = vld [vmem:[#allocation14_spill] sm:$0xff] }
 0x1d2   : > { %v8409_v22 = vsub.s32 %v8210_v51, %v4344_v28  ;;  %v4388_v19 = vmul.u32 18, %v4387_v11  ;;  %v8412_v62 = vmul.u32.u64.low 3817748708, %v8391_v58  ;;  %v8413_v20 = vmul.u32.u64.high 3817748708, %v8391_v58, %v8412_v62 }
 0x1d3   : > { %9563 = vst [vmem:[#allocation12_spill] sm:$0xff] %v8405_v29  ;;  %v8415_v1 = vadd.f32 %v6156_v34, %v2716_v26  ;;  %v2715_v4 = vadd.f32 %v2656_v12, %v7742_v54  ;;  %v8420_v46 = vadd.s32 18, %v8377_v14  ;;  %v6103_v32 = vpop.f32.mrf.mxu1  ;;  %v6159_v24 = vpop.f32.mrf.mxu0  ;;  %v8425_v51 = vsub.s32 %v8217_v44, %v4333_v50  ;;  %v9569_v34 = vld [vmem:[#allocation9_spill] sm:$0xff]  ;;  %v9679_v29 = vld [vmem:[#allocation46_spill] sm:$0xff] }
 0x1d4   : > { %v4377_v2 = vmul.u32 18, %v4376_v25  ;;  %v2718_v54 = vadd.f32 %v6103_v32, %v7750_v59  ;;  %v8431_v41 = vadd.s32 18, %v8402_v33  ;;  %v8434_v28 = vsub.s32 %v8224_v5, %v4366_v0 }
 0x1d5   : > { %9565 = vst [vmem:[#allocation13_spill] sm:$0xff] %v8415_v1  ;;  %v8427_v62 = vadd.f32 %v3086_v43, %v2715_v4  ;;  %v2666_v11 = vpop.f32.mrf.mxu1  ;;  %v3096_v57 = vpop.f32.mrf.mxu0  ;;  %v9570_v47 = vsel %vm7731_vm4, %v9568_v53, %v9569_v34  ;;  %v8448_v59 = vsub.s32 %v8231_v61, %v4355_v31  ;;  %v8451_v5 = vsub.s32 %v8239_v23, %v4388_v19  ;;  %v9653_v23 = vld [vmem:[#allocation33_spill] sm:$0xff] }
 0x1d6   : > { %9567 = vst [vmem:[#allocation79_spill] sm:$0xff] %v8434_v28  ;;  %vm8441_vm7 = vcmp.lt.s32.totalorder %v9570_v47, 16  ;;  %v8453_v43 = vadd.f32 %v6159_v24, %v2718_v54  ;;  %v2717_v0 = vadd.f32 %v2666_v11, %v9576_v3  ;;  %v8460_v50 = vadd.s32 18, %v8409_v22  ;;  %v9596_v11 = vld [vmem:[#allocation18_spill] sm:$0xff] }
 0x1d7   : > { %9566 = vst [vmem:[#allocation78_spill] sm:$0xff] %v8427_v62  ;;  %9573 = vst [vmem:[#allocation14_spill] sm:$0xff] %v8448_v59  ;;  %v4409_v25 = vshrl.u32 %v8398_v15, 4  ;;  %v6106_v26 = vpop.f32.mrf.mxu1  ;;  %v6162_v12 = vpop.f32.mrf.mxu0  ;;  %v9577_v61 = vsel %vm7830_vm13, %v7763_v52, %v7736_v10  ;;  %vm9580_vm12 = vcmp.ne.s32.totalorder %v8377_v14, 0  ;;  %vm9581_vm11 = vcmp.lt.s32.totalorder %v8377_v14, 0  ;;  %v9586_v15 = vld [vmem:[#allocation17_spill] sm:$0xff] }
 0x1d8   : > { %9574 = vst [vmem:[#allocation9_spill] sm:$0xff] %v8451_v5  ;;  %9575 = vst [vmem:[#allocation80_spill] sm:$0xff] %v8453_v43  ;;  %vm8468_vm4 = vcmp.lt.s32.totalorder %v9577_v61, 16  ;;  %v9582_v19 = vmov 0  ;;  %v8483_v6 = vadd.s32 18, %v8425_v51  ;;  %v8486_v10 = vsub.s32 %v8264_v49, %v4377_v2  ;;  %v9639_v62 = vld [vmem:[#allocation19_spill] sm:$0xff] }
 0x1d9   : > { %vm8476_vm9 = vmand %vm9581_vm11, %vm9580_vm12  ;;  %v8488_v52 = vadd.f32 %v3096_v57, %v2717_v0  ;;  %v2720_v31 = vadd.f32 %v6106_v26, %v9586_v15  ;;  %vm9587_vm13 = vcmp.ne.s32.totalorder %v8402_v33, 0  ;;  %vm9588_vm12 = vcmp.lt.s32.totalorder %v8402_v33, 0  ;;  %v2676_v32 = vpop.f32.mrf.mxu1  ;;  %v3106_v24 = vpop.f32.mrf.mxu0 }
 0x1da   : > { %v9583_v19 = vsel %vm8476_vm9, 4294967295, %v9582_v19  ;;  %9584 = vst [vmem:[#allocation16_spill] sm:$0xff] %v8486_v10  ;;  %vm8495_vm11 = vmand %vm9588_vm12, %vm9587_vm13  ;;  %vm9591_vm15 = vcmp.ne.s32.totalorder %v8409_v22, 0  ;;  %vm9592_vm5 = vcmp.lt.s32.totalorder %v8409_v22, 0  ;;  %vm4504_vm13 = vcmp.ne.s32.totalorder %v8448_v59, 0 }
 0x1db   : > { %9585 = vst [vmem:[#allocation81_spill] sm:$0xff] %v8488_v52  ;;  %vm8506_vm8 = vmand %vm9592_vm5, %vm9591_vm15  ;;  %v4398_v2 = vshrl.u32 %v8413_v20, 4  ;;  %v8514_v54 = vadd.f32 %v6162_v12, %v2720_v31  ;;  %v2719_v57 = vadd.f32 %v2676_v32, %v9596_v11  ;;  %vm9597_vm0 = vcmp.ne.s32.totalorder %v8425_v51, 0  ;;  %v6167_v47 = vpop.f32.mrf.mxu1  ;;  %v6223_v3 = vpop.f32.mrf.mxu0  ;;  %v9601_v20 = vld [vmem:[#allocation15_spill] sm:$0xff] }
 0x1dc   : > { %vm9598_vm10 = vcmp.lt.s32.totalorder %v8425_v51, 0  ;;  %v4410_v34 = vmul.u32 18, %v4409_v25  ;;  %v9602_v0 = vsel %vm7844_vm14, %v7798_v40, %v9601_v20  ;;  %v9606_v61 = vsel %vm7861_vm1, %v7803_v56, %v7772_v13  ;;  %v9615_v56 = vld [vmem:[#allocation20_spill] sm:$0xff] }
 0x1dd   : > { %9595 = vst [vmem:[#allocation17_spill] sm:$0xff] %v8514_v54  ;;  %vm8521_vm5 = vmand %vm9598_vm10, %vm9597_vm0  ;;  %vm8531_vm2 = vcmp.lt.s32.totalorder %v9602_v0, 16  ;;  %vm8540_vm10 = vcmp.lt.s32.totalorder %v9606_v61, 16  ;;  %vm9609_vm0 = vcmp.ne.s32.totalorder %v8434_v28, 0  ;;  %vm9610_vm15 = vcmp.lt.s32.totalorder %v8434_v28, 0 }
 0x1de   : > { %vm8548_vm12 = vmand %vm9610_vm15, %vm9609_vm0  ;;  %v8553_v40 = vadd.s32 18, %v8434_v28  ;;  %v8556_v25 = vadd.s32 18, %v8448_v59  ;;  %v8560_v13 = vadd.f32 %v3106_v24, %v2719_v57  ;;  %v3546_v31 = vadd.f32 %v6167_v47, %v9615_v56  ;;  %v3366_v24 = vpop.f32.mrf.mxu1  ;;  %v3796_v57 = vpop.f32.mrf.mxu0  ;;  %v9638_v47 = vld [vmem:[#allocation23_spill] sm:$0xff] }
 0x1df   : > { %vm9616_vm15 = vcmp.lt.s32.totalorder %v8448_v59, 0  ;;  %v9617_v11 = vmov 0  ;;  %v8576_v20 = vadd.s32 18, %v8451_v5  ;;  %vm9621_vm1 = vcmp.ne.s32.totalorder %v8451_v5, 0  ;;  %v9662_v59 = vld [vmem:[#allocation40_spill] sm:$0xff] }
 0x1e0   : > { %9613 = vst [vmem:[#allocation18_spill] sm:$0xff] %v8556_v25  ;;  %9614 = vst [vmem:[#allocation15_spill] sm:$0xff] %v8560_v13  ;;  %vm9622_vm14 = vcmp.lt.s32.totalorder %v8451_v5, 0  ;;  %v9623_v0 = vmov 0  ;;  %v8591_v12 = vadd.s32 18, %v8486_v10  ;;  %v4399_v61 = vmul.u32 18, %v4398_v2  ;;  %v6170_v43 = vpop.f32.mrf.mxu1 }
 0x1e1   : > { %vm8571_vm0 = vmand %vm9616_vm15, %vm4504_vm13  ;;  %9620 = vst [vmem:[#allocation20_spill] sm:$0xff] %v8576_v20  ;;  %v8594_v56 = vadd.s32 248, %v7621_v38  ;;  %v3976_v32 = vadd.f32 %v6223_v3, %v3546_v31  ;;  %v9627_v13 = vld [vmem:[#allocation22_spill] sm:$0xff]  ;;  %vm9628_vm13 = vcmp.ne.s32.totalorder %v8486_v10, 0  ;;  %v9630_v52 = vmov 0  ;;  %v6226_v3 = vpop.f32.mrf.mxu0  ;;  %v9648_v5 = vld [vmem:[#allocation21_spill] sm:$0xff] }
 0x1e2   : > { %v9618_v11 = vsel %vm8571_vm0, 4294967295, %v9617_v11  ;;  %vm8586_vm9 = vmand %vm9622_vm14, %vm9621_vm1  ;;  %9626 = vst [vmem:[#allocation83_spill] sm:$0xff] %v8591_v12  ;;  %v3545_v54 = vadd.f32 %v3366_v24, %v9627_v13  ;;  %vm9629_vm14 = vcmp.lt.s32.totalorder %v8486_v10, 0  ;;  %v8610_v2 = vsub.s32 %v8370_v35, %v4410_v34  ;;  %v9643_v34 = vld [vmem:[#allocation24_spill] sm:$0xff]  ;;  %v3376_v24 = vpop.f32.mrf.mxu1  ;;  %v9647_v12 = vld [vmem:[#allocation29_spill] sm:$0xff] }
 0x1e3   : > { %9619 = vst [vmem:[#allocation25_spill] sm:$0xff] %v9618_v11  ;;  %v9624_v0 = vsel %vm8586_vm9, 4294967295, %v9623_v0  ;;  %vm8605_vm1 = vmand %vm9629_vm14, %vm9628_vm13  ;;  %v9634_v13 = vsel %vm7871_vm3, %v7835_v37, %v7775_v9  ;;  %v9640_v1 = vsel %vm7890_vm6, %v9638_v47, %v9639_v62  ;;  %v8643_v35 = vadd.s32 240, %v7621_v38  ;;  %v3806_v37 = vpop.f32.mrf.mxu0  ;;  %v9663_v25 = vld [vmem:[#allocation35_spill] sm:$0xff] }
 0x1e4   : > { %9625 = vst [vmem:[#allocation82_spill] sm:$0xff] %v9624_v0  ;;  %v9631_v52 = vsel %vm8605_vm1, 4294967295, %v9630_v52  ;;  %9633 = vst [vmem:[#allocation84_spill] sm:$0xff] %v8610_v2  ;;  %vm8617_vm15 = vcmp.lt.s32.totalorder %v9634_v13, 16  ;;  %vm8626_vm13 = vcmp.lt.s32.totalorder %v9640_v1, 16  ;;  %v4769_v1 = vsel %vm8441_vm7, %v3976_v32, 0.0  ;;  %v6173_v10 = vpop.f32.mrf.mxu1 }
 0x1e5   : > { %9632 = vst [vmem:[#allocation22_spill] sm:$0xff] %v9631_v52  ;;  %4012 = vst [vmem:[%s8647_s10 + $0x8] sm:$0xff] %v3976_v32  ;;  %v3975_v62 = vadd.f32 %v3796_v57, %v3545_v54  ;;  %v3548_v47 = vadd.f32 %v6170_v43, %v9643_v34  ;;  %v8662_v30 = vsub.s32 %v8391_v58, %v4399_v61  ;;  %v9644_v57 = vld [vmem:[#allocation27_spill] sm:$0xff]  ;;  %vm4509_vm3 = vcmp.ne.s32.totalorder %v8610_v2, 0  ;;  %v6229_v58 = vpop.f32.mrf.mxu0 }
 0x1e6   : > { %v8665_v44 = vmul.u32.u64.low 3817748708, %v8594_v56  ;;  %v8666_v54 = vmul.u32.u64.high 3817748708, %v8594_v56, %v8665_v44  ;;  %v3547_v34 = vadd.f32 %v3376_v24, %v9644_v57  ;;  %v4847_v13 = vmul.f32 %v4769_v1, %v4769_v1  ;;  %v9645_v61 = vld [vmem:[#allocation31_spill] sm:$0xff]  ;;  %v3386_v57 = vpop.f32.mrf.mxu1 }
 0x1e7   : > { %4011 = vst [vmem:[%s8647_s10] sm:$0xff] %v3975_v62  ;;  %v4768_v43 = vsel %vm8468_vm4, %v3975_v62, 0.0  ;;  %v3978_v32 = vadd.f32 %v6226_v3, %v3548_v47  ;;  %vm9646_vm6 = vnez %v9645_v61  ;;  %vm9652_vm4 = vnez %v9475_v45  ;;  %v9654_v3 = vld [vmem:[#allocation26_spill] sm:$0xff]  ;;  %v3816_v61 = vpop.f32.mrf.mxu0 }
 0x1e8   : > { %v4804_v52 = vadd.f32 %v4769_v1, %v4768_v43  ;;  %v4846_v9 = vmul.f32 %v4768_v43, %v4768_v43  ;;  %v9649_v44 = vsel %vm9646_vm6, %v9647_v12, %v9648_v5  ;;  %v9655_v62 = vsel %vm9652_vm4, %v9653_v23, %v9654_v3  ;;  %v9658_v43 = vld [vmem:[#allocation30_spill] sm:$0xff]  ;;  %v9660_v3 = vld [vmem:[#allocation32_spill] sm:$0xff] }
 0x1e9   : > { %vm8678_vm7 = vcmp.lt.s32.totalorder %v9649_v44, 16  ;;  %vm8687_vm14 = vcmp.lt.s32.totalorder %v9655_v62, 16  ;;  %v8692_v47 = vadd.s32 264, %v7621_v38  ;;  %4014 = vst [vmem:[%s8647_s10 + $0x18] sm:$0xff] %v3978_v32  ;;  %v3977_v24 = vadd.f32 %v3806_v37, %v3547_v34  ;;  %v6232_v0 = vpop.f32.mrf.mxu0  ;;  %v9743_v1 = vld [vmem:[#allocation10_spill] sm:$0xff] }
 0x1ea   : > { %v3550_v5 = vadd.f32 %v6173_v10, %v9658_v43  ;;  %v8698_v12 = vadd.s32 18, %v8610_v2  ;;  %v4882_v45 = vadd.f32 %v4847_v13, %v4846_v9  ;;  %v4771_v37 = vsel %vm8531_vm2, %v3978_v32, 0.0  ;;  %v6176_v43 = vpop.f32.mrf.mxu1  ;;  %v9667_v32 = vld [vmem:[#allocation49_spill] sm:$0xff] }
 0x1eb   : > { %v8702_v44 = vmul.u32.u64.low 3817748708, %v8643_v35  ;;  %v8703_v23 = vmul.u32.u64.high 3817748708, %v8643_v35, %v8702_v44  ;;  %4013 = vst [vmem:[%s8647_s10 + $0x10] sm:$0xff] %v3977_v24  ;;  %v4770_v10 = vsel %vm8540_vm10, %v3977_v24, 0.0  ;;  %v3549_v62 = vadd.f32 %v3386_v57, %v9660_v3 }
 0x1ec   : > { %9659 = vst [vmem:[#allocation28_spill] sm:$0xff] %v8698_v12  ;;  %v3980_v34 = vadd.f32 %v6229_v58, %v3550_v5  ;;  %v4805_v9 = vadd.f32 %v4804_v52, %v4770_v10  ;;  %v4848_v13 = vmul.f32 %v4770_v10, %v4770_v10  ;;  %vm9661_vm4 = vnez %v9489_v60  ;;  %v3396_v57 = vpop.f32.mrf.mxu1  ;;  %v3826_v44 = vpop.f32.mrf.mxu0  ;;  %v9700_v12 = vld [vmem:[#allocation44_spill] sm:$0xff]  ;;  %v9715_v52 = vld [vmem:[#allocation70_spill] sm:$0xff] }
 0x1ed   : > { %v9664_v11 = vsel %vm9661_vm4, %v9662_v59, %v9663_v25  ;;  %vm9668_vm2 = vnez %v9667_v32  ;;  %v8730_v58 = vmul.u32.u64.low 3817748708, %v8692_v47  ;;  %v8731_v60 = vmul.u32.u64.high 3817748708, %v8692_v47, %v8730_v58  ;;  %v9672_v25 = vld [vmem:[#allocation34_spill] sm:$0xff] }
 0x1ee   : > { %vm8716_vm6 = vcmp.lt.s32.totalorder %v9664_v11, 16  ;;  %v9669_v15 = vsel %vm9668_vm2, %v8029_v63, %v7961_v42  ;;  %4016 = vst [vmem:[%s8647_s10 + $0x28] sm:$0xff] %v3980_v34  ;;  %v3979_v59 = vadd.f32 %v3816_v61, %v3549_v62  ;;  %v3552_v11 = vadd.f32 %v6176_v43, %v9672_v25  ;;  %v9673_v43 = vld [vmem:[#allocation36_spill] sm:$0xff]  ;;  %v6179_v31 = vpop.f32.mrf.mxu1 }
 0x1ef   : > { %vm8725_vm10 = vcmp.lt.s32.totalorder %v9669_v15, 16  ;;  %v8738_v24 = vadd.s32 256, %v7621_v38  ;;  %v4849_v5 = vmul.f32 %v4771_v37, %v4771_v37  ;;  %v4883_v42 = vadd.f32 %v4882_v45, %v4848_v13  ;;  %v9680_v15 = vld [vmem:[#allocation39_spill] sm:$0xff]  ;;  %v9686_v25 = vld [vmem:[#allocation48_spill] sm:$0xff] }
 0x1f0   : > { %v4806_v63 = vadd.f32 %v4805_v9, %v4771_v37  ;;  %v8741_v10 = vadd.s32 18, %v8662_v30  ;;  %v4773_v3 = vsel %vm8617_vm15, %v3980_v34, 0.0  ;;  %4015 = vst [vmem:[%s8647_s10 + $0x20] sm:$0xff] %v3979_v59  ;;  %v4772_v61 = vsel %vm8626_vm13, %v3979_v59, 0.0  ;;  %v6235_v34 = vpop.f32.mrf.mxu0  ;;  %v9684_v59 = vld [vmem:[#allocation52_spill] sm:$0xff]  ;;  %v3406_v28 = vpop.f32.mrf.mxu1 }
 0x1f1   : > { %v3982_v62 = vadd.f32 %v6232_v0, %v3552_v11  ;;  %v3551_v32 = vadd.f32 %v3396_v57, %v9673_v43  ;;  %vm9674_vm2 = vcmp.lt.s32.totalorder %v8610_v2, 0  ;;  %v9675_v45 = vmov 0  ;;  %v9687_v11 = vld [vmem:[#allocation42_spill] sm:$0xff] }
 0x1f2   : > { %vm8753_vm4 = vmand %vm9674_vm2, %vm4509_vm3  ;;  %v4807_v37 = vadd.f32 %v4806_v63, %v4772_v61  ;;  %v4850_v9 = vmul.f32 %v4772_v61, %v4772_v61  ;;  %v4884_v13 = vadd.f32 %v4883_v42, %v4849_v5  ;;  %vm9678_vm15 = vnez %v9498_v18  ;;  %v9691_v42 = vld [vmem:[#allocation37_spill] sm:$0xff]  ;;  %v9699_v2 = vld [vmem:[#allocation50_spill] sm:$0xff] }
 0x1f3   : > { %v9676_v45 = vsel %vm8753_vm4, 4294967295, %v9675_v45  ;;  %v9681_v0 = vsel %vm9678_vm15, %v9679_v29, %v9680_v15  ;;  %vm9685_vm3 = vnez %v9684_v59  ;;  %v4431_v5 = vshrl.u32 %v8666_v54, 4  ;;  %4018 = vst [vmem:[%s8647_s10 + $0x38] sm:$0xff] %v3982_v62  ;;  %v9697_v54 = vld [vmem:[#allocation54_spill] sm:$0xff]  ;;  %v9729_v63 = vld [vmem:[#allocation73_spill] sm:$0xff] }
 0x1f4   : > { %9677 = vst [vmem:[#allocation23_spill] sm:$0xff] %v9676_v45  ;;  %vm8762_vm13 = vcmp.lt.s32.totalorder %v9681_v0, 16  ;;  %v9688_v57 = vsel %vm9685_vm3, %v9686_v25, %v9687_v11  ;;  %v3981_v18 = vadd.f32 %v3826_v44, %v3551_v32  ;;  %v3554_v61 = vadd.f32 %v6179_v31, %v9691_v42  ;;  %v3836_v25 = vpop.f32.mrf.mxu0  ;;  %v6182_v42 = vpop.f32.mrf.mxu1 }
 0x1f5   : > { %vm8771_vm2 = vcmp.lt.s32.totalorder %v9688_v57, 16  ;;  %v8779_v43 = vmul.u32.u64.low 3817748708, %v8738_v24  ;;  %v8780_v29 = vmul.u32.u64.high 3817748708, %v8738_v24, %v8779_v43  ;;  %v4851_v15 = vmul.f32 %v4773_v3, %v4773_v3 }
 0x1f6   : > { %v4885_v0 = vadd.f32 %v4884_v13, %v4850_v9  ;;  %v4808_v59 = vadd.f32 %v4807_v37, %v4773_v3  ;;  %vm9692_vm15 = vcmp.ne.s32.totalorder %v8662_v30, 0  ;;  %vm9693_vm3 = vcmp.lt.s32.totalorder %v8662_v30, 0  ;;  %4017 = vst [vmem:[%s8647_s10 + $0x30] sm:$0xff] %v3981_v18  ;;  %v9696_v9 = vld [vmem:[#allocation38_spill] sm:$0xff]  ;;  %v6238_v43 = vpop.f32.mrf.mxu0 }
 0x1f7   : > { %vm8791_vm1 = vmand %vm9693_vm3, %vm9692_vm15  ;;  %v4775_v32 = vsel %vm8678_vm7, %v3982_v62, 0.0  ;;  %v4774_v3 = vsel %vm8687_vm14, %v3981_v18, 0.0  ;;  %v3984_v37 = vadd.f32 %v6235_v34, %v3554_v61  ;;  %v3553_v13 = vadd.f32 %v3406_v28, %v9696_v9  ;;  %v9708_v18 = vld [vmem:[#allocation41_spill] sm:$0xff] }
 0x1f8   : > { %v4809_v31 = vadd.f32 %v4808_v59, %v4774_v3  ;;  %v4852_v11 = vmul.f32 %v4774_v3, %v4774_v3  ;;  %v4886_v57 = vadd.f32 %v4885_v0, %v4851_v15  ;;  %vm9698_vm15 = vnez %v9697_v54  ;;  %v3846_v15 = vpop.f32.mrf.mxu0  ;;  %v9709_v54 = vld [vmem:[#allocation43_spill] sm:$0xff] }
 0x1f9   : > { %v9701_v45 = vsel %vm9698_vm15, %v9699_v2, %v9700_v12  ;;  %vm9704_vm7 = vnez %v9525_v8  ;;  %v4432_v62 = vmul.u32 18, %v4431_v5  ;;  %4020 = vst [vmem:[%s8647_s10 + $0x48] sm:$0xff] %v3984_v37  ;;  %v3983_v34 = vadd.f32 %v3836_v25, %v3553_v13 }
 0x1fa   : > { %vm8806_vm3 = vcmp.lt.s32.totalorder %v9701_v45, 16  ;;  %v9705_v28 = vsel %vm9704_vm7, %v8160_v16, %v8109_v21  ;;  %v3556_v61 = vadd.f32 %v6182_v42, %v9708_v18  ;;  %v4652_v2 = vsel %vm8791_vm1, %v8741_v10, %v8662_v30  ;;  %v3416_v16 = vpop.f32.mrf.mxu1 }
 0x1fb   : > { %vm8815_vm14 = vcmp.lt.s32.totalorder %v9705_v28, 16  ;;  %v8826_v12 = vadd.s32 280, %v7621_v38  ;;  %v4853_v8 = vmul.f32 %v4775_v32, %v4775_v32  ;;  %v4887_v45 = vadd.f32 %v4886_v57, %v4852_v11  ;;  %4019 = vst [vmem:[%s8647_s10 + $0x40] sm:$0xff] %v3983_v34  ;;  %v9720_v28 = vld [vmem:[#allocation45_spill] sm:$0xff] }
 0x1fc   : > { %v4810_v21 = vadd.f32 %v4809_v31, %v4775_v32  ;;  %v4420_v5 = vshrl.u32 %v8703_v23, 4  ;;  %v4777_v0 = vsel %vm8716_vm6, %v3984_v37, 0.0  ;;  %v4776_v59 = vsel %vm8725_vm10, %v3983_v34, 0.0  ;;  %v6185_v11 = vpop.f32.mrf.mxu1  ;;  %v6241_v32 = vpop.f32.mrf.mxu0  ;;  %v9711_v23 = vld [vmem:[#allocation55_spill] sm:$0xff] }
 0x1fd   : > { %v3986_v25 = vadd.f32 %v6238_v43, %v3556_v61  ;;  %v3555_v3 = vadd.f32 %v3416_v16, %v9709_v54  ;;  %v4854_v13 = vmul.f32 %v4776_v59, %v4776_v59  ;;  %v4888_v42 = vadd.f32 %v4887_v45, %v4853_v8 }
 0x1fe   : > { %v4811_v9 = vadd.f32 %v4810_v21, %v4776_v59  ;;  %vm9710_vm15 = vnez %v9531_v36  ;;  %vm9716_vm6 = vnez %v9715_v52  ;;  %v8854_v43 = vsub.s32 %v8594_v56, %v4432_v62 }
 0x1ff   : > { %v9712_v31 = vsel %vm9710_vm15, %v8177_v48, %v9711_v23  ;;  %v9717_v37 = vsel %vm9716_vm6, %v8191_v55, %v8149_v7  ;;  %4022 = vst [vmem:[%s8647_s10 + $0x58] sm:$0xff] %v3986_v25  ;;  %v3985_v36 = vadd.f32 %v3846_v15, %v3555_v3  ;;  %v3558_v48 = vadd.f32 %v6185_v11, %v9720_v28  ;;  %v3426_v7 = vpop.f32.mrf.mxu1  ;;  %v3856_v55 = vpop.f32.mrf.mxu0  ;;  %v9721_v15 = vld [vmem:[#allocation47_spill] sm:$0xff] }
 0x200   : > { %vm8840_vm7 = vcmp.lt.s32.totalorder %v9712_v31, 16  ;;  %vm8849_vm10 = vcmp.lt.s32.totalorder %v9717_v37, 16  ;;  %v8859_v34 = vmul.u32.u64.low 3817748708, %v8826_v12  ;;  %v8860_v18 = vmul.u32.u64.high 3817748708, %v8826_v12, %v8859_v34  ;;  %v9736_v28 = vld [vmem:[#allocation51_spill] sm:$0xff] }
 0x201   : > { %v4855_v61 = vmul.f32 %v4777_v0, %v4777_v0  ;;  %v4889_v8 = vadd.f32 %v4888_v42, %v4854_v13  ;;  %v4812_v45 = vadd.f32 %v4811_v9, %v4777_v0  ;;  %v4421_v21 = vmul.u32 18, %v4420_v5  ;;  %4021 = vst [vmem:[%s8647_s10 + $0x50] sm:$0xff] %v3985_v36  ;;  %v6188_v23 = vpop.f32.mrf.mxu1  ;;  %v6244_v13 = vpop.f32.mrf.mxu0  ;;  %v9722_v0 = vld [vmem:[#allocation72_spill] sm:$0xff]  ;;  %v9724_v9 = vld [vmem:[#allocation62_spill] sm:$0xff]  ;;  %v9725_v42 = vld [vmem:[#allocation57_spill] sm:$0xff] }
 0x202   : > { %v4779_v56 = vsel %vm8762_vm13, %v3986_v25, 0.0  ;;  %v4778_v62 = vsel %vm8771_vm2, %v3985_v36, 0.0  ;;  %v3988_v16 = vadd.f32 %v6241_v32, %v3558_v48  ;;  %v3557_v59 = vadd.f32 %v3426_v7, %v9721_v15  ;;  %v9731_v25 = vld [vmem:[#allocation65_spill] sm:$0xff]  ;;  %v9732_v32 = vld [vmem:[#allocation60_spill] sm:$0xff] }
 0x203   : > { %v4813_v54 = vadd.f32 %v4812_v45, %v4778_v62  ;;  %v4856_v3 = vmul.f32 %v4778_v62, %v4778_v62  ;;  %v4890_v11 = vadd.f32 %v4889_v8, %v4855_v61  ;;  %vm9723_vm15 = vnez %v9722_v0  ;;  %v3436_v7 = vpop.f32.mrf.mxu1  ;;  %v3866_v62 = vpop.f32.mrf.mxu0 }
 0x204   : > { %v9726_v5 = vsel %vm9723_vm15, %v9724_v9, %v9725_v42  ;;  %vm9730_vm13 = vnez %v9729_v63  ;;  %v8888_v37 = vadd.s32 272, %v7621_v38  ;;  %4024 = vst [vmem:[%s8647_s10 + $0x68] sm:$0xff] %v3988_v16  ;;  %v3987_v36 = vadd.f32 %v3856_v55, %v3557_v59 }
 0x205   : > { %vm8874_vm6 = vcmp.lt.s32.totalorder %v9726_v5, 16  ;;  %v9733_v31 = vsel %vm9730_vm13, %v9731_v25, %v9732_v32  ;;  %v3560_v48 = vadd.f32 %v6188_v23, %v9736_v28  ;;  %v4453_v34 = vshrl.u32 %v8731_v60, 4  ;;  %v9737_v23 = vld [vmem:[#allocation53_spill] sm:$0xff]  ;;  %v9750_v5 = vld [vmem:[#allocation56_spill] sm:$0xff] }
 0x206   : > { %vm8883_vm2 = vcmp.lt.s32.totalorder %v9733_v31, 16  ;;  %v4857_v61 = vmul.f32 %v4779_v56, %v4779_v56  ;;  %v4891_v8 = vadd.f32 %v4890_v11, %v4856_v3  ;;  %v4814_v45 = vadd.f32 %v4813_v54, %v4779_v56  ;;  %4023 = vst [vmem:[%s8647_s10 + $0x60] sm:$0xff] %v3987_v36  ;;  %v6191_v56 = vpop.f32.mrf.mxu1  ;;  %v6247_v54 = vpop.f32.mrf.mxu0  ;;  %v9746_v11 = vld [vmem:[#allocation68_spill] sm:$0xff] }
 0x207   : > { %v8895_v15 = vsub.s32 %v8643_v35, %v4421_v21  ;;  %v4781_v38 = vsel %vm8806_vm3, %v3988_v16, 0.0  ;;  %v4780_v55 = vsel %vm8815_vm14, %v3987_v36, 0.0  ;;  %v3990_v59 = vadd.f32 %v6244_v13, %v3560_v48  ;;  %v9739_v35 = vld [vmem:[#allocation63_spill] sm:$0xff] }
 0x208   : > { %v3559_v0 = vadd.f32 %v3436_v7, %v9737_v23  ;;  %v4815_v60 = vadd.f32 %v4814_v45, %v4780_v55  ;;  %v4858_v9 = vmul.f32 %v4780_v55, %v4780_v55  ;;  %v4892_v3 = vadd.f32 %v4891_v8, %v4857_v61  ;;  %v9745_v16 = vld [vmem:[#allocation75_spill] sm:$0xff]  ;;  %v3446_v28 = vpop.f32.mrf.mxu1  ;;  %v3876_v48 = vpop.f32.mrf.mxu0  ;;  %v9751_v7 = vld [vmem:[#allocation58_spill] sm:$0xff] }
 0x209   : > { %vm9738_vm13 = vnez %v9552_v39  ;;  %vm9744_vm3 = vnez %v9743_v1  ;;  %vm4547_vm1 = vcmp.lt.s32.totalorder %v8854_v43, 0  ;;  %4026 = vst [vmem:[%s8647_s10 + $0x78] sm:$0xff] %v3990_v59  ;;  %v8925_v63 = vadd.s32 18, %v8854_v43 }
 0x20a   : > { %v9740_v21 = vsel %vm9738_vm13, %v8291_v27, %v9739_v35  ;;  %v9747_v13 = vsel %vm9744_vm3, %v9745_v16, %v9746_v11  ;;  %v3989_v39 = vadd.f32 %v3866_v62, %v3559_v0  ;;  %v3562_v27 = vadd.f32 %v6191_v56, %v9750_v5  ;;  %v6194_v0 = vpop.f32.mrf.mxu1 }
 0x20b   : > { %vm8908_vm15 = vcmp.lt.s32.totalorder %v9740_v21, 16  ;;  %vm8917_vm14 = vcmp.lt.s32.totalorder %v9747_v13, 16  ;;  %v4454_v25 = vmul.u32 18, %v4453_v34  ;;  %v4859_v32 = vmul.f32 %v4781_v38, %v4781_v38  ;;  %v9763_v13 = vld [vmem:[#allocation61_spill] sm:$0xff] }
 0x20c   : > { %v4893_v31 = vadd.f32 %v4892_v3, %v4858_v9  ;;  %v4816_v36 = vadd.f32 %v4815_v60, %v4781_v38  ;;  %v4783_v61 = vsel %vm8840_vm7, %v3990_v59, 0.0  ;;  %4025 = vst [vmem:[%s8647_s10 + $0x70] sm:$0xff] %v3989_v39  ;;  %v4782_v8 = vsel %vm8849_vm10, %v3989_v39, 0.0  ;;  %v6250_v38 = vpop.f32.mrf.mxu0  ;;  %v9759_v9 = vld [vmem:[#allocation59_spill] sm:$0xff]  ;;  %v3456_v35 = vpop.f32.mrf.mxu1 }
 0x20d   : > { %v3992_v45 = vadd.f32 %v6247_v54, %v3562_v27  ;;  %v3561_v62 = vadd.f32 %v3446_v28, %v9751_v7  ;;  %v4860_v34 = vmul.f32 %v4782_v8, %v4782_v8  ;;  %vm9752_vm3 = vnez %v9583_v19  ;;  %v9796_v59 = vld [vmem:[#allocation83_spill] sm:$0xff] }
 0x20e   : > { %v4817_v55 = vadd.f32 %v4816_v36, %v4782_v8  ;;  %v4894_v23 = vadd.f32 %v4893_v31, %v4859_v32  ;;  %v9753_v60 = vsel %vm9752_vm3, %v8420_v46, %v8377_v14  ;;  %v9756_v57 = vsel %vm8495_vm11, %v8431_v41, %v8402_v33  ;;  %v3886_v21 = vpop.f32.mrf.mxu0  ;;  %v6197_v58 = vpop.f32.mrf.mxu1 }
 0x20f   : > { %vm8939_vm13 = vcmp.lt.s32.totalorder %v9753_v60, 16  ;;  %vm8948_vm7 = vcmp.lt.s32.totalorder %v9756_v57, 16  ;;  %4028 = vst [vmem:[%s8647_s10 + $0x88] sm:$0xff] %v3992_v45  ;;  %v3991_v19 = vadd.f32 %v3876_v48, %v3561_v62  ;;  %v3564_v14 = vadd.f32 %v6194_v0, %v9759_v9 }
 0x210   : > { %v8956_v46 = vmul.u32.u64.low 3817748708, %v8888_v37  ;;  %v8957_v3 = vmul.u32.u64.high 3817748708, %v8888_v37, %v8956_v46  ;;  %v4861_v56 = vmul.f32 %v4783_v61, %v4783_v61  ;;  %v4895_v54 = vadd.f32 %v4894_v23, %v4860_v34  ;;  %v6253_v36 = vpop.f32.mrf.mxu0  ;;  %v3466_v62 = vpop.f32.mrf.mxu1 }
 0x211   : > { %v4818_v4 = vadd.f32 %v4817_v55, %v4783_v61  ;;  %vm9760_vm11 = vcmp.ne.s32.totalorder %v8854_v43, 0  ;;  %v8968_v41 = vadd.s32 18, %v8895_v15  ;;  %v4785_v1 = vsel %vm8874_vm6, %v3992_v45, 0.0  ;;  %4027 = vst [vmem:[%s8647_s10 + $0x80] sm:$0xff] %v3991_v19  ;;  %v9774_v45 = vld [vmem:[#allocation64_spill] sm:$0xff] }
 0x212   : > { %vm8963_vm3 = vmand %vm4547_vm1, %vm9760_vm11  ;;  %v4784_v16 = vsel %vm8883_vm2, %v3991_v19, 0.0  ;;  %v3994_v11 = vadd.f32 %v6250_v38, %v3564_v14  ;;  %v3563_v39 = vadd.f32 %v3456_v35, %v9763_v13  ;;  %vm9764_vm10 = vcmp.ne.s32.totalorder %v8895_v15, 0  ;;  %v3896_v55 = vpop.f32.mrf.mxu0  ;;  %v6200_v19 = vpop.f32.mrf.mxu1  ;;  %v9776_v14 = vld [vmem:[#allocation79_spill] sm:$0xff] }
 0x213   : > { %vm9765_vm1 = vcmp.lt.s32.totalorder %v8895_v15, 0  ;;  %v4819_v27 = vadd.f32 %v4818_v4, %v4784_v16  ;;  %v4862_v32 = vmul.f32 %v4784_v16, %v4784_v16  ;;  %v4896_v31 = vadd.f32 %v4895_v54, %v4861_v56  ;;  %v9781_v56 = vld [vmem:[#allocation18_spill] sm:$0xff]  ;;  %v9820_v35 = vld [vmem:[#allocation11_spill] sm:$0xff] }
 0x214   : > { %vm8980_vm11 = vmand %vm9765_vm1, %vm9764_vm10  ;;  %v9768_v52 = vsel %vm8506_vm8, %v8460_v50, %v8409_v22  ;;  %v9771_v48 = vsel %vm8521_vm5, %v8483_v6, %v8425_v51  ;;  %v4442_v8 = vshrl.u32 %v8780_v29, 4  ;;  %4030 = vst [vmem:[%s8647_s10 + $0x98] sm:$0xff] %v3994_v11  ;;  %v3993_v49 = vadd.f32 %v3886_v21, %v3563_v39  ;;  %v6256_v9 = vpop.f32.mrf.mxu0  ;;  %v9782_v54 = vld [vmem:[#allocation14_spill] sm:$0xff] }
 0x215   : > { %vm8989_vm6 = vcmp.lt.s32.totalorder %v9768_v52, 16  ;;  %vm8998_vm2 = vcmp.lt.s32.totalorder %v9771_v48, 16  ;;  %v3566_v22 = vadd.f32 %v6197_v58, %v9774_v45  ;;  %v4655_v50 = vsel %vm8963_vm3, %v8925_v63, %v8854_v43  ;;  %v9787_v52 = vld [vmem:[#allocation69_spill] sm:$0xff] }
 0x216   : > { %v9010_v53 = vsub.s32 %v8692_v47, %v4454_v25  ;;  %v4863_v7 = vmul.f32 %v4785_v1, %v4785_v1  ;;  %v4897_v51 = vadd.f32 %v4896_v31, %v4862_v32  ;;  %v4820_v6 = vadd.f32 %v4819_v27, %v4785_v1  ;;  %4029 = vst [vmem:[%s8647_s10 + $0x90] sm:$0xff] %v3993_v49  ;;  %v9775_v25 = vld [vmem:[#allocation66_spill] sm:$0xff]  ;;  %v9786_v1 = vld [vmem:[#allocation67_spill] sm:$0xff]  ;;  %v3476_v27 = vpop.f32.mrf.mxu1  ;;  %v3906_v32 = vpop.f32.mrf.mxu0 }
 0x217   : > { %v4654_v29 = vsel %vm8980_vm11, %v8968_v41, %v8895_v15  ;;  %v4787_v34 = vsel %vm8908_vm15, %v3994_v11, 0.0  ;;  %v4786_v23 = vsel %vm8917_vm14, %v3993_v49, 0.0  ;;  %v3996_v47 = vadd.f32 %v6253_v36, %v3566_v22 }
 0x218   : > { %v3565_v0 = vadd.f32 %v3466_v62, %v9775_v25  ;;  %v4821_v38 = vadd.f32 %v4820_v6, %v4786_v23  ;;  %v4864_v60 = vmul.f32 %v4786_v23, %v4786_v23  ;;  %v4898_v57 = vadd.f32 %v4897_v51, %v4863_v7  ;;  %v6203_v45 = vpop.f32.mrf.mxu1  ;;  %v6259_v22 = vpop.f32.mrf.mxu0  ;;  %v9789_v51 = vld [vmem:[#allocation20_spill] sm:$0xff]  ;;  %v9790_v6 = vld [vmem:[#allocation9_spill] sm:$0xff] }
 0x219   : > { %v9777_v46 = vsel %vm8548_vm12, %v8553_v40, %v9776_v14  ;;  %v9783_v4 = vsel %vm8571_vm0, %v9781_v56, %v9782_v54  ;;  %v4443_v21 = vmul.u32 18, %v4442_v8  ;;  %4032 = vst [vmem:[%s8647_s10 + $0xa8] sm:$0xff] %v3996_v47  ;;  %v3568_v16 = vadd.f32 %v6200_v19, %v9786_v1 }
 0x21a   : > { %vm9027_vm8 = vcmp.lt.s32.totalorder %v9777_v46, 16  ;;  %vm9036_vm5 = vcmp.lt.s32.totalorder %v9783_v4, 16  ;;  %v3995_v17 = vadd.f32 %v3896_v55, %v3565_v0  ;;  %vm4513_vm12 = vcmp.ne.s32.totalorder %v9010_v53, 0  ;;  %v9794_v55 = vld [vmem:[#allocation22_spill] sm:$0xff]  ;;  %v3486_v56 = vpop.f32.mrf.mxu1  ;;  %v3916_v54 = vpop.f32.mrf.mxu0 }
 0x21b   : > { %v4475_v40 = vshrl.u32 %v8860_v18, 4  ;;  %v4865_v11 = vmul.f32 %v4787_v34, %v4787_v34  ;;  %v4899_v13 = vadd.f32 %v4898_v57, %v4864_v60  ;;  %v4822_v39 = vadd.f32 %v4821_v38, %v4787_v34  ;;  %v9797_v34 = vld [vmem:[#allocation16_spill] sm:$0xff]  ;;  %v9801_v38 = vld [vmem:[#allocation71_spill] sm:$0xff] }
 0x21c   : > { %vm4549_vm0 = vcmp.lt.s32.totalorder %v9010_v53, 0  ;;  %v4789_v31 = vsel %vm8939_vm13, %v3996_v47, 0.0  ;;  %4031 = vst [vmem:[%s8647_s10 + $0xa0] sm:$0xff] %v3995_v17  ;;  %v4788_v58 = vsel %vm8948_vm7, %v3995_v17, 0.0  ;;  %v3998_v36 = vadd.f32 %v6256_v9, %v3568_v16 }
 0x21d   : > { %v3567_v48 = vadd.f32 %v3476_v27, %v9787_v52  ;;  %v4823_v8 = vadd.f32 %v4822_v39, %v4788_v58  ;;  %v4866_v18 = vmul.f32 %v4788_v58, %v4788_v58  ;;  %v4900_v49 = vadd.f32 %v4899_v13, %v4865_v11  ;;  %v9804_v11 = vld [vmem:[#allocation74_spill] sm:$0xff]  ;;  %v6206_v39 = vpop.f32.mrf.mxu1  ;;  %v6262_v27 = vpop.f32.mrf.mxu0  ;;  %v9807_v58 = vld [vmem:[#allocation84_spill] sm:$0xff] }
 0x21e   : > { %v9791_v62 = vsel %vm8586_vm9, %v9789_v51, %v9790_v6  ;;  %vm9795_vm14 = vnez %v9794_v55  ;;  %v9070_v25 = vadd.s32 18, %v9010_v53  ;;  %4034 = vst [vmem:[%s8647_s10 + $0xb8] sm:$0xff] %v3998_v36  ;;  %v3570_v60 = vadd.f32 %v6203_v45, %v9801_v38  ;;  %vm9078_vm9 = vmand %vm4549_vm0, %vm4513_vm12  ;;  %v9815_v6 = vld [vmem:[#allocation77_spill] sm:$0xff] }
 0x21f   : > { %vm9056_vm15 = vcmp.lt.s32.totalorder %v9791_v62, 16  ;;  %v9798_v23 = vsel %vm9795_vm14, %v9796_v59, %v9797_v34  ;;  %v3997_v0 = vadd.f32 %v3906_v32, %v3567_v48  ;;  %v9083_v19 = vsub.s32 %v8738_v24, %v4443_v21  ;;  %v9814_v48 = vld [vmem:[#allocation76_spill] sm:$0xff]  ;;  %v3496_v30 = vpop.f32.mrf.mxu1  ;;  %v3926_v10 = vpop.f32.mrf.mxu0 }
 0x220   : > { %vm9065_vm13 = vcmp.lt.s32.totalorder %v9798_v23, 16  ;;  %v4464_v9 = vshrl.u32 %v8957_v3, 4  ;;  %v4867_v14 = vmul.f32 %v4789_v31, %v4789_v31  ;;  %v4901_v46 = vadd.f32 %v4900_v49, %v4866_v18 }
 0x221   : > { %v4824_v42 = vadd.f32 %v4823_v8, %v4789_v31  ;;  %v4476_v4 = vmul.u32 18, %v4475_v40  ;;  %v4791_v17 = vsel %vm8989_vm6, %v3998_v36, 0.0  ;;  %4033 = vst [vmem:[%s8647_s10 + $0xb0] sm:$0xff] %v3997_v0  ;;  %v4790_v1 = vsel %vm8998_vm2, %v3997_v0, 0.0  ;;  %v9806_v31 = vld [vmem:[#allocation28_spill] sm:$0xff]  ;;  %v6209_v23 = vpop.f32.mrf.mxu1  ;;  %v6265_v0 = vpop.f32.mrf.mxu0 }
 0x222   : > { %v4000_v16 = vadd.f32 %v6259_v22, %v3570_v60  ;;  %v3569_v24 = vadd.f32 %v3486_v56, %v9804_v11  ;;  %v4868_v13 = vmul.f32 %v4790_v1, %v4790_v1  ;;  %v4902_v3 = vadd.f32 %v4901_v46, %v4867_v14  ;;  %v9821_v46 = vld [vmem:[#allocation12_spill] sm:$0xff] }
 0x223   : > { %v4825_v21 = vadd.f32 %v4824_v42, %v4790_v1  ;;  %v9808_v40 = vsel %vm8753_vm4, %v9806_v31, %v9807_v58  ;;  %vm9106_vm1 = vcmp.lt.s32.totalorder %v4652_v2, 16  ;;  %v4657_v36 = vsel %vm9078_vm9, %v9070_v25, %v9010_v53  ;;  %v3506_v41 = vpop.f32.mrf.mxu1  ;;  %v9825_v58 = vld [vmem:[#allocation78_spill] sm:$0xff] }
 0x224   : > { %vm9097_vm7 = vcmp.lt.s32.totalorder %v9808_v40, 16  ;;  %4036 = vst [vmem:[%s8647_s10 + $0xc8] sm:$0xff] %v4000_v16  ;;  %v3999_v52 = vadd.f32 %v3916_v54, %v3569_v24  ;;  %v3572_v8 = vadd.f32 %v6206_v39, %v9814_v48  ;;  %vm4512_vm4 = vcmp.ne.s32.totalorder %v9083_v19, 0 }
 0x225   : > { %v4465_v18 = vmul.u32 18, %v4464_v9  ;;  %v4869_v44 = vmul.f32 %v4791_v17, %v4791_v17  ;;  %v4903_v49 = vadd.f32 %v4902_v3, %v4868_v13  ;;  %v4826_v45 = vadd.f32 %v4825_v21, %v4791_v17 }
 0x226   : > { %v9118_v2 = vsub.s32 %v8826_v12, %v4476_v4  ;;  %v4793_v22 = vsel %vm9027_vm8, %v4000_v16, 0.0  ;;  %4035 = vst [vmem:[%s8647_s10 + $0xc0] sm:$0xff] %v3999_v52  ;;  %v4792_v7 = vsel %vm9036_vm5, %v3999_v52, 0.0  ;;  %v4002_v51 = vadd.f32 %v6262_v27, %v3572_v8  ;;  %v6212_v4 = vpop.f32.mrf.mxu1  ;;  %v9822_v16 = vld [vmem:[#allocation13_spill] sm:$0xff] }
 0x227   : > { %v3571_v62 = vadd.f32 %v3496_v30, %v9815_v6  ;;  %v4827_v55 = vadd.f32 %v4826_v45, %v4792_v7  ;;  %v4870_v59 = vmul.f32 %v4792_v7, %v4792_v7  ;;  %v4904_v34 = vadd.f32 %v4903_v49, %v4869_v44  ;;  %v9830_v45 = vld [vmem:[#allocation80_spill] sm:$0xff] }
 0x228   : > { %vm9131_vm6 = vcmp.lt.s32.totalorder %v4655_v50, 16  ;;  %vm9140_vm2 = vcmp.lt.s32.totalorder %v4654_v29, 16  ;;  %vm4548_vm8 = vcmp.lt.s32.totalorder %v9083_v19, 0  ;;  %4038 = vst [vmem:[%s8647_s10 + $0xd8] sm:$0xff] %v4002_v51  ;;  %v3574_v43 = vadd.f32 %v6209_v23, %v9820_v35  ;;  %v3936_v29 = vpop.f32.mrf.mxu0  ;;  %v3516_v13 = vpop.f32.mrf.mxu1 }
 0x229   : > { %v4001_v33 = vadd.f32 %v3926_v10, %v3571_v62  ;;  %v9148_v63 = vadd.s32 18, %v9083_v19  ;;  %v9151_v50 = vsub.s32 %v8888_v37, %v4465_v18  ;;  %v4871_v5 = vmul.f32 %v4793_v22, %v4793_v22  ;;  %vm9169_vm12 = vmand %vm4548_vm8, %vm4512_vm4 }
 0x22a   : > { %v4905_v38 = vadd.f32 %v4904_v34, %v4870_v59  ;;  %v4828_v15 = vadd.f32 %v4827_v55, %v4793_v22  ;;  %vm4515_vm3 = vcmp.ne.s32.totalorder %v9118_v2, 0  ;;  %v4795_v60 = vsel %vm9056_vm15, %v4002_v51, 0.0  ;;  %v6268_v17 = vpop.f32.mrf.mxu0  ;;  %v6215_v28 = vpop.f32.mrf.mxu1  ;;  %v9833_v59 = vld [vmem:[#allocation81_spill] sm:$0xff] }
 0x22b   : > { %4037 = vst [vmem:[%s8647_s10 + $0xd0] sm:$0xff] %v4001_v33  ;;  %v4794_v9 = vsel %vm9065_vm13, %v4001_v33, 0.0  ;;  %v4004_v14 = vadd.f32 %v6265_v0, %v3574_v43  ;;  %v3573_v42 = vadd.f32 %v3506_v41, %v9821_v46  ;;  %vm4551_vm11 = vcmp.lt.s32.totalorder %v9118_v2, 0  ;;  %v9839_v46 = vld [vmem:[#allocation15_spill] sm:$0xff] }
 0x22c   : > { %v4829_v37 = vadd.f32 %v4828_v15, %v4794_v9  ;;  %v4872_v56 = vmul.f32 %v4794_v9, %v4794_v9  ;;  %v4906_v54 = vadd.f32 %v4905_v38, %v4871_v5  ;;  %v3576_v26 = vadd.f32 %v6212_v4, %v9822_v16  ;;  %v3946_v3 = vpop.f32.mrf.mxu0  ;;  %vm9184_vm15 = vmand %vm4551_vm11, %vm4515_vm3  ;;  %v3526_v53 = vpop.f32.mrf.mxu1 }
 0x22d   : > { %4040 = vst [vmem:[%s8647_s10 + $0xe8] sm:$0xff] %v4004_v14  ;;  %v4003_v1 = vadd.f32 %v3936_v29, %v3573_v42  ;;  %v4623_v11 = vadd.s32 18, %v9118_v2  ;;  %vm4514_vm5 = vcmp.ne.s32.totalorder %v9151_v50, 0  ;;  %v4873_v47 = vmul.f32 %v4795_v60, %v4795_v60 }
 0x22e   : > { %v4907_v24 = vadd.f32 %v4906_v54, %v4872_v56  ;;  %v4830_v21 = vadd.f32 %v4829_v37, %v4795_v60  ;;  %vm4550_vm0 = vcmp.lt.s32.totalorder %v9151_v50, 0  ;;  %v4797_v27 = vsel %vm9097_vm7, %v4004_v14, 0.0  ;;  %v6271_v44 = vpop.f32.mrf.mxu0  ;;  %v6218_v35 = vpop.f32.mrf.mxu1 }
 0x22f   : > { %4039 = vst [vmem:[%s8647_s10 + $0xe0] sm:$0xff] %v4003_v1  ;;  %v4796_v32 = vsel %vm9106_vm1, %v4003_v1, 0.0  ;;  %v4006_v31 = vadd.f32 %v6268_v17, %v3576_v26  ;;  %v3575_v40 = vadd.f32 %v3516_v13, %v9825_v58  ;;  %vm9193_vm14 = vcmp.lt.s32.totalorder %v4657_v36, 16  ;;  %vm9211_vm13 = vmand %vm4550_vm0, %vm4514_vm5 }
 0x230   : > { %v4831_v48 = vadd.f32 %v4830_v21, %v4796_v32  ;;  %v4874_v8 = vmul.f32 %v4796_v32, %v4796_v32  ;;  %v4908_v18 = vadd.f32 %v4907_v24, %v4873_v47  ;;  %v3578_v30 = vadd.f32 %v6215_v28, %v9830_v45  ;;  %v3956_v25 = vpop.f32.mrf.mxu0  ;;  %v3536_v60 = vpop.f32.mrf.mxu1 }
 0x231   : > { %4042 = vst [vmem:[%s8647_s10 + $0xf8] sm:$0xff] %v4006_v31  ;;  %v4005_v49 = vadd.f32 %v3946_v3, %v3575_v40  ;;  %v4656_v10 = vsel %vm9169_vm12, %v9148_v63, %v9083_v19  ;;  %v4622_v22 = vadd.s32 18, %v9151_v50  ;;  %v4875_v7 = vmul.f32 %v4797_v27, %v4797_v27  ;;  %v9836_v63 = vld [vmem:[#allocation17_spill] sm:$0xff] }
 0x232   : > { %v4909_v57 = vadd.f32 %v4908_v18, %v4874_v8  ;;  %v4832_v51 = vadd.f32 %v4831_v48, %v4797_v27  ;;  %v4659_v36 = vsel %vm9184_vm15, %v4623_v11, %v9118_v2  ;;  %v4799_v19 = vsel %vm9131_vm6, %v4006_v31, 0.0  ;;  %v6274_v12 = vpop.f32.mrf.mxu0 }
 0x233   : > { %4041 = vst [vmem:[%s8647_s10 + $0xf0] sm:$0xff] %v4005_v49  ;;  %v4798_v62 = vsel %vm9140_vm2, %v4005_v49, 0.0  ;;  %v4008_v55 = vadd.f32 %v6271_v44, %v3578_v30  ;;  %v3577_v2 = vadd.f32 %v3526_v53, %v9833_v59  ;;  %vm9221_vm9 = vcmp.lt.s32.totalorder %v4656_v10, 16 }
 0x234   : > { %v4833_v34 = vadd.f32 %v4832_v51, %v4798_v62  ;;  %v4876_v23 = vmul.f32 %v4798_v62, %v4798_v62  ;;  %v4910_v0 = vadd.f32 %v4909_v57, %v4875_v7  ;;  %v3580_v5 = vadd.f32 %v6218_v35, %v9836_v63  ;;  %v3966_v4 = vpop.f32.mrf.mxu0 }
 0x235   : > { %4044 = vst [vmem:[%s8647_s10 + $0x108] sm:$0xff] %v4008_v55  ;;  %v4007_v43 = vadd.f32 %v3956_v25, %v3577_v2  ;;  %v4658_v20 = vsel %vm9211_vm13, %v4622_v22, %v9151_v50  ;;  %v4877_v38 = vmul.f32 %v4799_v19, %v4799_v19  ;;  %vm9232_vm7 = vcmp.lt.s32.totalorder %v4659_v36, 16 }
 0x236   : > { %v4911_v15 = vadd.f32 %v4910_v0, %v4876_v23  ;;  %v4834_v41 = vadd.f32 %v4833_v34, %v4799_v19  ;;  %v4801_v9 = vsel %vm9193_vm14, %v4008_v55, 0.0  ;;  %v4010_v50 = vadd.f32 %v6274_v12, %v3580_v5 }
 0x237   : > { %4043 = vst [vmem:[%s8647_s10 + $0x100] sm:$0xff] %v4007_v43  ;;  %v4800_v14 = vsel %vm9221_vm9, %v4007_v43, 0.0  ;;  %v3579_v42 = vadd.f32 %v3536_v60, %v9839_v46  ;;  %vm4694_vm10 = vcmp.lt.s32.totalorder %v4658_v20, 16  ;;  %v4879_v1 = vmul.f32 %v4801_v9, %v4801_v9 }
 0x238   : > { %v4835_v37 = vadd.f32 %v4834_v41, %v4800_v14  ;;  %v4878_v56 = vmul.f32 %v4800_v14, %v4800_v14  ;;  %v4912_v54 = vadd.f32 %v4911_v15, %v4877_v38  ;;  %4046 = vst [vmem:[%s8647_s10 + $0x118] sm:$0xff] %v4010_v50  ;;  %v4803_v11 = vsel %vm9232_vm7, %v4010_v50, 0.0 }
 0x239   : > { %v4009_v17 = vadd.f32 %v3966_v4, %v3579_v42 }
 0x23a   : > { %v4913_v16 = vadd.f32 %v4912_v54, %v4878_v56  ;;  %v4836_v26 = vadd.f32 %v4835_v37, %v4801_v9 }
 0x23b   : > { %4045 = vst [vmem:[%s8647_s10 + $0x110] sm:$0xff] %v4009_v17  ;;  %v4802_v47 = vsel %vm4694_vm10, %v4009_v17, 0.0 }
 0x23c   : > { %v4837_v24 = vadd.f32 %v4836_v26, %v4802_v47  ;;  %v4880_v21 = vmul.f32 %v4802_v47, %v4802_v47  ;;  %v4914_v13 = vadd.f32 %v4913_v16, %v4879_v1 }
 0x23d   : > { %6416 = shalt.err (!%p6413_p3)
}
 0x23e   : > { %s6417_s5 = scalar_lea.hbm %s9248_s22, 4608  ;;  %s6421_s9 = scalar_lea.hbm %s9363_s2, 9216 }
 0x23f   : > { %p6418_p4 = scmp.ne.s32.totalorder %s9248_s22, %s6417_s5  ;;  %p6422_p9 = scmp.lt.s32.totalorder %s9248_s22, %s9363_s2 }
 0x240   : > { %p6423_p10 = scmp.lt.s32.totalorder %s6421_s9, %s6417_s5 }
 0x241   : > { %p6419_p7 = pnand %p6418_p4, %p6591_p5 }
 0x242   : > { %p6424_p11 = por %p6423_p10, %p6422_p9 }
 0x243   : > { %p6420_p8 = pneg %p6419_p7 }
 0x245   : > { %p6425_p12 = pnand %p6424_p11, %p6420_p8 }
 0x247   : > { %6428 = shalt.err (!%p6425_p12)
}
 0x248   : > { %s6522_s13 = smov 128   ;;  %s6523_s14 = smov 8   ;;  %v4881_v3 = vmul.f32 %v4803_v11, %v4803_v11  ;;  %v4838_v39 = vadd.f32 %v4837_v24, %v4803_v11  ;;  %v4915_v27 = vadd.f32 %v4914_v13, %v4880_v21 }
 0x249   : > { %6352 = dma.vmem_to_hbm [thread:$0]  (%p6591_p5), %s9242_s12, 4608, %s9248_s22, %s4925_s23, %s6522_s13, %s6522_s13, %s6523_s14  }
 0x24a   : > { %v4839_v32 = vrot.slane %v4838_v39, 4  ;;  %v4916_v31 = vadd.f32 %v4915_v27, %v4881_v3  ;;  %s4929_s27 = sand.u32 1, %s6572_s19   ;;  %s5434_s28 = sshll.u32 %s6572_s19, 4 }
 0x24b   : > { %s200_s29 = scalar_lea.vmem [#allocation4], %s8457_s8  ;;  %s206_s12 = scalar_lea.vmem [#allocation6], %s8457_s8 }
 0x24c   : > { %v4840_v58 = vadd.f32 %v4839_v32, %v4838_v39  ;;  %v4917_v40 = vrot.slane %v4916_v31, 4  ;;  %s4962_s30 = sshll.u32 %s200_s29, 4  ;;  %s4975_s22 = sshll.u32 %s206_s12, 4  ;;  %s9287_s30 = int_to_ptr.vmem [resolvable:$true] %s4962_s30  ;;  %s9294_s22 = int_to_ptr.vmem [resolvable:$true] %s4975_s22 }
 0x24d   : > { %s9285_s6 = scalar_lea.hbm %s9364_s3, %s5434_s28  ;;  %s9292_s9 = scalar_lea.hbm %s9365_s4, %s5434_s28 }
 0x24e   : > { %v4918_v52 = vadd.f32 %v4917_v40, %v4916_v31  ;;  %v4841_v48 = vrot.slane %v4840_v58, 2  ;;  %s9296_s10 = scalar_lea.sflag [#allocation5], %s4929_s27  ;;  %s6429_s11 = scalar_lea.vmem %s9287_s30, 16 }
 0x24f   : > { %p6430_p13 = scmp.ne.s32.totalorder %s9287_s30, %s6429_s11  ;;  %s6524_s13 = smov [#allocation4]  }
 0x250   : > { %v4919_v8 = vrot.slane %v4918_v52, 2  ;;  %v4842_v18 = vadd.f32 %v4841_v48, %v4840_v58  ;;  %s6433_s14 = sshll.u32 %s6524_s13, 4  ;;  %s6434_s14 = int_to_ptr.vmem [resolvable:$false] %s6433_s14 }
 0x251   : > { %p6431_p0 = pnand %p6430_p13, %p6591_p5  ;;  %s6435_s23 = scalar_lea.vmem %s6434_s14, 32 }
 0x252   : > { %v4843_v28 = vrot.slane %v4842_v18, 1  ;;  %v4920_v44 = vadd.f32 %v4919_v8, %v4918_v52  ;;  %p6436_p2 = scmp.lt.s32.totalorder %s9287_s30, %s6434_s14  ;;  %p6437_p3 = scmp.lt.s32.totalorder %s6435_s23, %s6429_s11 }
 0x253   : > { %p6432_p1 = pneg %p6431_p0 }
 0x254   : > { %v4844_v61 = vadd.f32 %v4843_v28, %v4842_v18  ;;  %v4921_v49 = vrot.slane %v4920_v44, 1  ;;  %p6438_p4 = por %p6437_p3, %p6436_p2 }
 0x256   : > { %4845 = vst [vmem:[%s200_s29] sm:$0x1] %v4844_v61  ;;  %v4922_v45 = vadd.f32 %v4921_v49, %v4920_v44  ;;  %p6439_p7 = pnand %p6438_p4, %p6432_p1 }
 0x258   : > { %6442 = shalt.err (!%p6439_p7)
}
 0x259   : > { %s6443_s27 = scalar_lea.hbm %s9285_s6, 16  ;;  %s6447_s5 = scalar_lea.hbm %s9364_s3, 32 }
 0x25a   : > { %p6444_p8 = scmp.ne.s32.totalorder %s9285_s6, %s6443_s27  ;;  %p6448_p11 = scmp.lt.s32.totalorder %s9285_s6, %s9364_s3 }
 0x25b   : > { %p6449_p12 = scmp.lt.s32.totalorder %s6447_s5, %s6443_s27 }
 0x25c   : > { %p6445_p9 = pnand %p6444_p8, %p6591_p5 }
 0x25d   : > { %p6450_p13 = por %p6449_p12, %p6448_p11 }
 0x25e   : > { %p6446_p10 = pneg %p6445_p9 }
 0x260   : > { %p6451_p0 = pnand %p6450_p13, %p6446_p10 }
 0x262   : > { %6454 = shalt.err (!%p6451_p0)
}
 0x263   : > { %6353 = dma.vmem_to_hbm [thread:$0]  (%p6591_p5), %s9287_s30, 16, %s9285_s6, %s9296_s10   ;;  %4923 = vst [vmem:[%s206_s12] sm:$0x1] %v4922_v45 }
 0x264   : > { %s6455_s11 = scalar_lea.vmem %s9294_s22, 16  ;;  %s6525_s13 = smov [#allocation6]  }
 0x265   : > { %p6456_p1 = scmp.ne.s32.totalorder %s9294_s22, %s6455_s11  ;;  %s6459_s14 = sshll.u32 %s6525_s13, 4  ;;  %s6460_s14 = int_to_ptr.vmem [resolvable:$false] %s6459_s14 }
 0x266   : > { %s6461_s23 = scalar_lea.vmem %s6460_s14, 32  ;;  %p6462_p4 = scmp.lt.s32.totalorder %s9294_s22, %s6460_s14 }
 0x267   : > { %p6457_p2 = pnand %p6456_p1, %p6591_p5  ;;  %p6463_p7 = scmp.lt.s32.totalorder %s6461_s23, %s6455_s11 }
 0x269   : > { %p6458_p3 = pneg %p6457_p2  ;;  %p6464_p8 = por %p6463_p7, %p6462_p4 }
 0x26b   : > { %p6465_p9 = pnand %p6464_p8, %p6458_p3 }
 0x26d   : > { %6468 = shalt.err (!%p6465_p9)
}
 0x26e   : > { %s6469_s8 = scalar_lea.hbm %s9292_s9, 16  ;;  %s6473_s6 = scalar_lea.hbm %s9365_s4, 32 }
 0x26f   : > { %p6470_p10 = scmp.ne.s32.totalorder %s9292_s9, %s6469_s8  ;;  %p6474_p13 = scmp.lt.s32.totalorder %s9292_s9, %s9365_s4 }
 0x270   : > { %p6475_p0 = scmp.lt.s32.totalorder %s6473_s6, %s6469_s8 }
 0x271   : > { %p6471_p11 = pnand %p6470_p10, %p6591_p5 }
 0x272   : > { %p6476_p1 = por %p6475_p0, %p6474_p13 }
 0x273   : > { %p6472_p12 = pneg %p6471_p11 }
 0x275   : > { %p6477_p2 = pnand %p6476_p1, %p6472_p12 }
 0x277   : > { %6480 = shalt.err (!%p6477_p2)
}
 0x278   : > { %6354 = dma.vmem_to_hbm [thread:$0]  (%p6591_p5), %s9294_s22, 16, %s9292_s9, %s9296_s10  }
 0x279 PF: > { %p6368_p3 = scmp.ge.s32.totalorder %s6519_s18, 2  ;;  %s4987_s29 = sand.u32 1, %s6507_s15  }
 0x27a   : > { %s4988_s5 = scalar_lea.sflag [#allocation3], %s4987_s29 }
 0x27b   : > { %p6359_p4 = pnand %p6368_p3, %p6595_p6 }
 0x27d   : > { %p6360_p7 = pneg %p6359_p4 }
 0x27f   : > { %6498 = dma.done.wait (%p6360_p7), %s4988_s5, 4608  }
 0x280   : > { %6500 = vsyncadd (%p6360_p7), %s4988_s5, 4294962688  ;;  %s4996_s19 = sand.u32 1, %s5087_s20  }
 0x281   : > { %s4997_s25 = scalar_lea.sflag [#allocation5], %s4996_s19 }
 0x282   : > { %6502 = dma.done.wait (%p6360_p7), %s4997_s25, 32  }
 0x283   : > { %6504 = vsyncadd (%p6360_p7), %s4997_s25, 4294967264  ;;  %p18_p5 = scmp.ge.s32.totalorder %s6576_s21, 4   ;;  %s9840_s15 = smov %s6511_s16 }
 0x284   : > { %s9841_s16 = smov %s6515_s17  ;;  %s9842_s17 = smov %s6589_s24 }
 0x285   : > { %s9843_s18 = smov %s6576_s21  ;;  %20 = sbr.rel (!%p18_p5) target bundleno = 5 (0x5), region = 103 }
 0x28a   :  { %5009 = vsyncpa [#allocation3], 1 }
 0x28b   :  { %5011 = vsyncpa [#allocation3 + $0x1], 1 }
 0x28c   :  { %5012 = vsyncpa [#allocation5], 1 }
 0x28d   :  { %5014 = vsyncpa [#allocation5 + $0x1], 1 }

</bundles_post_ra>
